<compile_context>
chip_gen: v7x
topology: tpu7x:2x2x1
jax: 0.10.0
libtpu: 0.0.40
codegen_flags: <defaults>
</compile_context>

<pallas_src>
import jax
import jax.numpy as jnp
from jax.experimental import pallas as pl
from jax.experimental.pallas import tpu as pltpu

NEG_SLOPE = 0.01       # torch.nn.LeakyReLU default negative_slope
NEG_INF = -1e30        # safe "-inf" for the running max


def _scores_kernel(src_ref, nf_ref, ef_ref,
                   w_node_ref, b_node_ref, w_proj_ref, b_proj_ref,
                   w_edge_ref, b_edge_ref, sel_ref,
                   t_src_ref, h_ref, stats_ref,
                   t_vmem):
    """Pass 1 (grid over edge tiles).

    t       = nf @ W_node + b_node            (computed once, VMEM scratch)
    t_src   = onehot(src_tile) @ t            (gather via MXU)
    h       = leaky_relu(sum_A((t_src @ Wp + bp) * (ef @ We + be)))   [tE, L]
    stats   = online (max, sum-exp) over ALL edges, per head          [2, L]
    """
    i = pl.program_id(0)
    n_layers = sel_ref.shape[1]

    @pl.when(i == 0)
    def _init():
        # Transformed node features: computed once, reused by every edge tile.
        t_vmem[...] = (jnp.dot(nf_ref[...], w_node_ref[...],
                               preferred_element_type=jnp.float32)
                       + b_node_ref[...])
        stats_ref[0:1, :] = jnp.full((1, n_layers), NEG_INF, jnp.float32)
        stats_ref[1:2, :] = jnp.zeros((1, n_layers), jnp.float32)

    tile_e = src_ref.shape[0]
    n_nodes = nf_ref.shape[0]

    # Build the one-hot gather matrix for this edge tile in-register.
    node_iota = jax.lax.broadcasted_iota(jnp.int32, (tile_e, n_nodes), 1)
    onehot_src = jnp.where(node_iota == src_ref[...], 1.0, 0.0).astype(jnp.float32)

    # Gather source-node transformed features.                      [tE, T]
    t_src = jnp.dot(onehot_src, t_vmem[...], preferred_element_type=jnp.float32)
    t_src_ref[...] = t_src

    # Fused multi-head projections.                                 [tE, L*A]
    scores = (jnp.dot(t_src, w_proj_ref[...], preferred_element_type=jnp.float32)
              + b_proj_ref[...])
    e_rep = (jnp.dot(ef_ref[...], w_edge_ref[...], preferred_element_type=jnp.float32)
             + b_edge_ref[...])
    # Per-head score = sum over each contiguous A-wide lane group.  [tE, L]
    h = jnp.dot(scores * e_rep, sel_ref[...], preferred_element_type=jnp.float32)
    h = jnp.where(h >= 0, h, NEG_SLOPE * h)                         # LeakyReLU
    h_ref[...] = h

    # Online softmax statistics over the edge dimension (dim 0), per head.
    m_old = stats_ref[0:1, :]
    l_old = stats_ref[1:2, :]
    m_new = jnp.maximum(m_old, jnp.max(h, axis=0, keepdims=True))
    l_new = (l_old * jnp.exp(m_old - m_new)
             + jnp.sum(jnp.exp(h - m_new), axis=0, keepdims=True))
    stats_ref[0:1, :] = m_new
    stats_ref[1:2, :] = l_new


def _aggregate_kernel(dst_ref, t_src_ref, h_ref, stats_ref,
                      h_agg_ref, a_ref):
    """Pass 2 (grid over edge tiles): finalize the global softmax, average the
    heads, and scatter-add  msg = t_src * a  into the node accumulator."""
    i = pl.program_id(0)
    n_layers = h_ref.shape[1]

    @pl.when(i == 0)
    def _init():
        h_agg_ref[...] = jnp.zeros_like(h_agg_ref)

    m = stats_ref[0:1, :]
    # Softmax denominator on the EUP; fold the 1/num_layers mean in as well.
    inv_l = pl.reciprocal(stats_ref[1:2, :], approx=True) * (1.0 / n_layers)
    att = jnp.exp(h_ref[...] - m) * inv_l                 # [tE, L]
    a = jnp.sum(att, axis=1, keepdims=True)               # [tE, 1] mean of heads
    a_ref[...] = a

    msg = t_src_ref[...] * a                               # [tE, T]

    # Build the (already transposed) one-hot scatter matrix:        [N, tE]
    n_nodes = h_agg_ref.shape[0]
    tile_e = h_ref.shape[0]
    node_iota = jax.lax.broadcasted_iota(jnp.int32, (n_nodes, tile_e), 0)
    onehot_dst_t = jnp.where(node_iota == dst_ref[...], 1.0, 0.0).astype(jnp.float32)

    # Scatter-add into the resident per-node accumulator.
    h_agg_ref[...] += jnp.dot(onehot_dst_t, msg, preferred_element_type=jnp.float32)


def _edge_tile(n_edges):
    # Tile widths must be multiples of 128 (lane width) unless a single tile
    # covers all edges.  Prefer the largest fitting tile.
    for cand in (512, 256, 128):
        if n_edges >= cand and n_edges % cand == 0:
            return cand
    return n_edges


def attention_aggregation_gnn(node_features, edge_features, src, dst,
                              w_node, b_node, w_proj, b_proj, w_edge, b_edge):
    n_nodes, node_dim = node_features.shape
    n_edges, edge_dim = edge_features.shape
    num_layers, t_dim, att_dim = w_proj.shape
    la = num_layers * att_dim

    # ---- wrapper-side weight packing (fused attention heads) --------------
    w_proj_all = jnp.transpose(w_proj, (1, 0, 2)).reshape(t_dim, la)   # [T, L*A]
    b_proj_all = b_proj.reshape(1, la)                                  # [1, L*A]
    w_edge_rep = jnp.tile(w_edge, (1, num_layers))                      # [Fe, L*A]
    b_edge_rep = jnp.tile(b_edge, (1, num_layers))                      # [1, L*A]
    # Selector that sums each contiguous A-wide lane group -> per-head score.
    sel = jnp.repeat(jnp.eye(num_layers, dtype=jnp.float32), att_dim, axis=0)

    src_col = src.astype(jnp.int32).reshape(n_edges, 1)                 # [E, 1]
    dst_row = dst.astype(jnp.int32).reshape(1, n_edges)                 # [1, E]

    tile_e = _edge_tile(n_edges)
    n_tiles = n_edges // tile_e

    cparams = pltpu.CompilerParams(
        dimension_semantics=("arbitrary",),        # resident accumulators
        vmem_limit_bytes=32 * 1024 * 1024)         # scale with tile_e if grown

    def whole(shape):
        return pl.BlockSpec(shape, lambda i: (0,) * len(shape))

    # ----------- pass 1: per-edge scores + online softmax statistics -------
    t_src, h_scores, stats = pl.pallas_call(
        _scores_kernel,
        grid=(n_tiles,),
        in_specs=[
            pl.BlockSpec((tile_e, 1), lambda i: (i, 0)),            # src idx
            whole((n_nodes, node_dim)),                             # node feats
            pl.BlockSpec((tile_e, edge_dim), lambda i: (i, 0)),     # edge feats
            whole(w_node.shape), whole(b_node.shape),
            whole(w_proj_all.shape), whole(b_proj_all.shape),
            whole(w_edge_rep.shape), whole(b_edge_rep.shape),
            whole(sel.shape),
        ],
        out_specs=(
            pl.BlockSpec((tile_e, t_dim), lambda i: (i, 0)),        # t_src
            pl.BlockSpec((tile_e, num_layers), lambda i: (i, 0)),   # h (pre-softmax)
            pl.BlockSpec((2, num_layers), lambda i: (0, 0)),        # running max / sum-exp
        ),
        out_shape=(
            jax.ShapeDtypeStruct((n_edges, t_dim), jnp.float32),
            jax.ShapeDtypeStruct((n_edges, num_layers), jnp.float32),
            jax.ShapeDtypeStruct((2, num_layers), jnp.float32),
        ),
        scratch_shapes=[pltpu.VMEM((n_nodes, t_dim), jnp.float32)],
        compiler_params=cparams,
    )(src_col, node_features, edge_features,
      w_node, b_node, w_proj_all, b_proj_all, w_edge_rep, b_edge_rep, sel)

    # ----------- pass 2: softmax finalize + scatter-add aggregation --------
    h_agg, a = pl.pallas_call(
        _aggregate_kernel,
        grid=(n_tiles,),
        in_specs=[
            pl.BlockSpec((1, tile_e), lambda i: (0, i)),            # dst idx
            pl.BlockSpec((tile_e, t_dim), lambda i: (i, 0)),        # t_src
            pl.BlockSpec((tile_e, num_layers), lambda i: (i, 0)),   # h
            whole((2, num_layers)),                                 # stats
        ],
        out_specs=(
            pl.BlockSpec((n_nodes, t_dim), lambda i: (0, 0)),       # h_agg accumulator
            pl.BlockSpec((tile_e, 1), lambda i: (i, 0)),            # a
        ),
        out_shape=(
            jax.ShapeDtypeStruct((n_nodes, t_dim), jnp.float32),
            jax.ShapeDtypeStruct((n_edges, 1), jnp.float32),
        ),
        compiler_params=cparams,
    )(dst_row, t_src, h_scores, stats)

    return h_agg, a


def reference(node_features, edge_features, src, dst,
              w_node, b_node, w_proj, b_proj, w_edge, b_edge):
    """Pure-JAX mirror of the PyTorch/DGL forward pass (sanity check)."""
    t = node_features @ w_node + b_node
    e = edge_features @ w_edge + b_edge
    atts = []
    for i in range(w_proj.shape[0]):
        nr = t @ w_proj[i] + b_proj[i]
        h = jnp.sum(nr[src] * e, axis=1)
        h = jnp.where(h >= 0, h, NEG_SLOPE * h)
        atts.append(jax.nn.softmax(h, axis=0))
    a = jnp.stack(atts, axis=1).mean(axis=1)[:, None]
    msg = t[src] * a
    h_agg = jax.ops.segment_sum(msg, dst, num_segments=node_features.shape[0])
    return h_agg, a


if __name__ == "__main__":
    # Module hyper-parameters (from the reference script)
    node_feature_size = 52
    edge_feature_size = 64
    attention_size = 8
    transformed_node_feature_size = 52
    num_attention_layers = 3

    # Small synthetic graph (replaces edge.csv): multiple edge tiles so the
    # online-softmax / accumulator path is exercised (2 tiles of 512 edges).
    n_nodes = 32
    n_edges = 1024
    src = jnp.array([(7 * i) % n_nodes for i in range(n_edges)], dtype=jnp.int32)
    dst = jnp.array([(3 * i + 1) % n_nodes for i in range(n_edges)], dtype=jnp.int32)

    key = jax.random.PRNGKey(0)
    keys = jax.random.split(key, 8)
    node_features = jax.random.normal(keys[0], (n_nodes, node_feature_size), jnp.float32)
    edge_features = jax.random.normal(keys[1], (n_edges, edge_feature_size), jnp.float32)

    # Deterministic parameter init (stored as [in, out]; biases kept 2D).
    w_node = 0.1 * jax.random.normal(
        keys[2], (node_feature_size, transformed_node_feature_size), jnp.float32)
    b_node = 0.1 * jax.random.normal(
        keys[3], (1, transformed_node_feature_size), jnp.float32)
    w_proj = 0.1 * jax.random.normal(
        keys[4], (num_attention_layers, transformed_node_feature_size, attention_size),
        jnp.float32)
    b_proj = 0.1 * jax.random.normal(
        keys[5], (num_attention_layers, 1, attention_size), jnp.float32)
    w_edge = 0.1 * jax.random.normal(
        keys[6], (edge_feature_size, attention_size), jnp.float32)
    b_edge = 0.1 * jax.random.normal(keys[7], (1, attention_size), jnp.float32)

    h_agg, a = attention_aggregation_gnn(
        node_features, edge_features, src, dst,
        w_node, b_node, w_proj, b_proj, w_edge, b_edge)
    jax.block_until_ready((h_agg, a))

    h_ref, a_ref = reference(node_features, edge_features, src, dst,
                             w_node, b_node, w_proj, b_proj, w_edge, b_edge)

    # Tolerances account for the EUP approximate reciprocal in the softmax.
    assert jnp.allclose(h_agg, h_ref, rtol=5e-3, atol=1e-4), "h_agg mismatch"
    assert jnp.allclose(a, a_ref, rtol=5e-3, atol=1e-6), "attention mismatch"

    print("KERNEL_OK")
</pallas_src>

<mosaic_0001>
module attributes {stable_mosaic.version = 11 : i64} {
  func.func @_scores_kernel(%arg0: i32, %arg1: memref<512x1xi32, #tpu.memory_space<vmem>>, %arg2: memref<32x52xf32, #tpu.memory_space<vmem>>, %arg3: memref<512x64xf32, #tpu.memory_space<vmem>>, %arg4: memref<52x52xf32, #tpu.memory_space<vmem>>, %arg5: memref<1x52xf32, #tpu.memory_space<vmem>>, %arg6: memref<52x24xf32, #tpu.memory_space<vmem>>, %arg7: memref<1x24xf32, #tpu.memory_space<vmem>>, %arg8: memref<64x24xf32, #tpu.memory_space<vmem>>, %arg9: memref<1x24xf32, #tpu.memory_space<vmem>>, %arg10: memref<24x3xf32, #tpu.memory_space<vmem>>, %arg11: memref<512x52xf32, #tpu.memory_space<vmem>>, %arg12: memref<512x3xf32, #tpu.memory_space<vmem>>, %arg13: memref<2x3xf32, #tpu.memory_space<vmem>>, %arg14: memref<32x52xf32, #tpu.memory_space<vmem>>) attributes {dimension_semantics = [#tpu.dimension_semantics<arbitrary>], iteration_bounds = array<i64: 2>, scalar_prefetch = 0 : i64, scratch_operands = 1 : i64, tpu.core_type = #tpu.core_type<tc>, window_params = [{transform_indices = @transform_0, window_bounds = array<i64: 512, 1>}, {pipeline_mode = #tpu.pipeline_mode<synchronous>, transform_indices = @transform_1, window_bounds = array<i64: 32, 52>}, {transform_indices = @transform_2, window_bounds = array<i64: 512, 64>}, {pipeline_mode = #tpu.pipeline_mode<synchronous>, transform_indices = @transform_3, window_bounds = array<i64: 52, 52>}, {pipeline_mode = #tpu.pipeline_mode<synchronous>, transform_indices = @transform_4, window_bounds = array<i64: 1, 52>}, {pipeline_mode = #tpu.pipeline_mode<synchronous>, transform_indices = @transform_5, window_bounds = array<i64: 52, 24>}, {pipeline_mode = #tpu.pipeline_mode<synchronous>, transform_indices = @transform_6, window_bounds = array<i64: 1, 24>}, {pipeline_mode = #tpu.pipeline_mode<synchronous>, transform_indices = @transform_7, window_bounds = array<i64: 64, 24>}, {pipeline_mode = #tpu.pipeline_mode<synchronous>, transform_indices = @transform_8, window_bounds = array<i64: 1, 24>}, {pipeline_mode = #tpu.pipeline_mode<synchronous>, transform_indices = @transform_9, window_bounds = array<i64: 24, 3>}, {transform_indices = @transform_10, window_bounds = array<i64: 512, 52>}, {transform_indices = @transform_11, window_bounds = array<i64: 512, 3>}, {pipeline_mode = #tpu.pipeline_mode<synchronous>, transform_indices = @transform_12, window_bounds = array<i64: 2, 3>}]} {
    %c0_i32 = arith.constant 0 : i32
    %0 = arith.cmpi eq, %arg0, %c0_i32 : i32
    %1 = arith.extui %0 : i1 to i32
    %c0_i32_0 = arith.constant 0 : i32
    %2 = arith.cmpi ne, %1, %c0_i32_0 : i32
    scf.if %2 {
      %c0_36 = arith.constant 0 : index
      %c0_37 = arith.constant 0 : index
      %49 = vector.load %arg2[%c0_36, %c0_37] : memref<32x52xf32, #tpu.memory_space<vmem>>, vector<32x52xf32>
      %c0_38 = arith.constant 0 : index
      %c0_39 = arith.constant 0 : index
      %50 = vector.load %arg4[%c0_38, %c0_39] : memref<52x52xf32, #tpu.memory_space<vmem>>, vector<52x52xf32>
      %cst_40 = arith.constant dense<0.000000e+00> : vector<32x52xf32>
      %51 = tpu.matmul %49, %50, %cst_40 {dimension_numbers = #tpu.dot_dimension_numbers<[1], [0], [0], [1], [0, 0, 1, 1], [], []>} : vector<32x52xf32>, vector<52x52xf32>, vector<32x52xf32> -> vector<32x52xf32>
      %c0_41 = arith.constant 0 : index
      %c0_42 = arith.constant 0 : index
      %52 = vector.load %arg5[%c0_41, %c0_42] : memref<1x52xf32, #tpu.memory_space<vmem>>, vector<1x52xf32>
      %53 = vector.broadcast %52 : vector<1x52xf32> to vector<32x52xf32>
      %54 = arith.addf %51, %53 : vector<32x52xf32>
      %c0_43 = arith.constant 0 : index
      %c0_44 = arith.constant 0 : index
      %55 = vector.load %arg14[%c0_43, %c0_44] : memref<32x52xf32, #tpu.memory_space<vmem>>, vector<32x52xf32>
      tpu.vector_store %arg14[%c0_43, %c0_44], %54 {strides = array<i32>} : memref<32x52xf32, #tpu.memory_space<vmem>>, vector<32x52xf32>,
      %cst_45 = arith.constant -1.000000e+30 : f32
      %56 = vector.broadcast %cst_45 : f32 to vector<1x3xf32>
      %c0_46 = arith.constant 0 : index
      %c0_47 = arith.constant 0 : index
      %57 = vector.load %arg13[%c0_46, %c0_47] : memref<2x3xf32, #tpu.memory_space<vmem>>, vector<1x3xf32>
      tpu.vector_store %arg13[%c0_46, %c0_47], %56 {strides = array<i32>} : memref<2x3xf32, #tpu.memory_space<vmem>>, vector<1x3xf32>,
      %cst_48 = arith.constant 0.000000e+00 : f32
      %58 = vector.broadcast %cst_48 : f32 to vector<1x3xf32>
      %c1_49 = arith.constant 1 : index
      %c0_50 = arith.constant 0 : index
      %59 = vector.load %arg13[%c1_49, %c0_50] : memref<2x3xf32, #tpu.memory_space<vmem>>, vector<1x3xf32>
      tpu.vector_store %arg13[%c1_49, %c0_50], %58 {strides = array<i32>} : memref<2x3xf32, #tpu.memory_space<vmem>>, vector<1x3xf32>,
    } else {
    }
    %3 = tpu.iota {dimensions = array<i32: 1>} : vector<512x32xi32>
    %c0 = arith.constant 0 : index
    %c0_1 = arith.constant 0 : index
    %4 = vector.load %arg1[%c0, %c0_1] : memref<512x1xi32, #tpu.memory_space<vmem>>, vector<512x1xi32>
    %5 = vector.broadcast %4 : vector<512x1xi32> to vector<512x32xi32>
    %6 = arith.cmpi eq, %3, %5 : vector<512x32xi32>
    %cst = arith.constant 1.000000e+00 : f32
    %cst_2 = arith.constant 0.000000e+00 : f32
    %7 = vector.broadcast %cst : f32 to vector<512x32xf32>
    %8 = vector.broadcast %cst_2 : f32 to vector<512x32xf32>
    %9 = arith.select %6, %7, %8 : vector<512x32xi1>, vector<512x32xf32>
    %c0_3 = arith.constant 0 : index
    %c0_4 = arith.constant 0 : index
    %10 = vector.load %arg14[%c0_3, %c0_4] : memref<32x52xf32, #tpu.memory_space<vmem>>, vector<32x52xf32>
    %cst_5 = arith.constant dense<0.000000e+00> : vector<512x52xf32>
    %11 = tpu.matmul %9, %10, %cst_5 {dimension_numbers = #tpu.dot_dimension_numbers<[1], [0], [0], [1], [0, 0, 1, 1], [], []>} : vector<512x32xf32>, vector<32x52xf32>, vector<512x52xf32> -> vector<512x52xf32>
    %c0_6 = arith.constant 0 : index
    %c0_7 = arith.constant 0 : index
    %12 = vector.load %arg11[%c0_6, %c0_7] : memref<512x52xf32, #tpu.memory_space<vmem>>, vector<512x52xf32>
    tpu.vector_store %arg11[%c0_6, %c0_7], %11 {strides = array<i32>} : memref<512x52xf32, #tpu.memory_space<vmem>>, vector<512x52xf32>,
    %c0_8 = arith.constant 0 : index
    %c0_9 = arith.constant 0 : index
    %13 = vector.load %arg6[%c0_8, %c0_9] : memref<52x24xf32, #tpu.memory_space<vmem>>, vector<52x24xf32>
    %cst_10 = arith.constant dense<0.000000e+00> : vector<512x24xf32>
    %14 = tpu.matmul %11, %13, %cst_10 {dimension_numbers = #tpu.dot_dimension_numbers<[1], [0], [0], [1], [0, 0, 1, 1], [], []>} : vector<512x52xf32>, vector<52x24xf32>, vector<512x24xf32> -> vector<512x24xf32>
    %c0_11 = arith.constant 0 : index
    %c0_12 = arith.constant 0 : index
    %15 = vector.load %arg7[%c0_11, %c0_12] : memref<1x24xf32, #tpu.memory_space<vmem>>, vector<1x24xf32>
    %16 = vector.broadcast %15 : vector<1x24xf32> to vector<512x24xf32>
    %17 = arith.addf %14, %16 : vector<512x24xf32>
    %c0_13 = arith.constant 0 : index
    %c0_14 = arith.constant 0 : index
    %18 = vector.load %arg3[%c0_13, %c0_14] : memref<512x64xf32, #tpu.memory_space<vmem>>, vector<512x64xf32>
    %c0_15 = arith.constant 0 : index
    %c0_16 = arith.constant 0 : index
    %19 = vector.load %arg8[%c0_15, %c0_16] : memref<64x24xf32, #tpu.memory_space<vmem>>, vector<64x24xf32>
    %cst_17 = arith.constant dense<0.000000e+00> : vector<512x24xf32>
    %20 = tpu.matmul %18, %19, %cst_17 {dimension_numbers = #tpu.dot_dimension_numbers<[1], [0], [0], [1], [0, 0, 1, 1], [], []>} : vector<512x64xf32>, vector<64x24xf32>, vector<512x24xf32> -> vector<512x24xf32>
    %c0_18 = arith.constant 0 : index
    %c0_19 = arith.constant 0 : index
    %21 = vector.load %arg9[%c0_18, %c0_19] : memref<1x24xf32, #tpu.memory_space<vmem>>, vector<1x24xf32>
    %22 = vector.broadcast %21 : vector<1x24xf32> to vector<512x24xf32>
    %23 = arith.addf %20, %22 : vector<512x24xf32>
    %24 = arith.mulf %17, %23 : vector<512x24xf32>
    %c0_20 = arith.constant 0 : index
    %c0_21 = arith.constant 0 : index
    %25 = vector.load %arg10[%c0_20, %c0_21] : memref<24x3xf32, #tpu.memory_space<vmem>>, vector<24x3xf32>
    %cst_22 = arith.constant dense<0.000000e+00> : vector<512x3xf32>
    %26 = tpu.matmul %24, %25, %cst_22 {dimension_numbers = #tpu.dot_dimension_numbers<[1], [0], [0], [1], [0, 0, 1, 1], [], []>} : vector<512x24xf32>, vector<24x3xf32>, vector<512x3xf32> -> vector<512x3xf32>
    %cst_23 = arith.constant 0.000000e+00 : f32
    %27 = vector.broadcast %cst_23 : f32 to vector<512x3xf32>
    %28 = arith.cmpf oge, %26, %27 : vector<512x3xf32>
    %cst_24 = arith.constant 0.00999999977 : f32
    %29 = vector.broadcast %cst_24 : f32 to vector<512x3xf32>
    %30 = arith.mulf %29, %26 : vector<512x3xf32>
    %31 = arith.select %28, %26, %30 : vector<512x3xi1>, vector<512x3xf32>
    %c0_25 = arith.constant 0 : index
    %c0_26 = arith.constant 0 : index
    %32 = vector.load %arg12[%c0_25, %c0_26] : memref<512x3xf32, #tpu.memory_space<vmem>>, vector<512x3xf32>
    tpu.vector_store %arg12[%c0_25, %c0_26], %31 {strides = array<i32>} : memref<512x3xf32, #tpu.memory_space<vmem>>, vector<512x3xf32>,
    %c0_27 = arith.constant 0 : index
    %c0_28 = arith.constant 0 : index
    %33 = vector.load %arg13[%c0_27, %c0_28] : memref<2x3xf32, #tpu.memory_space<vmem>>, vector<1x3xf32>
    %c1 = arith.constant 1 : index
    %c0_29 = arith.constant 0 : index
    %34 = vector.load %arg13[%c1, %c0_29] : memref<2x3xf32, #tpu.memory_space<vmem>>, vector<1x3xf32>
    %cst_30 = arith.constant dense<0xFF800000> : vector<3xf32>
    %35 = vector.multi_reduction <maximumf>, %31, %cst_30 [0] : vector<512x3xf32> to vector<3xf32>
    %36 = vector.shape_cast %35 : vector<3xf32> to vector<1x3xf32>
    %37 = arith.maximumf %33, %36 : vector<1x3xf32>
    %38 = arith.subf %33, %37 : vector<1x3xf32>
    %39 = math.exp %38 : vector<1x3xf32>
    %40 = arith.mulf %34, %39 : vector<1x3xf32>
    %41 = vector.broadcast %37 : vector<1x3xf32> to vector<512x3xf32>
    %42 = arith.subf %31, %41 : vector<512x3xf32>
    %43 = math.exp %42 : vector<512x3xf32>
    %cst_31 = arith.constant dense<0.000000e+00> : vector<3xf32>
    %44 = vector.multi_reduction <add>, %43, %cst_31 [0] : vector<512x3xf32> to vector<3xf32>
    %45 = vector.shape_cast %44 : vector<3xf32> to vector<1x3xf32>
    %46 = arith.addf %40, %45 : vector<1x3xf32>
    %c0_32 = arith.constant 0 : index
    %c0_33 = arith.constant 0 : index
    %47 = vector.load %arg13[%c0_32, %c0_33] : memref<2x3xf32, #tpu.memory_space<vmem>>, vector<1x3xf32>
    tpu.vector_store %arg13[%c0_32, %c0_33], %37 {strides = array<i32>} : memref<2x3xf32, #tpu.memory_space<vmem>>, vector<1x3xf32>,
    %c1_34 = arith.constant 1 : index
    %c0_35 = arith.constant 0 : index
    %48 = vector.load %arg13[%c1_34, %c0_35] : memref<2x3xf32, #tpu.memory_space<vmem>>, vector<1x3xf32>
    tpu.vector_store %arg13[%c1_34, %c0_35], %46 {strides = array<i32>} : memref<2x3xf32, #tpu.memory_space<vmem>>, vector<1x3xf32>,
    return
  }
  func.func @transform_0(%arg0: i32) -> (i32, i32) {
    %c0_i32 = arith.constant 0 : i32
    %c0_i32_0 = arith.constant 0 : i32
    return %arg0, %c0_i32 : i32, i32
  }
  func.func @transform_1(%arg0: i32) -> (i32, i32) {
    %c0_i32 = arith.constant 0 : i32
    %c0_i32_0 = arith.constant 0 : i32
    %c0_i32_1 = arith.constant 0 : i32
    return %c0_i32, %c0_i32_0 : i32, i32
  }
  func.func @transform_2(%arg0: i32) -> (i32, i32) {
    %c0_i32 = arith.constant 0 : i32
    %c0_i32_0 = arith.constant 0 : i32
    return %arg0, %c0_i32 : i32, i32
  }
  func.func @transform_3(%arg0: i32) -> (i32, i32) {
    %c0_i32 = arith.constant 0 : i32
    %c0_i32_0 = arith.constant 0 : i32
    %c0_i32_1 = arith.constant 0 : i32
    return %c0_i32, %c0_i32_0 : i32, i32
  }
  func.func @transform_4(%arg0: i32) -> (i32, i32) {
    %c0_i32 = arith.constant 0 : i32
    %c0_i32_0 = arith.constant 0 : i32
    %c0_i32_1 = arith.constant 0 : i32
    return %c0_i32, %c0_i32_0 : i32, i32
  }
  func.func @transform_5(%arg0: i32) -> (i32, i32) {
    %c0_i32 = arith.constant 0 : i32
    %c0_i32_0 = arith.constant 0 : i32
    %c0_i32_1 = arith.constant 0 : i32
    return %c0_i32, %c0_i32_0 : i32, i32
  }
  func.func @transform_6(%arg0: i32) -> (i32, i32) {
    %c0_i32 = arith.constant 0 : i32
    %c0_i32_0 = arith.constant 0 : i32
    %c0_i32_1 = arith.constant 0 : i32
    return %c0_i32, %c0_i32_0 : i32, i32
  }
  func.func @transform_7(%arg0: i32) -> (i32, i32) {
    %c0_i32 = arith.constant 0 : i32
    %c0_i32_0 = arith.constant 0 : i32
    %c0_i32_1 = arith.constant 0 : i32
    return %c0_i32, %c0_i32_0 : i32, i32
  }
  func.func @transform_8(%arg0: i32) -> (i32, i32) {
    %c0_i32 = arith.constant 0 : i32
    %c0_i32_0 = arith.constant 0 : i32
    %c0_i32_1 = arith.constant 0 : i32
    return %c0_i32, %c0_i32_0 : i32, i32
  }
  func.func @transform_9(%arg0: i32) -> (i32, i32) {
    %c0_i32 = arith.constant 0 : i32
    %c0_i32_0 = arith.constant 0 : i32
    %c0_i32_1 = arith.constant 0 : i32
    return %c0_i32, %c0_i32_0 : i32, i32
  }
  func.func @transform_10(%arg0: i32) -> (i32, i32) {
    %c0_i32 = arith.constant 0 : i32
    %c0_i32_0 = arith.constant 0 : i32
    return %arg0, %c0_i32 : i32, i32
  }
  func.func @transform_11(%arg0: i32) -> (i32, i32) {
    %c0_i32 = arith.constant 0 : i32
    %c0_i32_0 = arith.constant 0 : i32
    return %arg0, %c0_i32 : i32, i32
  }
  func.func @transform_12(%arg0: i32) -> (i32, i32) {
    %c0_i32 = arith.constant 0 : i32
    %c0_i32_0 = arith.constant 0 : i32
    %c0_i32_1 = arith.constant 0 : i32
    return %c0_i32, %c0_i32_0 : i32, i32
  }
}

</mosaic_0001>

<bundles_post_ra>
// kernel: tpu_custom_call.1
= control target key start
LH: loop header
LB: loop body
LE: loop exit
PB: predicated region body
PF: predicated region fallthrough
CT: control target
= control target key end

     0   :  { %18 = vsyncpa [#allocation4], 0  ;;  %s5707_s21 = smov 0   ;;  %s7530_s0 = inlined_call_operand.vmem [shape: s32[1024,1], index: 0, kind: input, shape index: {}]   ;;  %s7531_s1 = inlined_call_operand.vmem [shape: f32[32,52], index: 1, kind: input, shape index: {}]   ;;  %s7532_s2 = inlined_call_operand.vmem [shape: f32[1024,64], index: 2, kind: input, shape index: {}]   ;;  %s7533_s3 = inlined_call_operand.vmem [shape: f32[52,52], index: 3, kind: input, shape index: {}]   ;;  %s7534_s4 = inlined_call_operand.vmem [shape: f32[1,52], index: 4, kind: input, shape index: {}]   ;;  %s7535_s5 = inlined_call_operand.vmem [shape: f32[52,24], index: 5, kind: input, shape index: {}]   ;;  %s7536_s6 = inlined_call_operand.vmem [shape: f32[1,24], index: 6, kind: input, shape index: {}]   ;;  %s7537_s7 = inlined_call_operand.vmem [shape: f32[64,24], index: 7, kind: input, shape index: {}]   ;;  %s7538_s8 = inlined_call_operand.vmem [shape: f32[1,24], index: 8, kind: input, shape index: {}]   ;;  %s7539_s9 = inlined_call_operand.vmem [shape: f32[24,3], index: 9, kind: input, shape index: {}]   ;;  %s7540_s10 = inlined_call_operand.vmem [shape: f32[1024,52], index: 10, kind: output, shape index: {0}]   ;;  %s7541_s11 = inlined_call_operand.vmem [shape: f32[1024,3], index: 11, kind: output, shape index: {1}]   ;;  %s7542_s12 = inlined_call_operand.hbm [shape: f32[2,3], index: 12, kind: output, shape index: {2}]  }
   0x1 LB: > { %s5713_s22 = sadd.s32 4294967295, %s5635_s21   ;;  %p4372_p0 = scmp.ge.s32.totalorder %s5635_s21, 1  ;;  %s5635_s21 = sphi %s5707_s21, %s24_s21  }
   0x2   : > { %p375_p1 = scmp.lt.s32.totalorder %s5635_s21, 3 }
   0x4   : > { %p376_p2 = pnand %p4372_p0, %p375_p1 }
   0x6   : > { %379 = sbr.rel (%p376_p2) target bundleno = 1351 (0x547), region = 60 }
   0xd   : > { %s4373_s23 = sshll.u32 %s5713_s22, 6  ;;  %p4381_p4 = scmp.ne.s32.totalorder %s5713_s22, 0 }
   0xe   : > { %p428_p3 = scmp.lt.s32.totalorder %s4373_s23, 127  ;;  %v459_v0 = vld [vmem:[%s7533_s3] sm:$0xff] (!%p4381_p4)  ;;  %v460_v1 = vld [vmem:[%s7533_s3 + $0x8] sm:$0xff] (!%p4381_p4)  ;;  %v461_v2 = vld [vmem:[%s7533_s3 + $0x10] sm:$0xff] (!%p4381_p4)  ;;  %vm473_vm0 = vcmask (!%p4381_p4), 424960   ;;  %vm486_vm1 = vcmask (!%p4381_p4), 1043456  }
   0xf   : > { %454 = sbr.rel (%p4381_p4) target bundleno = 247 (0xf7), region = 64  ;;  %v5388_v3 = vpack.c.bf16 (!%p4381_p4), %v460_v1, %v459_v0  ;;  %v462_v4 = vld [vmem:[%s7533_s3 + $0x18] sm:$0xff] (!%p4381_p4)  ;;  %v463_v6 = vld [vmem:[%s7533_s3 + $0x20] sm:$0xff] (!%p4381_p4)  ;;  %v464_v7 = vld [vmem:[%s7533_s3 + $0x28] sm:$0xff] (!%p4381_p4)  ;;  %vm579_vm2 = vcmask (!%p4381_p4), 16384   ;;  %v5638_v15 = vmov (!%p4381_p4), 0.0  }
  0x10   : > { %s7613_s23 = smov (!%p428_p3, %s4373_s23), 127  ;;  %v5392_v5 = vpack.c.bf16 (!%p4381_p4), %v462_v4, %v461_v2  ;;  %v455_v8 = vld [vmem:[%s7531_s1] sm:$0xff] (!%p4381_p4)  ;;  %v457_v9 = vld [vmem:[%s7531_s1 + $0x10] sm:$0xff] (!%p4381_p4)  ;;  %v5396_v10 = vpack.c.bf16 (!%p4381_p4), %v464_v7, %v463_v6  ;;  %v456_v12 = vld [vmem:[%s7531_s1 + $0x8] sm:$0xff] (!%p4381_p4)  ;;  %v5637_v14 = vmov (!%p4381_p4), -1e+30  }
  0x11   : > { %s4374_s24 = sshll.u32 %s7613_s23, 3  ;;  %5389 = vmatprep.subr.bf16.mxu0 (!%p4381_p4), %v5388_v3  ;;  %5440 = vmatprep.subr.bf16.mxu1 (!%p4381_p4), %v5388_v3  ;;  %v465_v11 = vld [vmem:[%s7533_s3 + $0x30] sm:$0xf] (!%p4381_p4)  ;;  %v458_v13 = vld [vmem:[%s7531_s1 + $0x18] sm:$0xff] (!%p4381_p4)  ;;  %580 = vst.msk [vmem:[#allocation3] sm:$0x1] (!%p4381_p4), %vm579_vm2, %v5637_v14 }
  0x12   : > { %s5721_s27 = scalar_lea.vmem %s7530_s0, %s4374_s24  ;;  %s5726_s30 = scalar_lea.vmem %s7532_s2, %s4374_s24  ;;  %5391 = vmatpush3.bf16.msra.mxu0 (!%p4381_p4), %v5388_v3  ;;  %5444 = vmatpush3.bf16.msra.mxu1 (!%p4381_p4), %v5388_v3  ;;  %581 = vst.msk [vmem:[#allocation3 + $0x1] sm:$0x1] (!%p4381_p4), %vm579_vm2, %v5638_v15  ;;  %v4382_v16 = vld [vmem:[%s7534_s4] ss:$0 sm:$0xff] (!%p4381_p4) }
  0x13   : > { %s5731_s15 = scalar_lea.vmem %s7540_s10, %s4374_s24  ;;  %s5736_s18 = scalar_lea.vmem %s7541_s11, %s4374_s24  ;;  %5393 = vmatprep.subr.bf16.mxu0 (!%p4381_p4), %v5392_v5  ;;  %5441 = vmatprep.subr.bf16.mxu1 (!%p4381_p4), %v5392_v5 }
  0x14   : > { %4954 = vmatprep.mubr.msk.f32.mxu0 (!%p4381_p4), %vm473_vm0, %v455_v8  ;;  %4957 = vmatprep.mubr.msk.f32.mxu1 (!%p4381_p4), %vm473_vm0, %v457_v9 }
  0x16   : > { %5395 = vmatpush3.bf16.msra.mxu0 %v5392_v5  ;;  %5445 = vmatpush3.bf16.msra.mxu1 %v5392_v5 }
  0x17   : > { %5397 = vmatprep.subr.bf16.mxu0 %v5396_v10  ;;  %5442 = vmatprep.subr.bf16.mxu1 %v5396_v10 }
  0x1a   : > { %5399 = vmatpush3.bf16.msra.mxu0 %v5396_v10  ;;  %5446 = vmatpush3.bf16.msra.mxu1 %v5396_v10 }
  0x1b   : > { %4952 = vmatprep.subr.msk.mxu0 %vm486_vm1, %v465_v11  ;;  %5443 = vmatprep.subr.msk.mxu1 %vm486_vm1, %v465_v11 }
  0x1e   : > { %4953 = vmatpush3.msk.msra.mxu0 %vm486_vm1, %v465_v11  ;;  %5447 = vmatpush3.msk.msra.mxu1 %vm486_vm1, %v465_v11 }
  0x1f   : > { %4955 = vmatmul.mubr.msk.f32.vlgmr.msra.gmra.mrb[0].mxu0 %vm473_vm0, %v456_v12  ;;  %4958 = vmatmul.mubr.msk.f32.vlgmr.msra.gmra.mrb[0].mxu1 %vm473_vm0, %v458_v13 }
  0xf2   : > { %v4956_v17 = vpop.f32.mrb[0].mxu0  ;;  %v4959_v18 = vpop.f32.mrb[0].mxu1 }
  0xf3   : > { %v562_v19 = vadd.f32 %v4956_v17, %v4382_v16  ;;  %v572_v20 = vadd.f32 %v4959_v18, %v4382_v16  ;;  %v556_v21 = vpop.f32.mrb[1].mxu0  ;;  %v566_v22 = vpop.f32.mrb[1].mxu1 }
  0xf4   : > { %v557_v23 = vadd.f32 %v4382_v16, %v556_v21  ;;  %v567_v24 = vadd.f32 %v4382_v16, %v566_v22 }
  0xf5   : > { %576 = vst.msk [vmem:[#allocation2 + $0x8] sm:$0xff] %vm473_vm0, %v562_v19  ;;  %578 = vst.msk [vmem:[#allocation2 + $0x18] sm:$0xff] %vm473_vm0, %v572_v20 }
  0xf6   : > { %575 = vst.msk [vmem:[#allocation2] sm:$0xff] %vm473_vm0, %v557_v23  ;;  %577 = vst.msk [vmem:[#allocation2 + $0x10] sm:$0xff] %vm473_vm0, %v567_v24 }
  0xf7 PF: > { %v586_v25 = vld [vmem:[%s5721_s27 + $0x10] sm:$0xff]  ;;  %v584_v26 = vld [vmem:[%s5721_s27] sm:$0xff]  ;;  %v5639_v27 = vmov 0   ;;  %v587_v28 = vld [vmem:[%s5721_s27 + $0x18] sm:$0xff]  ;;  %vm972_vm3 = vcmask 261120   ;;  %p5452_p5 = scmp.eq.s32.totalorder %s5713_s22, 1 }
  0xf8   : > { %5468 = vset.pattern.permute.xlu1 %v5639_v27  ;;  %5467 = vset.pattern.permute.xlu0 %v5639_v27  ;;  %v585_v29 = vld [vmem:[%s5721_s27 + $0x8] sm:$0xff]  ;;  %v588_v31 = vld [vmem:[%s5721_s27 + $0x20] sm:$0xff]  ;;  %v591_v32 = vld [vmem:[%s5721_s27 + $0x38] sm:$0xff] }
  0xf9   : > { %655 = vperm.xlu1 %5468, %v586_v25   ;;  %649 = vperm.xlu0 %5467, %v584_v26   ;;  %v589_v30 = vld [vmem:[%s5721_s27 + $0x28] sm:$0xff]  ;;  %v590_v33 = vld [vmem:[%s5721_s27 + $0x30] sm:$0xff]  ;;  %v592_v35 = vld [vmem:[%s5721_s27 + $0x40] sm:$0xff] }
  0xfa   : > { %v593_v34 = vld [vmem:[%s5721_s27 + $0x48] sm:$0xff]  ;;  %v595_v36 = vld [vmem:[%s5721_s27 + $0x58] sm:$0xff]  ;;  %v594_v37 = vld [vmem:[%s5721_s27 + $0x50] sm:$0xff] }
  0xfb   : > { %v597_v43 = vld [vmem:[%s5721_s27 + $0x68] sm:$0xff]  ;;  %v596_v44 = vld [vmem:[%s5721_s27 + $0x60] sm:$0xff]  ;;  %v599_v46 = vld [vmem:[%s5721_s27 + $0x78] sm:$0xff] }
  0xfc   : > { %v969_v39 = vld [vmem:[#allocation2 + $0x8] sm:$0xff]  ;;  %v971_v42 = vld [vmem:[#allocation2 + $0x18] sm:$0xff]  ;;  %v598_v47 = vld [vmem:[%s5721_s27 + $0x70] sm:$0xff] }
  0xfd   : > { %658 = vperm.xlu1 %5468, %v587_v28   ;;  %652 = vperm.xlu0 %5467, %v585_v29   ;;  %v968_v38 = vld [vmem:[#allocation2] sm:$0xff]  ;;  %v970_v41 = vld [vmem:[#allocation2 + $0x10] sm:$0xff]  ;;  %v601_v48 = vld [vmem:[%s5721_s27 + $0x88] sm:$0xff] }
  0xfe   : > { %v5400_v40 = vpack.c.bf16 %v969_v39, %v968_v38  ;;  %v5404_v45 = vpack.c.bf16 %v971_v42, %v970_v41  ;;  %v600_v49 = vld [vmem:[%s5721_s27 + $0x80] sm:$0xff]  ;;  %v603_v50 = vld [vmem:[%s5721_s27 + $0x98] sm:$0xff]  ;;  %v602_v51 = vld [vmem:[%s5721_s27 + $0x90] sm:$0xff]  ;;  %v5640_v39 = vmov 0.0  }
  0xff   : > { %v605_v52 = vld [vmem:[%s5721_s27 + $0xa8] sm:$0xff]  ;;  %v604_v53 = vld [vmem:[%s5721_s27 + $0xa0] sm:$0xff]  ;;  %v607_v54 = vld [vmem:[%s5721_s27 + $0xb8] sm:$0xff] }
 0x100   : > { %5401 = vmatprep.subr.bf16.mxu0 %v5400_v40  ;;  %v606_v55 = vld [vmem:[%s5721_s27 + $0xb0] sm:$0xff]  ;;  %v609_v56 = vld [vmem:[%s5721_s27 + $0xc8] sm:$0xff]  ;;  %v608_v57 = vld [vmem:[%s5721_s27 + $0xc0] sm:$0xff] }
 0x101   : > { %664 = vperm.xlu1 %5468, %v589_v30   ;;  %661 = vperm.xlu0 %5467, %v588_v31   ;;  %v611_v58 = vld [vmem:[%s5721_s27 + $0xd8] sm:$0xff]  ;;  %v610_v59 = vld [vmem:[%s5721_s27 + $0xd0] sm:$0xff]  ;;  %v613_v60 = vld [vmem:[%s5721_s27 + $0xe8] sm:$0xff] }
 0x102   : > { %5403 = vmatpush3.bf16.msra.mxu0 %v5400_v40  ;;  %v612_v61 = vld [vmem:[%s5721_s27 + $0xe0] sm:$0xff]  ;;  %v615_v62 = vld [vmem:[%s5721_s27 + $0xf8] sm:$0xff]  ;;  %v614_v63 = vld [vmem:[%s5721_s27 + $0xf0] sm:$0xff] }
 0x103   : > { %5405 = vmatprep.subr.bf16.mxu0 %v5404_v45  ;;  %v617_v0 = vld [vmem:[%s5721_s27 + $0x108] sm:$0xff]  ;;  %v616_v1 = vld [vmem:[%s5721_s27 + $0x100] sm:$0xff]  ;;  %v619_v2 = vld [vmem:[%s5721_s27 + $0x118] sm:$0xff] }
 0x104   : > { %v618_v3 = vld [vmem:[%s5721_s27 + $0x110] sm:$0xff]  ;;  %v621_v4 = vld [vmem:[%s5721_s27 + $0x128] sm:$0xff]  ;;  %v620_v5 = vld [vmem:[%s5721_s27 + $0x120] sm:$0xff] }
 0x105   : > { %670 = vperm.xlu1 %5468, %v591_v32   ;;  %667 = vperm.xlu0 %5467, %v590_v33   ;;  %v623_v6 = vld [vmem:[%s5721_s27 + $0x138] sm:$0xff]  ;;  %v622_v7 = vld [vmem:[%s5721_s27 + $0x130] sm:$0xff]  ;;  %v625_v8 = vld [vmem:[%s5721_s27 + $0x148] sm:$0xff]  ;;  %v7543_v33 = vlaneseq }
 0x106   : > { %5407 = vmatpush3.bf16.msra.mxu0 %v5404_v45  ;;  %v624_v9 = vld [vmem:[%s5721_s27 + $0x140] sm:$0xff]  ;;  %v627_v10 = vld [vmem:[%s5721_s27 + $0x158] sm:$0xff]  ;;  %v626_v11 = vld [vmem:[%s5721_s27 + $0x150] sm:$0xff] }
 0x107   : > { %v629_v12 = vld [vmem:[%s5721_s27 + $0x168] sm:$0xff]  ;;  %v628_v13 = vld [vmem:[%s5721_s27 + $0x160] sm:$0xff]  ;;  %v631_v14 = vld [vmem:[%s5721_s27 + $0x178] sm:$0xff] }
 0x108   : > { %v630_v15 = vld [vmem:[%s5721_s27 + $0x170] sm:$0xff]  ;;  %v2274_v16 = vld [vmem:[%s7537_s7] sm:$0xff]  ;;  %v2275_v17 = vld [vmem:[%s7537_s7 + $0x8] sm:$0xff] }
 0x109   : > { %676 = vperm.xlu1 %5468, %v593_v34   ;;  %673 = vperm.xlu0 %5467, %v592_v35   ;;  %v5837_v18 = vpack.c.bf16 %v2275_v17, %v2274_v16  ;;  %v633_v19 = vld [vmem:[%s5721_s27 + $0x188] sm:$0xff]  ;;  %v632_v20 = vld [vmem:[%s5721_s27 + $0x180] sm:$0xff]  ;;  %v635_v21 = vld [vmem:[%s5721_s27 + $0x198] sm:$0xff] }
 0x10a   : > { %v634_v22 = vld [vmem:[%s5721_s27 + $0x190] sm:$0xff]  ;;  %v637_v23 = vld [vmem:[%s5721_s27 + $0x1a8] sm:$0xff]  ;;  %v636_v24 = vld [vmem:[%s5721_s27 + $0x1a0] sm:$0xff] }
 0x10b   : > { %5421 = vmatprep.subr.bf16.mxu0 %v5837_v18  ;;  %v639_v25 = vld [vmem:[%s5721_s27 + $0x1b8] sm:$0xff]  ;;  %v638_v26 = vld [vmem:[%s5721_s27 + $0x1b0] sm:$0xff]  ;;  %v641_v27 = vld [vmem:[%s5721_s27 + $0x1c8] sm:$0xff] }
 0x10c   : > { %v640_v28 = vld [vmem:[%s5721_s27 + $0x1c0] sm:$0xff]  ;;  %v643_v29 = vld [vmem:[%s5721_s27 + $0x1d8] sm:$0xff]  ;;  %v642_v30 = vld [vmem:[%s5721_s27 + $0x1d0] sm:$0xff] }
 0x10d   : > { %682 = vperm.xlu1 %5468, %v595_v36   ;;  %679 = vperm.xlu0 %5467, %v594_v37   ;;  %v645_v31 = vld [vmem:[%s5721_s27 + $0x1e8] sm:$0xff]  ;;  %v644_v32 = vld [vmem:[%s5721_s27 + $0x1e0] sm:$0xff]  ;;  %v647_v34 = vld [vmem:[%s5721_s27 + $0x1f8] sm:$0xff]  ;;  %v5857_v36 = vand.u32 127, %v7543_v33 }
 0x10e   : > { %v646_v35 = vld [vmem:[%s5721_s27 + $0x1f0] sm:$0xff]  ;;  %v2277_v42 = vld [vmem:[%s7537_s7 + $0x18] sm:$0xff]  ;;  %v1615_v45 = vld [vmem:[%s7535_s5] sm:$0xff] }
 0x10f   : > { %v2276_v41 = vld [vmem:[%s7537_s7 + $0x10] sm:$0xff] }
 0x111   : > { %688 = vperm.xlu1 %5468, %v597_v43   ;;  %685 = vperm.xlu0 %5467, %v596_v44  }
 0x115   : > { %694 = vperm.xlu1 %5468, %v599_v46   ;;  %691 = vperm.xlu0 %5467, %v598_v47   ;;  %v1616_v46 = vld [vmem:[%s7535_s5 + $0x8] sm:$0xff] }
 0x119   : > { %700 = vperm.xlu1 %5468, %v601_v48   ;;  %697 = vperm.xlu0 %5467, %v600_v49   ;;  %v5424_v48 = vpack.c.bf16 %v2277_v42, %v2276_v41  ;;  %v5408_v49 = vpack.c.bf16 %v1616_v46, %v1615_v45 }
 0x11b   : > { %5409 = vmatprep.subr.bf16.mxu1 %v5408_v49 }
 0x11c   : > { %5411 = vmatpush3.bf16.msra.mxu1 %v5408_v49 }
 0x11d   : > { %706 = vperm.xlu1 %5468, %v603_v50   ;;  %703 = vperm.xlu0 %5467, %v602_v51   ;;  %v1617_v50 = vld [vmem:[%s7535_s5 + $0x10] sm:$0xff]  ;;  %v1618_v51 = vld [vmem:[%s7535_s5 + $0x18] sm:$0xff] }
 0x121   : > { %712 = vperm.xlu1 %5468, %v605_v52   ;;  %709 = vperm.xlu0 %5467, %v604_v53   ;;  %v2278_v53 = vld [vmem:[%s7537_s7 + $0x20] sm:$0xff] }
 0x125   : > { %718 = vperm.xlu1 %5468, %v607_v54   ;;  %715 = vperm.xlu0 %5467, %v606_v55   ;;  %v2279_v54 = vld [vmem:[%s7537_s7 + $0x28] sm:$0xff]  ;;  %v5412_v55 = vpack.c.bf16 %v1618_v51, %v1617_v50 }
 0x127   : > { %5413 = vmatprep.subr.bf16.mxu1 %v5412_v55 }
 0x128   : > { %5415 = vmatpush3.bf16.msra.mxu1 %v5412_v55 }
 0x129   : > { %724 = vperm.xlu1 %5468, %v609_v56   ;;  %721 = vperm.xlu0 %5467, %v608_v57   ;;  %v1619_v56 = vld [vmem:[%s7535_s5 + $0x20] sm:$0xff]  ;;  %v1620_v57 = vld [vmem:[%s7535_s5 + $0x28] sm:$0xff] }
 0x12d   : > { %730 = vperm.xlu1 %5468, %v611_v58   ;;  %727 = vperm.xlu0 %5467, %v610_v59  }
 0x131   : > { %736 = vperm.xlu1 %5468, %v613_v60   ;;  %733 = vperm.xlu0 %5467, %v612_v61   ;;  %v5428_v60 = vpack.c.bf16 %v2279_v54, %v2278_v53 }
 0x135   : > { %742 = vperm.xlu1 %5468, %v615_v62   ;;  %739 = vperm.xlu0 %5467, %v614_v63   ;;  %v2280_v63 = vld [vmem:[%s7537_s7 + $0x30] sm:$0xff] }
 0x139   : > { %748 = vperm.xlu1 %5468, %v617_v0   ;;  %745 = vperm.xlu0 %5467, %v616_v1   ;;  %v2281_v0 = vld [vmem:[%s7537_s7 + $0x38] sm:$0xff]  ;;  %v5416_v1 = vpack.c.bf16 %v1620_v57, %v1619_v56 }
 0x13b   : > { %5417 = vmatprep.subr.bf16.mxu1 %v5416_v1 }
 0x13c   : > { %5419 = vmatpush3.bf16.msra.mxu1 %v5416_v1 }
 0x13d   : > { %754 = vperm.xlu1 %5468, %v619_v2   ;;  %751 = vperm.xlu0 %5467, %v618_v3  }
 0x141   : > { %760 = vperm.xlu1 %5468, %v621_v4   ;;  %757 = vperm.xlu0 %5467, %v620_v5   ;;  %v5432_v4 = vpack.c.bf16 %v2281_v0, %v2280_v63 }
 0x145   : > { %766 = vperm.xlu1 %5468, %v623_v6   ;;  %763 = vperm.xlu0 %5467, %v622_v7  }
 0x149   : > { %772 = vperm.xlu1 %5468, %v625_v8   ;;  %769 = vperm.xlu0 %5467, %v624_v9  }
 0x14d   : > { %778 = vperm.xlu1 %5468, %v627_v10   ;;  %775 = vperm.xlu0 %5467, %v626_v11  }
 0x151   : > { %784 = vperm.xlu1 %5468, %v629_v12   ;;  %781 = vperm.xlu0 %5467, %v628_v13  }
 0x155   : > { %790 = vperm.xlu1 %5468, %v631_v14   ;;  %787 = vperm.xlu0 %5467, %v630_v15  }
 0x159   : > { %796 = vperm.xlu1 %5468, %v633_v19   ;;  %793 = vperm.xlu0 %5467, %v632_v20  }
 0x15d   : > { %802 = vperm.xlu1 %5468, %v635_v21   ;;  %799 = vperm.xlu0 %5467, %v634_v22  }
 0x161   : > { %808 = vperm.xlu1 %5468, %v637_v23   ;;  %805 = vperm.xlu0 %5467, %v636_v24  }
 0x165   : > { %814 = vperm.xlu1 %5468, %v639_v25   ;;  %811 = vperm.xlu0 %5467, %v638_v26  }
 0x169   : > { %820 = vperm.xlu1 %5468, %v641_v27   ;;  %817 = vperm.xlu0 %5467, %v640_v28  }
 0x16d   : > { %826 = vperm.xlu1 %5468, %v643_v29   ;;  %823 = vperm.xlu0 %5467, %v642_v30  }
 0x171   : > { %832 = vperm.xlu1 %5468, %v645_v31   ;;  %829 = vperm.xlu0 %5467, %v644_v32  }
 0x175   : > { %838 = vperm.xlu1 %5468, %v647_v34   ;;  %835 = vperm.xlu0 %5467, %v646_v35  }
 0x178   : > { %v656_v37 = vpop.permute.xlu1 %655  ;;  %v650_v38 = vpop.permute.xlu0 %649 }
 0x179   : > { %vm840_vm4 = vcmp.eq.s32.totalorder %v5857_v36, %v650_v38  ;;  %vm842_vm5 = vcmp.eq.s32.totalorder %v5857_v36, %v656_v37 }
 0x17a   : > { %v904_v40 = vsel %vm840_vm4, 1.0, %v5640_v39  ;;  %v906_v47 = vsel %vm842_vm5, 1.0, %v5640_v39 }
 0x17b   : > { %4968 = vmatprep.mubr.msk.f32.mxu0 %vm972_vm3, %v904_v40 }
 0x17c   : > { %v659_v43 = vpop.permute.xlu1 %658  ;;  %v653_v44 = vpop.permute.xlu0 %652 }
 0x17d   : > { %vm841_vm6 = vcmp.eq.s32.totalorder %v5857_v36, %v653_v44  ;;  %vm843_vm7 = vcmp.eq.s32.totalorder %v5857_v36, %v659_v43 }
 0x17e   : > { %v905_v52 = vsel %vm841_vm6, 1.0, %v5640_v39  ;;  %v907_v61 = vsel %vm843_vm7, 1.0, %v5640_v39 }
 0x17f   : > { %4969 = vmatmul.mubr.msk.f32.vlgmr.msra.gmra.mrb[0].mxu0 %vm972_vm3, %v905_v52 }
 0x180   : > { %v665_v58 = vpop.permute.xlu1 %664  ;;  %v662_v59 = vpop.permute.xlu0 %661  ;;  %4971 = vmatprep.mubr.msk.f32.mxu0 %vm972_vm3, %v906_v47  ;;  %5423 = vmatpush3.bf16.msra.mxu0 %v5837_v18 }
 0x181   : > { %vm844_vm8 = vcmp.eq.s32.totalorder %v5857_v36, %v662_v59  ;;  %5425 = vmatprep.subr.bf16.mxu0 %v5424_v48  ;;  %vm845_vm9 = vcmp.eq.s32.totalorder %v5857_v36, %v665_v58 }
 0x182   : > { %v908_v62 = vsel %vm844_vm8, 1.0, %v5640_v39  ;;  %v909_v5 = vsel %vm845_vm9, 1.0, %v5640_v39 }
 0x183   : > { %4972 = vmatmul.mubr.msk.f32.gmra.mrb[2].mxu0 %vm972_vm3, %v907_v61 }
 0x184   : > { %v671_v2 = vpop.permute.xlu1 %670  ;;  %v668_v3 = vpop.permute.xlu0 %667  ;;  %4974 = vmatprep.mubr.msk.f32.mxu0 %vm972_vm3, %v908_v62  ;;  %5427 = vmatpush3.bf16.msra.mxu0 %v5424_v48 }
 0x185   : > { %vm846_vm10 = vcmp.eq.s32.totalorder %v5857_v36, %v668_v3  ;;  %5429 = vmatprep.subr.bf16.mxu0 %v5428_v60  ;;  %vm847_vm11 = vcmp.eq.s32.totalorder %v5857_v36, %v671_v2 }
 0x186   : > { %v910_v6 = vsel %vm846_vm10, 1.0, %v5640_v39  ;;  %v911_v9 = vsel %vm847_vm11, 1.0, %v5640_v39 }
 0x187   : > { %4975 = vmatmul.mubr.msk.f32.gmra.mrb[4].mxu0 %vm972_vm3, %v909_v5 }
 0x188   : > { %v677_v7 = vpop.permute.xlu1 %676  ;;  %v674_v8 = vpop.permute.xlu0 %673  ;;  %4977 = vmatprep.mubr.msk.f32.mxu0 %vm972_vm3, %v910_v6  ;;  %5431 = vmatpush3.bf16.msra.mxu0 %v5428_v60 }
 0x189   : > { %vm848_vm12 = vcmp.eq.s32.totalorder %v5857_v36, %v674_v8  ;;  %5433 = vmatprep.subr.bf16.mxu0 %v5432_v4  ;;  %vm849_vm13 = vcmp.eq.s32.totalorder %v5857_v36, %v677_v7 }
 0x18a   : > { %v912_v10 = vsel %vm848_vm12, 1.0, %v5640_v39  ;;  %v913_v13 = vsel %vm849_vm13, 1.0, %v5640_v39 }
 0x18b   : > { %4978 = vmatmul.mubr.msk.f32.gmra.mrb[6].mxu0 %vm972_vm3, %v911_v9 }
 0x18c   : > { %v683_v11 = vpop.permute.xlu1 %682  ;;  %v680_v12 = vpop.permute.xlu0 %679  ;;  %4980 = vmatprep.mubr.msk.f32.mxu0 %vm972_vm3, %v912_v10  ;;  %5435 = vmatpush3.bf16.msra.mxu0 %v5432_v4 }
 0x18d   : > { %vm850_vm14 = vcmp.eq.s32.totalorder %v5857_v36, %v680_v12  ;;  %vm851_vm15 = vcmp.eq.s32.totalorder %v5857_v36, %v683_v11 }
 0x18e   : > { %v914_v14 = vsel %vm850_vm14, 1.0, %v5640_v39  ;;  %v915_v17 = vsel %vm851_vm15, 1.0, %v5640_v39 }
 0x18f   : > { %4981 = vmatmul.mubr.msk.f32.gmra.mrb[8].mxu0 %vm972_vm3, %v913_v13 }
 0x190   : > { %v689_v15 = vpop.permute.xlu1 %688  ;;  %v686_v16 = vpop.permute.xlu0 %685  ;;  %4983 = vmatprep.mubr.msk.f32.mxu0 %vm972_vm3, %v914_v14 }
 0x191   : > { %vm852_vm0 = vcmp.eq.s32.totalorder %v5857_v36, %v686_v16  ;;  %vm853_vm1 = vcmp.eq.s32.totalorder %v5857_v36, %v689_v15 }
 0x192   : > { %v916_v18 = vsel %vm852_vm0, 1.0, %v5640_v39  ;;  %v917_v21 = vsel %vm853_vm1, 1.0, %v5640_v39 }
 0x193   : > { %4984 = vmatmul.mubr.msk.f32.gmra.mrb[10].mxu0 %vm972_vm3, %v915_v17 }
 0x194   : > { %v695_v19 = vpop.permute.xlu1 %694  ;;  %v692_v20 = vpop.permute.xlu0 %691  ;;  %4986 = vmatprep.mubr.msk.f32.mxu0 %vm972_vm3, %v916_v18 }
 0x195   : > { %vm854_vm2 = vcmp.eq.s32.totalorder %v5857_v36, %v692_v20  ;;  %vm855_vm4 = vcmp.eq.s32.totalorder %v5857_v36, %v695_v19 }
 0x196   : > { %v918_v22 = vsel %vm854_vm2, 1.0, %v5640_v39  ;;  %v919_v25 = vsel %vm855_vm4, 1.0, %v5640_v39 }
 0x197   : > { %4987 = vmatmul.mubr.msk.f32.gmra.mrb[12].mxu0 %vm972_vm3, %v917_v21 }
 0x198   : > { %v701_v23 = vpop.permute.xlu1 %700  ;;  %v698_v24 = vpop.permute.xlu0 %697  ;;  %4989 = vmatprep.mubr.msk.f32.mxu0 %vm972_vm3, %v918_v22  ;;  %v1621_v22 = vld [vmem:[%s7535_s5 + $0x30] sm:$0xf] }
 0x199   : > { %vm856_vm5 = vcmp.eq.s32.totalorder %v5857_v36, %v698_v24  ;;  %vm857_vm6 = vcmp.eq.s32.totalorder %v5857_v36, %v701_v23 }
 0x19a   : > { %v920_v26 = vsel %vm856_vm5, 1.0, %v5640_v39  ;;  %v921_v29 = vsel %vm857_vm6, 1.0, %v5640_v39 }
 0x19b   : > { %4990 = vmatmul.mubr.msk.f32.gmra.mrb[14].mxu0 %vm972_vm3, %v919_v25 }
 0x19c   : > { %v707_v27 = vpop.permute.xlu1 %706  ;;  %v704_v28 = vpop.permute.xlu0 %703  ;;  %4992 = vmatprep.mubr.msk.f32.mxu0 %vm972_vm3, %v920_v26 }
 0x19d   : > { %vm858_vm7 = vcmp.eq.s32.totalorder %v5857_v36, %v704_v28  ;;  %vm859_vm8 = vcmp.eq.s32.totalorder %v5857_v36, %v707_v27 }
 0x19e   : > { %v922_v30 = vsel %vm858_vm7, 1.0, %v5640_v39  ;;  %v923_v34 = vsel %vm859_vm8, 1.0, %v5640_v39 }
 0x19f   : > { %4993 = vmatmul.mubr.msk.f32.gmra.mrb[16].mxu0 %vm972_vm3, %v921_v29 }
 0x1a0   : > { %v713_v31 = vpop.permute.xlu1 %712  ;;  %v710_v32 = vpop.permute.xlu0 %709  ;;  %4995 = vmatprep.mubr.msk.f32.mxu0 %vm972_vm3, %v922_v30 }
 0x1a1   : > { %vm860_vm9 = vcmp.eq.s32.totalorder %v5857_v36, %v710_v32  ;;  %vm861_vm10 = vcmp.eq.s32.totalorder %v5857_v36, %v713_v31 }
 0x1a2   : > { %v924_v35 = vsel %vm860_vm9, 1.0, %v5640_v39  ;;  %v925_v40 = vsel %vm861_vm10, 1.0, %v5640_v39 }
 0x1a3   : > { %4996 = vmatmul.mubr.msk.f32.gmra.mrb[18].mxu0 %vm972_vm3, %v923_v34 }
 0x1a4   : > { %v719_v37 = vpop.permute.xlu1 %718  ;;  %v716_v38 = vpop.permute.xlu0 %715  ;;  %4998 = vmatprep.mubr.msk.f32.mxu0 %vm972_vm3, %v924_v35 }
 0x1a5   : > { %vm862_vm11 = vcmp.eq.s32.totalorder %v5857_v36, %v716_v38  ;;  %vm863_vm12 = vcmp.eq.s32.totalorder %v5857_v36, %v719_v37 }
 0x1a6   : > { %v926_v41 = vsel %vm862_vm11, 1.0, %v5640_v39  ;;  %v927_v44 = vsel %vm863_vm12, 1.0, %v5640_v39 }
 0x1a7   : > { %4999 = vmatmul.mubr.msk.f32.gmra.mrb[20].mxu0 %vm972_vm3, %v925_v40 }
 0x1a8   : > { %v725_v42 = vpop.permute.xlu1 %724  ;;  %v722_v43 = vpop.permute.xlu0 %721  ;;  %5001 = vmatprep.mubr.msk.f32.mxu0 %vm972_vm3, %v926_v41 }
 0x1a9   : > { %vm864_vm13 = vcmp.eq.s32.totalorder %v5857_v36, %v722_v43  ;;  %vm865_vm14 = vcmp.eq.s32.totalorder %v5857_v36, %v725_v42 }
 0x1aa   : > { %v928_v45 = vsel %vm864_vm13, 1.0, %v5640_v39  ;;  %v929_v48 = vsel %vm865_vm14, 1.0, %v5640_v39 }
 0x1ab   : > { %5002 = vmatmul.mubr.msk.f32.gmra.mrb[22].mxu0 %vm972_vm3, %v927_v44 }
 0x1ac   : > { %v731_v46 = vpop.permute.xlu1 %730  ;;  %v728_v47 = vpop.permute.xlu0 %727  ;;  %5004 = vmatprep.mubr.msk.f32.mxu0 %vm972_vm3, %v928_v45 }
 0x1ad   : > { %vm866_vm15 = vcmp.eq.s32.totalorder %v5857_v36, %v728_v47  ;;  %vm867_vm0 = vcmp.eq.s32.totalorder %v5857_v36, %v731_v46 }
 0x1ae   : > { %v930_v49 = vsel %vm866_vm15, 1.0, %v5640_v39  ;;  %v931_v52 = vsel %vm867_vm0, 1.0, %v5640_v39 }
 0x1af   : > { %5005 = vmatmul.mubr.msk.f32.gmra.mrb[24].mxu0 %vm972_vm3, %v929_v48 }
 0x1b0   : > { %v737_v50 = vpop.permute.xlu1 %736  ;;  %v734_v51 = vpop.permute.xlu0 %733  ;;  %5007 = vmatprep.mubr.msk.f32.mxu0 %vm972_vm3, %v930_v49 }
 0x1b1   : > { %vm868_vm1 = vcmp.eq.s32.totalorder %v5857_v36, %v734_v51  ;;  %vm869_vm2 = vcmp.eq.s32.totalorder %v5857_v36, %v737_v50 }
 0x1b2   : > { %v932_v53 = vsel %vm868_vm1, 1.0, %v5640_v39  ;;  %v933_v56 = vsel %vm869_vm2, 1.0, %v5640_v39 }
 0x1b3   : > { %5008 = vmatmul.mubr.msk.f32.gmra.mrb[26].mxu0 %vm972_vm3, %v931_v52 }
 0x1b4   : > { %v743_v54 = vpop.permute.xlu1 %742  ;;  %v740_v55 = vpop.permute.xlu0 %739  ;;  %5010 = vmatprep.mubr.msk.f32.mxu0 %vm972_vm3, %v932_v53 }
 0x1b5   : > { %vm870_vm4 = vcmp.eq.s32.totalorder %v5857_v36, %v740_v55  ;;  %vm871_vm5 = vcmp.eq.s32.totalorder %v5857_v36, %v743_v54 }
 0x1b6   : > { %v934_v57 = vsel %vm870_vm4, 1.0, %v5640_v39  ;;  %v935_v60 = vsel %vm871_vm5, 1.0, %v5640_v39  ;;  %vm1821_vm4 = vcmask 1043456  }
 0x1b7   : > { %5011 = vmatmul.mubr.msk.f32.gmra.mrb[28].mxu0 %vm972_vm3, %v933_v56  ;;  %5076 = vmatprep.subr.msk.mxu1 %vm1821_vm4, %v1621_v22 }
 0x1b8   : > { %v749_v58 = vpop.permute.xlu1 %748  ;;  %v746_v59 = vpop.permute.xlu0 %745  ;;  %5013 = vmatprep.mubr.msk.f32.mxu0 %vm972_vm3, %v934_v57  ;;  %5077 = vmatpush3.msk.msra.mxu1 %vm1821_vm4, %v1621_v22  ;;  %v2235_v22 = vld [vmem:[%s5726_s30 + $0xc8] sm:$0xff] }
 0x1b9   : > { %vm872_vm6 = vcmp.eq.s32.totalorder %v5857_v36, %v746_v59  ;;  %vm873_vm7 = vcmp.eq.s32.totalorder %v5857_v36, %v749_v58 }
 0x1ba   : > { %v936_v61 = vsel %vm872_vm6, 1.0, %v5640_v39  ;;  %v937_v0 = vsel %vm873_vm7, 1.0, %v5640_v39 }
 0x1bb   : > { %5014 = vmatmul.mubr.msk.f32.gmra.mrb[30].mxu0 %vm972_vm3, %v935_v60 }
 0x1bc   : > { %v755_v62 = vpop.permute.xlu1 %754  ;;  %v752_v63 = vpop.permute.xlu0 %751  ;;  %5016 = vmatprep.mubr.msk.f32.mxu0 %vm972_vm3, %v936_v61 }
 0x1bd   : > { %vm874_vm8 = vcmp.eq.s32.totalorder %v5857_v36, %v752_v63  ;;  %vm875_vm9 = vcmp.eq.s32.totalorder %v5857_v36, %v755_v62  ;;  %v2210_v62 = vld [vmem:[%s5726_s30] sm:$0xff] }
 0x1be   : > { %v938_v1 = vsel %vm874_vm8, 1.0, %v5640_v39  ;;  %v939_v4 = vsel %vm875_vm9, 1.0, %v5640_v39 }
 0x1bf   : > { %5017 = vmatmul.mubr.msk.f32.gmra.mrb[32].mxu0 %vm972_vm3, %v937_v0  ;;  %v2211_v0 = vld [vmem:[%s5726_s30 + $0x8] sm:$0xff] }
 0x1c0   : > { %v761_v2 = vpop.permute.xlu1 %760  ;;  %v758_v3 = vpop.permute.xlu0 %757  ;;  %5019 = vmatprep.mubr.msk.f32.mxu0 %vm972_vm3, %v938_v1  ;;  %v2212_v1 = vld [vmem:[%s5726_s30 + $0x10] sm:$0xff] }
 0x1c1   : > { %vm876_vm10 = vcmp.eq.s32.totalorder %v5857_v36, %v758_v3  ;;  %vm877_vm11 = vcmp.eq.s32.totalorder %v5857_v36, %v761_v2  ;;  %v2214_v2 = vld [vmem:[%s5726_s30 + $0x20] sm:$0xff]  ;;  %v2216_v3 = vld [vmem:[%s5726_s30 + $0x30] sm:$0xff] }
 0x1c2   : > { %v940_v5 = vsel %vm876_vm10, 1.0, %v5640_v39  ;;  %v941_v8 = vsel %vm877_vm11, 1.0, %v5640_v39 }
 0x1c3   : > { %5020 = vmatmul.mubr.msk.f32.gmra.mrb[34].mxu0 %vm972_vm3, %v939_v4  ;;  %v2217_v4 = vld [vmem:[%s5726_s30 + $0x38] sm:$0xff] }
 0x1c4   : > { %v767_v6 = vpop.permute.xlu1 %766  ;;  %v764_v7 = vpop.permute.xlu0 %763  ;;  %5022 = vmatprep.mubr.msk.f32.mxu0 %vm972_vm3, %v940_v5  ;;  %v2218_v5 = vld [vmem:[%s5726_s30 + $0x40] sm:$0xff] }
 0x1c5   : > { %vm878_vm12 = vcmp.eq.s32.totalorder %v5857_v36, %v764_v7  ;;  %vm879_vm13 = vcmp.eq.s32.totalorder %v5857_v36, %v767_v6  ;;  %v2219_v6 = vld [vmem:[%s5726_s30 + $0x48] sm:$0xff]  ;;  %v2220_v7 = vld [vmem:[%s5726_s30 + $0x50] sm:$0xff] }
 0x1c6   : > { %v942_v9 = vsel %vm878_vm12, 1.0, %v5640_v39  ;;  %v943_v12 = vsel %vm879_vm13, 1.0, %v5640_v39 }
 0x1c7   : > { %5023 = vmatmul.mubr.msk.f32.gmra.mrb[36].mxu0 %vm972_vm3, %v941_v8  ;;  %v2221_v8 = vld [vmem:[%s5726_s30 + $0x58] sm:$0xff] }
 0x1c8   : > { %v773_v10 = vpop.permute.xlu1 %772  ;;  %v770_v11 = vpop.permute.xlu0 %769  ;;  %5025 = vmatprep.mubr.msk.f32.mxu0 %vm972_vm3, %v942_v9  ;;  %v2222_v9 = vld [vmem:[%s5726_s30 + $0x60] sm:$0xff] }
 0x1c9   : > { %vm880_vm14 = vcmp.eq.s32.totalorder %v5857_v36, %v770_v11  ;;  %vm881_vm15 = vcmp.eq.s32.totalorder %v5857_v36, %v773_v10  ;;  %v2223_v10 = vld [vmem:[%s5726_s30 + $0x68] sm:$0xff]  ;;  %v2224_v11 = vld [vmem:[%s5726_s30 + $0x70] sm:$0xff] }
 0x1ca   : > { %v944_v13 = vsel %vm880_vm14, 1.0, %v5640_v39  ;;  %v945_v16 = vsel %vm881_vm15, 1.0, %v5640_v39 }
 0x1cb   : > { %5026 = vmatmul.mubr.msk.f32.gmra.mrb[38].mxu0 %vm972_vm3, %v943_v12  ;;  %v2225_v12 = vld [vmem:[%s5726_s30 + $0x78] sm:$0xff] }
 0x1cc   : > { %v779_v14 = vpop.permute.xlu1 %778  ;;  %v776_v15 = vpop.permute.xlu0 %775  ;;  %5028 = vmatprep.mubr.msk.f32.mxu0 %vm972_vm3, %v944_v13  ;;  %v2226_v13 = vld [vmem:[%s5726_s30 + $0x80] sm:$0xff] }
 0x1cd   : > { %vm882_vm0 = vcmp.eq.s32.totalorder %v5857_v36, %v776_v15  ;;  %vm883_vm1 = vcmp.eq.s32.totalorder %v5857_v36, %v779_v14  ;;  %v2227_v14 = vld [vmem:[%s5726_s30 + $0x88] sm:$0xff]  ;;  %v2228_v15 = vld [vmem:[%s5726_s30 + $0x90] sm:$0xff] }
 0x1ce   : > { %v946_v17 = vsel %vm882_vm0, 1.0, %v5640_v39  ;;  %v947_v20 = vsel %vm883_vm1, 1.0, %v5640_v39 }
 0x1cf   : > { %5029 = vmatmul.mubr.msk.f32.gmra.mrb[40].mxu0 %vm972_vm3, %v945_v16  ;;  %v2229_v16 = vld [vmem:[%s5726_s30 + $0x98] sm:$0xff] }
 0x1d0   : > { %v785_v18 = vpop.permute.xlu1 %784  ;;  %v782_v19 = vpop.permute.xlu0 %781  ;;  %5031 = vmatprep.mubr.msk.f32.mxu0 %vm972_vm3, %v946_v17  ;;  %v2230_v17 = vld [vmem:[%s5726_s30 + $0xa0] sm:$0xff] }
 0x1d1   : > { %vm884_vm2 = vcmp.eq.s32.totalorder %v5857_v36, %v782_v19  ;;  %vm885_vm5 = vcmp.eq.s32.totalorder %v5857_v36, %v785_v18  ;;  %v2231_v18 = vld [vmem:[%s5726_s30 + $0xa8] sm:$0xff]  ;;  %v2232_v19 = vld [vmem:[%s5726_s30 + $0xb0] sm:$0xff] }
 0x1d2   : > { %v948_v21 = vsel %vm884_vm2, 1.0, %v5640_v39  ;;  %v949_v25 = vsel %vm885_vm5, 1.0, %v5640_v39 }
 0x1d3   : > { %5032 = vmatmul.mubr.msk.f32.gmra.mrb[42].mxu0 %vm972_vm3, %v947_v20  ;;  %v2233_v20 = vld [vmem:[%s5726_s30 + $0xb8] sm:$0xff] }
 0x1d4   : > { %v791_v23 = vpop.permute.xlu1 %790  ;;  %v788_v24 = vpop.permute.xlu0 %787  ;;  %5034 = vmatprep.mubr.msk.f32.mxu0 %vm972_vm3, %v948_v21  ;;  %v2234_v21 = vld [vmem:[%s5726_s30 + $0xc0] sm:$0xff] }
 0x1d5   : > { %vm886_vm6 = vcmp.eq.s32.totalorder %v5857_v36, %v788_v24  ;;  %vm887_vm7 = vcmp.eq.s32.totalorder %v5857_v36, %v791_v23  ;;  %v2236_v23 = vld [vmem:[%s5726_s30 + $0xd0] sm:$0xff]  ;;  %v2931_v24 = vld [vmem:[%s7539_s9] sm:$0xff] }
 0x1d6   : > { %v950_v26 = vsel %vm886_vm6, 1.0, %v5640_v39  ;;  %v951_v29 = vsel %vm887_vm7, 1.0, %v5640_v39 }
 0x1d7   : > { %5035 = vmatmul.mubr.msk.f32.gmra.mrb[44].mxu0 %vm972_vm3, %v949_v25  ;;  %v2932_v25 = vld [vmem:[%s7539_s9 + $0x8] sm:$0xff] }
 0x1d8   : > { %v797_v27 = vpop.permute.xlu1 %796  ;;  %v794_v28 = vpop.permute.xlu0 %793  ;;  %5037 = vmatprep.mubr.msk.f32.mxu0 %vm972_vm3, %v950_v26  ;;  %v2237_v26 = vld [vmem:[%s5726_s30 + $0xd8] sm:$0xff] }
 0x1d9   : > { %vm888_vm8 = vcmp.eq.s32.totalorder %v5857_v36, %v794_v28  ;;  %vm889_vm9 = vcmp.eq.s32.totalorder %v5857_v36, %v797_v27  ;;  %v5436_v27 = vpack.c.bf16 %v2932_v25, %v2931_v24  ;;  %v2238_v28 = vld [vmem:[%s5726_s30 + $0xe0] sm:$0xff] }
 0x1da   : > { %v952_v30 = vsel %vm888_vm8, 1.0, %v5640_v39  ;;  %v953_v34 = vsel %vm889_vm9, 1.0, %v5640_v39  ;;  %vm2289_vm9 = vcmask 523264  }
 0x1db   : > { %5038 = vmatmul.mubr.msk.f32.gmra.mrb[46].mxu0 %vm972_vm3, %v951_v29  ;;  %5437 = vmatprep.subr.bf16.mxu1 %v5436_v27  ;;  %v2239_v29 = vld [vmem:[%s5726_s30 + $0xe8] sm:$0xff] }
 0x1dc   : > { %v803_v31 = vpop.permute.xlu1 %802  ;;  %v800_v32 = vpop.permute.xlu0 %799  ;;  %5040 = vmatprep.mubr.msk.f32.mxu0 %vm972_vm3, %v952_v30  ;;  %v2240_v30 = vld [vmem:[%s5726_s30 + $0xf0] sm:$0xff] }
 0x1dd   : > { %vm890_vm10 = vcmp.eq.s32.totalorder %v5857_v36, %v800_v32  ;;  %vm891_vm11 = vcmp.eq.s32.totalorder %v5857_v36, %v803_v31  ;;  %v2241_v31 = vld [vmem:[%s5726_s30 + $0xf8] sm:$0xff]  ;;  %v2242_v32 = vld [vmem:[%s5726_s30 + $0x100] sm:$0xff] }
 0x1de   : > { %v954_v35 = vsel %vm890_vm10, 1.0, %v5640_v39  ;;  %v955_v40 = vsel %vm891_vm11, 1.0, %v5640_v39  ;;  %vm2934_vm10 = vcmask 195584  }
 0x1df   : > { %5041 = vmatmul.mubr.msk.f32.gmra.mrb[48].mxu0 %vm972_vm3, %v953_v34  ;;  %v2243_v34 = vld [vmem:[%s5726_s30 + $0x108] sm:$0xff] }
 0x1e0   : > { %v809_v37 = vpop.permute.xlu1 %808  ;;  %v806_v38 = vpop.permute.xlu0 %805  ;;  %5043 = vmatprep.mubr.msk.f32.mxu0 %vm972_vm3, %v954_v35  ;;  %v2244_v35 = vld [vmem:[%s5726_s30 + $0x110] sm:$0xff] }
 0x1e1   : > { %vm892_vm12 = vcmp.eq.s32.totalorder %v5857_v36, %v806_v38  ;;  %vm893_vm13 = vcmp.eq.s32.totalorder %v5857_v36, %v809_v37  ;;  %v2245_v37 = vld [vmem:[%s5726_s30 + $0x118] sm:$0xff]  ;;  %v2246_v38 = vld [vmem:[%s5726_s30 + $0x120] sm:$0xff] }
 0x1e2   : > { %v956_v41 = vsel %vm892_vm12, 1.0, %v5640_v39  ;;  %v957_v44 = vsel %vm893_vm13, 1.0, %v5640_v39  ;;  %vm3704_vm12 = vcmask 23552  }
 0x1e3   : > { %5044 = vmatmul.mubr.msk.f32.gmra.mrb[50].mxu0 %vm972_vm3, %v955_v40  ;;  %v2247_v40 = vld [vmem:[%s5726_s30 + $0x128] sm:$0xff] }
 0x1e4   : > { %v815_v42 = vpop.permute.xlu1 %814  ;;  %v812_v43 = vpop.permute.xlu0 %811  ;;  %5046 = vmatprep.mubr.msk.f32.mxu0 %vm972_vm3, %v956_v41  ;;  %v2248_v41 = vld [vmem:[%s5726_s30 + $0x130] sm:$0xff] }
 0x1e5   : > { %vm894_vm14 = vcmp.eq.s32.totalorder %v5857_v36, %v812_v43  ;;  %vm895_vm15 = vcmp.eq.s32.totalorder %v5857_v36, %v815_v42  ;;  %v2249_v42 = vld [vmem:[%s5726_s30 + $0x138] sm:$0xff]  ;;  %v2250_v43 = vld [vmem:[%s5726_s30 + $0x140] sm:$0xff] }
 0x1e6   : > { %v958_v45 = vsel %vm894_vm14, 1.0, %v5640_v39  ;;  %v959_v48 = vsel %vm895_vm15, 1.0, %v5640_v39 }
 0x1e7   : > { %5047 = vmatmul.mubr.msk.f32.gmra.mrb[52].mxu0 %vm972_vm3, %v957_v44  ;;  %v2251_v44 = vld [vmem:[%s5726_s30 + $0x148] sm:$0xff] }
 0x1e8   : > { %v821_v46 = vpop.permute.xlu1 %820  ;;  %v818_v47 = vpop.permute.xlu0 %817  ;;  %5049 = vmatprep.mubr.msk.f32.mxu0 %vm972_vm3, %v958_v45  ;;  %v2252_v45 = vld [vmem:[%s5726_s30 + $0x150] sm:$0xff] }
 0x1e9   : > { %vm896_vm0 = vcmp.eq.s32.totalorder %v5857_v36, %v818_v47  ;;  %vm897_vm1 = vcmp.eq.s32.totalorder %v5857_v36, %v821_v46  ;;  %v2253_v46 = vld [vmem:[%s5726_s30 + $0x158] sm:$0xff]  ;;  %v2254_v47 = vld [vmem:[%s5726_s30 + $0x160] sm:$0xff] }
 0x1ea   : > { %v960_v49 = vsel %vm896_vm0, 1.0, %v5640_v39  ;;  %v961_v52 = vsel %vm897_vm1, 1.0, %v5640_v39 }
 0x1eb   : > { %5050 = vmatmul.mubr.msk.f32.gmra.mrb[54].mxu0 %vm972_vm3, %v959_v48 }
 0x1ec   : > { %v827_v50 = vpop.permute.xlu1 %826  ;;  %v824_v51 = vpop.permute.xlu0 %823  ;;  %5052 = vmatprep.mubr.msk.f32.mxu0 %vm972_vm3, %v960_v49 }
 0x1ed   : > { %vm898_vm2 = vcmp.eq.s32.totalorder %v5857_v36, %v824_v51  ;;  %vm899_vm4 = vcmp.eq.s32.totalorder %v5857_v36, %v827_v50  ;;  %v2255_v50 = vld [vmem:[%s5726_s30 + $0x168] sm:$0xff]  ;;  %v2933_v51 = vld [vmem:[%s7539_s9 + $0x10] sm:$0xff] }
 0x1ee   : > { %v962_v53 = vsel %vm898_vm2, 1.0, %v5640_v39  ;;  %v963_v56 = vsel %vm899_vm4, 1.0, %v5640_v39 }
 0x1ef   : > { %5053 = vmatmul.mubr.msk.f32.gmra.mrb[56].mxu0 %vm972_vm3, %v961_v52  ;;  %v2256_v52 = vld [vmem:[%s5726_s30 + $0x170] sm:$0xff] }
 0x1f0   : > { %v833_v54 = vpop.permute.xlu1 %832  ;;  %v830_v55 = vpop.permute.xlu0 %829  ;;  %5055 = vmatprep.mubr.msk.f32.mxu0 %vm972_vm3, %v962_v53 }
 0x1f1   : > { %vm900_vm5 = vcmp.eq.s32.totalorder %v5857_v36, %v830_v55  ;;  %vm901_vm6 = vcmp.eq.s32.totalorder %v5857_v36, %v833_v54  ;;  %v2257_v55 = vld [vmem:[%s5726_s30 + $0x178] sm:$0xff] }
 0x1f2   : > { %v964_v57 = vsel %vm900_vm5, 1.0, %v5640_v39  ;;  %v965_v60 = vsel %vm901_vm6, 1.0, %v5640_v39 }
 0x1f3   : > { %5056 = vmatmul.mubr.msk.f32.gmra.mrb[58].mxu0 %vm972_vm3, %v963_v56  ;;  %v2258_v56 = vld [vmem:[%s5726_s30 + $0x180] sm:$0xff] }
 0x1f4   : > { %v839_v58 = vpop.permute.xlu1 %838  ;;  %v836_v59 = vpop.permute.xlu0 %835  ;;  %5058 = vmatprep.mubr.msk.f32.mxu0 %vm972_vm3, %v964_v57 }
 0x1f5   : > { %vm902_vm7 = vcmp.eq.s32.totalorder %v5857_v36, %v836_v59  ;;  %vm903_vm8 = vcmp.eq.s32.totalorder %v5857_v36, %v839_v58  ;;  %v2213_v36 = vld [vmem:[%s5726_s30 + $0x18] sm:$0xff]  ;;  %v2259_v59 = vld [vmem:[%s5726_s30 + $0x188] sm:$0xff] }
 0x1f6   : > { %v966_v61 = vsel %vm902_vm7, 1.0, %v5640_v39  ;;  %v967_v63 = vsel %vm903_vm8, 1.0, %v5640_v39  ;;  %v2215_v39 = vld [vmem:[%s5726_s30 + $0x28] sm:$0xff] }
 0x1f7   : > { %5059 = vmatmul.mubr.msk.f32.gmra.mrb[60].mxu0 %vm972_vm3, %v965_v60  ;;  %v2260_v60 = vld [vmem:[%s5726_s30 + $0x190] sm:$0xff] }
 0x1f8   : > { %5061 = vmatprep.mubr.msk.f32.mxu0 %vm972_vm3, %v966_v61 }
 0x1fb   : > { %5062 = vmatmul.mubr.msk.f32.gmra.mrb[62].mxu0 %vm972_vm3, %v967_v63  ;;  %vm1550_vm3 = vcmask 424960   ;;  %v2261_v63 = vld [vmem:[%s5726_s30 + $0x198] sm:$0xff] }
 0x1fc   : > { %5190 = vmatprep.mubr.msk.f32.mxu0 %vm2289_vm9, %v2210_v62 }
 0x1ff   : > { %5191 = vmatmul.mubr.msk.f32.vlgmr.msra.gmra.mrb[64].mxu0 %vm2289_vm9, %v2211_v0  ;;  %v2262_v0 = vld [vmem:[%s5726_s30 + $0x1a0] sm:$0xff] }
 0x200   : > { %5193 = vmatprep.mubr.msk.f32.mxu0 %vm2289_vm9, %v2212_v1 }
 0x203   : > { %5194 = vmatmul.mubr.msk.f32.gmra.mrb[66].mxu0 %vm2289_vm9, %v2213_v36 }
 0x204   : > { %5196 = vmatprep.mubr.msk.f32.mxu0 %vm2289_vm9, %v2214_v2  ;;  %v2263_v2 = vld [vmem:[%s5726_s30 + $0x1a8] sm:$0xff] }
 0x207   : > { %5197 = vmatmul.mubr.msk.f32.gmra.mrb[68].mxu0 %vm2289_vm9, %v2215_v39  ;;  %v2264_v39 = vld [vmem:[%s5726_s30 + $0x1b0] sm:$0xff] }
 0x208   : > { %5199 = vmatprep.mubr.msk.f32.mxu0 %vm2289_vm9, %v2216_v3 }
 0x20b   : > { %5200 = vmatmul.mubr.msk.f32.gmra.mrb[70].mxu0 %vm2289_vm9, %v2217_v4 }
 0x20c   : > { %5202 = vmatprep.mubr.msk.f32.mxu0 %vm2289_vm9, %v2218_v5  ;;  %v2265_v5 = vld [vmem:[%s5726_s30 + $0x1b8] sm:$0xff] }
 0x20f   : > { %5203 = vmatmul.mubr.msk.f32.gmra.mrb[72].mxu0 %vm2289_vm9, %v2219_v6  ;;  %v2266_v6 = vld [vmem:[%s5726_s30 + $0x1c0] sm:$0xff] }
 0x210   : > { %5205 = vmatprep.mubr.msk.f32.mxu0 %vm2289_vm9, %v2220_v7 }
 0x213   : > { %5206 = vmatmul.mubr.msk.f32.gmra.mrb[74].mxu0 %vm2289_vm9, %v2221_v8 }
 0x214   : > { %5208 = vmatprep.mubr.msk.f32.mxu0 %vm2289_vm9, %v2222_v9  ;;  %v2267_v9 = vld [vmem:[%s5726_s30 + $0x1c8] sm:$0xff] }
 0x217   : > { %5209 = vmatmul.mubr.msk.f32.gmra.mrb[76].mxu0 %vm2289_vm9, %v2223_v10  ;;  %v2268_v10 = vld [vmem:[%s5726_s30 + $0x1d0] sm:$0xff] }
 0x218   : > { %5211 = vmatprep.mubr.msk.f32.mxu0 %vm2289_vm9, %v2224_v11 }
 0x21b   : > { %5212 = vmatmul.mubr.msk.f32.gmra.mrb[78].mxu0 %vm2289_vm9, %v2225_v12 }
 0x21c   : > { %5214 = vmatprep.mubr.msk.f32.mxu0 %vm2289_vm9, %v2226_v13  ;;  %v2269_v13 = vld [vmem:[%s5726_s30 + $0x1d8] sm:$0xff] }
 0x21f   : > { %5215 = vmatmul.mubr.msk.f32.gmra.mrb[80].mxu0 %vm2289_vm9, %v2227_v14  ;;  %v2270_v14 = vld [vmem:[%s5726_s30 + $0x1e0] sm:$0xff] }
 0x220   : > { %5217 = vmatprep.mubr.msk.f32.mxu0 %vm2289_vm9, %v2228_v15 }
 0x223   : > { %5218 = vmatmul.mubr.msk.f32.gmra.mrb[82].mxu0 %vm2289_vm9, %v2229_v16 }
 0x224   : > { %5220 = vmatprep.mubr.msk.f32.mxu0 %vm2289_vm9, %v2230_v17  ;;  %v2271_v17 = vld [vmem:[%s5726_s30 + $0x1e8] sm:$0xff] }
 0x227   : > { %5221 = vmatmul.mubr.msk.f32.gmra.mrb[84].mxu0 %vm2289_vm9, %v2231_v18  ;;  %v2272_v18 = vld [vmem:[%s5726_s30 + $0x1f0] sm:$0xff] }
 0x228   : > { %5223 = vmatprep.mubr.msk.f32.mxu0 %vm2289_vm9, %v2232_v19 }
 0x22b   : > { %5224 = vmatmul.mubr.msk.f32.gmra.mrb[86].mxu0 %vm2289_vm9, %v2233_v20 }
 0x22c   : > { %5226 = vmatprep.mubr.msk.f32.mxu0 %vm2289_vm9, %v2234_v21  ;;  %v2273_v21 = vld [vmem:[%s5726_s30 + $0x1f8] sm:$0xff] }
 0x22f   : > { %5227 = vmatmul.mubr.msk.f32.gmra.mrb[88].mxu0 %vm2289_vm9, %v2235_v22 }
 0x230   : > { %5229 = vmatprep.mubr.msk.f32.mxu0 %vm2289_vm9, %v2236_v23 }
 0x233   : > { %5230 = vmatmul.mubr.msk.f32.gmra.mrb[90].mxu0 %vm2289_vm9, %v2237_v26 }
 0x234   : > { %5232 = vmatprep.mubr.msk.f32.mxu0 %vm2289_vm9, %v2238_v28 }
 0x237   : > { %5233 = vmatmul.mubr.msk.f32.gmra.mrb[92].mxu0 %vm2289_vm9, %v2239_v29 }
 0x238   : > { %5235 = vmatprep.mubr.msk.f32.mxu0 %vm2289_vm9, %v2240_v30 }
 0x23b   : > { %5236 = vmatmul.mubr.msk.f32.gmra.mrb[94].mxu0 %vm2289_vm9, %v2241_v31 }
 0x23c   : > { %5238 = vmatprep.mubr.msk.f32.mxu0 %vm2289_vm9, %v2242_v32 }
 0x23f   : > { %5239 = vmatmul.mubr.msk.f32.gmra.mrb[96].mxu0 %vm2289_vm9, %v2243_v34 }
 0x240   : > { %5241 = vmatprep.mubr.msk.f32.mxu0 %vm2289_vm9, %v2244_v35 }
 0x243   : > { %5242 = vmatmul.mubr.msk.f32.gmra.mrb[98].mxu0 %vm2289_vm9, %v2245_v37 }
 0x244   : > { %5244 = vmatprep.mubr.msk.f32.mxu0 %vm2289_vm9, %v2246_v38 }
 0x247   : > { %5245 = vmatmul.mubr.msk.f32.gmra.mrb[100].mxu0 %vm2289_vm9, %v2247_v40 }
 0x248   : > { %5247 = vmatprep.mubr.msk.f32.mxu0 %vm2289_vm9, %v2248_v41 }
 0x24b   : > { %5248 = vmatmul.mubr.msk.f32.gmra.mrb[102].mxu0 %vm2289_vm9, %v2249_v42 }
 0x24c   : > { %5250 = vmatprep.mubr.msk.f32.mxu0 %vm2289_vm9, %v2250_v43 }
 0x24f   : > { %5251 = vmatmul.mubr.msk.f32.gmra.mrb[104].mxu0 %vm2289_vm9, %v2251_v44 }
 0x250   : > { %5253 = vmatprep.mubr.msk.f32.mxu0 %vm2289_vm9, %v2252_v45 }
 0x252   : > { %v4970_v48 = vpop.f32.mrb[0].mxu0 }
 0x253   : > { %1552 = vst.msk [vmem:[%s5731_s15 + $0x8] sm:$0xff] %vm1550_vm3, %v4970_v48  ;;  %v1231_v49 = vpop.f32.mrb[1].mxu0  ;;  %5254 = vmatmul.mubr.msk.f32.gmra.mrb[106].mxu0 %vm2289_vm9, %v2253_v46 }
 0x254   : > { %1551 = vst.msk [vmem:[%s5731_s15] sm:$0xff] %vm1550_vm3, %v1231_v49  ;;  %5078 = vmatprep.mubr.msk.f32.mxu1 %vm1550_vm3, %v1231_v49  ;;  %5256 = vmatprep.mubr.msk.f32.mxu0 %vm2289_vm9, %v2254_v47 }
 0x255   : > { %5079 = vmatmul.mubr.msk.f32.vlgmr.msra.gmra.mrb[0].mxu1 %vm1550_vm3, %v4970_v48 }
 0x256   : > { %v4973_v53 = vpop.f32.mrb[2].mxu0  ;;  %5439 = vmatpush3.bf16.msra.mxu1 %v5436_v27 }
 0x257   : > { %1554 = vst.msk [vmem:[%s5731_s15 + $0x18] sm:$0xff] %vm1550_vm3, %v4973_v53  ;;  %v1241_v54 = vpop.f32.mrb[3].mxu0  ;;  %5257 = vmatmul.mubr.msk.f32.gmra.mrb[108].mxu0 %vm2289_vm9, %v2255_v50  ;;  %5290 = vmatprep.subr.mxu1 %v2933_v51 }
 0x258   : > { %1553 = vst.msk [vmem:[%s5731_s15 + $0x10] sm:$0xff] %vm1550_vm3, %v1241_v54  ;;  %5081 = vmatprep.mubr.msk.f32.mxu1 %vm1550_vm3, %v1241_v54  ;;  %5259 = vmatprep.mubr.msk.f32.mxu0 %vm2289_vm9, %v2256_v52 }
 0x259   : > { %5082 = vmatmul.mubr.msk.f32.gmra.mrb[2].mxu1 %vm1550_vm3, %v4973_v53 }
 0x25a   : > { %v4976_v57 = vpop.f32.mrb[4].mxu0  ;;  %5291 = vmatpush3.msra.mxu1 %v2933_v51 }
 0x25b   : > { %1556 = vst.msk [vmem:[%s5731_s15 + $0x28] sm:$0xff] %vm1550_vm3, %v4976_v57  ;;  %v1251_v58 = vpop.f32.mrb[5].mxu0  ;;  %5260 = vmatmul.mubr.msk.f32.gmra.mrb[110].mxu0 %vm2289_vm9, %v2257_v55 }
 0x25c   : > { %1555 = vst.msk [vmem:[%s5731_s15 + $0x20] sm:$0xff] %vm1550_vm3, %v1251_v58  ;;  %5084 = vmatprep.mubr.msk.f32.mxu1 %vm1550_vm3, %v1251_v58  ;;  %5262 = vmatprep.mubr.msk.f32.mxu0 %vm2289_vm9, %v2258_v56 }
 0x25d   : > { %5085 = vmatmul.mubr.msk.f32.gmra.mrb[4].mxu1 %vm1550_vm3, %v4976_v57 }
 0x25e   : > { %v4979_v61 = vpop.f32.mrb[6].mxu0 }
 0x25f   : > { %1558 = vst.msk [vmem:[%s5731_s15 + $0x38] sm:$0xff] %vm1550_vm3, %v4979_v61  ;;  %v1261_v62 = vpop.f32.mrb[7].mxu0  ;;  %5263 = vmatmul.mubr.msk.f32.gmra.mrb[112].mxu0 %vm2289_vm9, %v2259_v59 }
 0x260   : > { %1557 = vst.msk [vmem:[%s5731_s15 + $0x30] sm:$0xff] %vm1550_vm3, %v1261_v62  ;;  %5087 = vmatprep.mubr.msk.f32.mxu1 %vm1550_vm3, %v1261_v62  ;;  %5265 = vmatprep.mubr.msk.f32.mxu0 %vm2289_vm9, %v2260_v60 }
 0x261   : > { %5088 = vmatmul.mubr.msk.f32.gmra.mrb[6].mxu1 %vm1550_vm3, %v4979_v61 }
 0x262   : > { %v4982_v1 = vpop.f32.mrb[8].mxu0 }
 0x263   : > { %1560 = vst.msk [vmem:[%s5731_s15 + $0x48] sm:$0xff] %vm1550_vm3, %v4982_v1  ;;  %v1271_v36 = vpop.f32.mrb[9].mxu0  ;;  %5266 = vmatmul.mubr.msk.f32.gmra.mrb[114].mxu0 %vm2289_vm9, %v2261_v63 }
 0x264   : > { %1559 = vst.msk [vmem:[%s5731_s15 + $0x40] sm:$0xff] %vm1550_vm3, %v1271_v36  ;;  %5090 = vmatprep.mubr.msk.f32.mxu1 %vm1550_vm3, %v1271_v36  ;;  %5268 = vmatprep.mubr.msk.f32.mxu0 %vm2289_vm9, %v2262_v0 }
 0x265   : > { %5091 = vmatmul.mubr.msk.f32.gmra.mrb[8].mxu1 %vm1550_vm3, %v4982_v1 }
 0x266   : > { %v4985_v3 = vpop.f32.mrb[10].mxu0 }
 0x267   : > { %1562 = vst.msk [vmem:[%s5731_s15 + $0x58] sm:$0xff] %vm1550_vm3, %v4985_v3  ;;  %v1281_v4 = vpop.f32.mrb[11].mxu0  ;;  %5269 = vmatmul.mubr.msk.f32.gmra.mrb[116].mxu0 %vm2289_vm9, %v2263_v2 }
 0x268   : > { %1561 = vst.msk [vmem:[%s5731_s15 + $0x50] sm:$0xff] %vm1550_vm3, %v1281_v4  ;;  %5093 = vmatprep.mubr.msk.f32.mxu1 %vm1550_vm3, %v1281_v4  ;;  %5271 = vmatprep.mubr.msk.f32.mxu0 %vm2289_vm9, %v2264_v39 }
 0x269   : > { %5094 = vmatmul.mubr.msk.f32.gmra.mrb[10].mxu1 %vm1550_vm3, %v4985_v3 }
 0x26a   : > { %v4988_v7 = vpop.f32.mrb[12].mxu0 }
 0x26b   : > { %1564 = vst.msk [vmem:[%s5731_s15 + $0x68] sm:$0xff] %vm1550_vm3, %v4988_v7  ;;  %v1291_v8 = vpop.f32.mrb[13].mxu0  ;;  %5272 = vmatmul.mubr.msk.f32.gmra.mrb[118].mxu0 %vm2289_vm9, %v2265_v5 }
 0x26c   : > { %1563 = vst.msk [vmem:[%s5731_s15 + $0x60] sm:$0xff] %vm1550_vm3, %v1291_v8  ;;  %5096 = vmatprep.mubr.msk.f32.mxu1 %vm1550_vm3, %v1291_v8  ;;  %5274 = vmatprep.mubr.msk.f32.mxu0 %vm2289_vm9, %v2266_v6 }
 0x26d   : > { %5097 = vmatmul.mubr.msk.f32.gmra.mrb[12].mxu1 %vm1550_vm3, %v4988_v7 }
 0x26e   : > { %v4991_v11 = vpop.f32.mrb[14].mxu0 }
 0x26f   : > { %1566 = vst.msk [vmem:[%s5731_s15 + $0x78] sm:$0xff] %vm1550_vm3, %v4991_v11  ;;  %v1301_v12 = vpop.f32.mrb[15].mxu0  ;;  %5275 = vmatmul.mubr.msk.f32.gmra.mrb[120].mxu0 %vm2289_vm9, %v2267_v9 }
 0x270   : > { %1565 = vst.msk [vmem:[%s5731_s15 + $0x70] sm:$0xff] %vm1550_vm3, %v1301_v12  ;;  %5099 = vmatprep.mubr.msk.f32.mxu1 %vm1550_vm3, %v1301_v12  ;;  %5277 = vmatprep.mubr.msk.f32.mxu0 %vm2289_vm9, %v2268_v10 }
 0x271   : > { %5100 = vmatmul.mubr.msk.f32.gmra.mrb[14].mxu1 %vm1550_vm3, %v4991_v11 }
 0x272   : > { %v4994_v15 = vpop.f32.mrb[16].mxu0 }
 0x273   : > { %1568 = vst.msk [vmem:[%s5731_s15 + $0x88] sm:$0xff] %vm1550_vm3, %v4994_v15  ;;  %v1311_v16 = vpop.f32.mrb[17].mxu0  ;;  %5278 = vmatmul.mubr.msk.f32.gmra.mrb[122].mxu0 %vm2289_vm9, %v2269_v13 }
 0x274   : > { %1567 = vst.msk [vmem:[%s5731_s15 + $0x80] sm:$0xff] %vm1550_vm3, %v1311_v16  ;;  %5102 = vmatprep.mubr.msk.f32.mxu1 %vm1550_vm3, %v1311_v16  ;;  %5280 = vmatprep.mubr.msk.f32.mxu0 %vm2289_vm9, %v2270_v14 }
 0x275   : > { %5103 = vmatmul.mubr.msk.f32.gmra.mrb[16].mxu1 %vm1550_vm3, %v4994_v15 }
 0x276   : > { %v4997_v19 = vpop.f32.mrb[18].mxu0 }
 0x277   : > { %1570 = vst.msk [vmem:[%s5731_s15 + $0x98] sm:$0xff] %vm1550_vm3, %v4997_v19  ;;  %v1321_v20 = vpop.f32.mrb[19].mxu0  ;;  %5281 = vmatmul.mubr.msk.f32.gmra.mrb[124].mxu0 %vm2289_vm9, %v2271_v17 }
 0x278   : > { %1569 = vst.msk [vmem:[%s5731_s15 + $0x90] sm:$0xff] %vm1550_vm3, %v1321_v20  ;;  %5105 = vmatprep.mubr.msk.f32.mxu1 %vm1550_vm3, %v1321_v20  ;;  %5283 = vmatprep.mubr.msk.f32.mxu0 %vm2289_vm9, %v2272_v18 }
 0x279   : > { %5106 = vmatmul.mubr.msk.f32.gmra.mrb[18].mxu1 %vm1550_vm3, %v4997_v19 }
 0x27a   : > { %v5000_v22 = vpop.f32.mrb[20].mxu0 }
 0x27b   : > { %1572 = vst.msk [vmem:[%s5731_s15 + $0xa8] sm:$0xff] %vm1550_vm3, %v5000_v22  ;;  %v1331_v23 = vpop.f32.mrb[21].mxu0  ;;  %5284 = vmatmul.mubr.msk.f32.gmra.mrb[126].mxu0 %vm2289_vm9, %v2273_v21 }
 0x27c   : > { %1571 = vst.msk [vmem:[%s5731_s15 + $0xa0] sm:$0xff] %vm1550_vm3, %v1331_v23  ;;  %5108 = vmatprep.mubr.msk.f32.mxu1 %vm1550_vm3, %v1331_v23 }
 0x27d   : > { %5109 = vmatmul.mubr.msk.f32.gmra.mrb[20].mxu1 %vm1550_vm3, %v5000_v22 }
 0x27e   : > { %v5003_v24 = vpop.f32.mrb[22].mxu0 }
 0x27f   : > { %1574 = vst.msk [vmem:[%s5731_s15 + $0xb8] sm:$0xff] %vm1550_vm3, %v5003_v24  ;;  %v1341_v25 = vpop.f32.mrb[23].mxu0 }
 0x280   : > { %1573 = vst.msk [vmem:[%s5731_s15 + $0xb0] sm:$0xff] %vm1550_vm3, %v1341_v25  ;;  %5111 = vmatprep.mubr.msk.f32.mxu1 %vm1550_vm3, %v1341_v25 }
 0x281   : > { %5112 = vmatmul.mubr.msk.f32.gmra.mrb[22].mxu1 %vm1550_vm3, %v5003_v24 }
 0x282   : > { %v5006_v26 = vpop.f32.mrb[24].mxu0 }
 0x283   : > { %1576 = vst.msk [vmem:[%s5731_s15 + $0xc8] sm:$0xff] %vm1550_vm3, %v5006_v26  ;;  %v1351_v27 = vpop.f32.mrb[25].mxu0 }
 0x284   : > { %1575 = vst.msk [vmem:[%s5731_s15 + $0xc0] sm:$0xff] %vm1550_vm3, %v1351_v27  ;;  %5114 = vmatprep.mubr.msk.f32.mxu1 %vm1550_vm3, %v1351_v27 }
 0x285   : > { %5115 = vmatmul.mubr.msk.f32.gmra.mrb[24].mxu1 %vm1550_vm3, %v5006_v26 }
 0x286   : > { %v5009_v28 = vpop.f32.mrb[26].mxu0 }
 0x287   : > { %1578 = vst.msk [vmem:[%s5731_s15 + $0xd8] sm:$0xff] %vm1550_vm3, %v5009_v28  ;;  %v1361_v29 = vpop.f32.mrb[27].mxu0 }
 0x288   : > { %1577 = vst.msk [vmem:[%s5731_s15 + $0xd0] sm:$0xff] %vm1550_vm3, %v1361_v29  ;;  %5117 = vmatprep.mubr.msk.f32.mxu1 %vm1550_vm3, %v1361_v29 }
 0x289   : > { %5118 = vmatmul.mubr.msk.f32.gmra.mrb[26].mxu1 %vm1550_vm3, %v5009_v28 }
 0x28a   : > { %v5012_v30 = vpop.f32.mrb[28].mxu0 }
 0x28b   : > { %1580 = vst.msk [vmem:[%s5731_s15 + $0xe8] sm:$0xff] %vm1550_vm3, %v5012_v30  ;;  %v1371_v31 = vpop.f32.mrb[29].mxu0 }
 0x28c   : > { %1579 = vst.msk [vmem:[%s5731_s15 + $0xe0] sm:$0xff] %vm1550_vm3, %v1371_v31  ;;  %5120 = vmatprep.mubr.msk.f32.mxu1 %vm1550_vm3, %v1371_v31 }
 0x28d   : > { %5121 = vmatmul.mubr.msk.f32.gmra.mrb[28].mxu1 %vm1550_vm3, %v5012_v30 }
 0x28e   : > { %v5015_v32 = vpop.f32.mrb[30].mxu0 }
 0x28f   : > { %1582 = vst.msk [vmem:[%s5731_s15 + $0xf8] sm:$0xff] %vm1550_vm3, %v5015_v32  ;;  %v1381_v34 = vpop.f32.mrb[31].mxu0 }
 0x290   : > { %1581 = vst.msk [vmem:[%s5731_s15 + $0xf0] sm:$0xff] %vm1550_vm3, %v1381_v34  ;;  %5123 = vmatprep.mubr.msk.f32.mxu1 %vm1550_vm3, %v1381_v34 }
 0x291   : > { %5124 = vmatmul.mubr.msk.f32.gmra.mrb[30].mxu1 %vm1550_vm3, %v5015_v32 }
 0x292   : > { %v5018_v35 = vpop.f32.mrb[32].mxu0 }
 0x293   : > { %1584 = vst.msk [vmem:[%s5731_s15 + $0x108] sm:$0xff] %vm1550_vm3, %v5018_v35  ;;  %v1391_v37 = vpop.f32.mrb[33].mxu0 }
 0x294   : > { %1583 = vst.msk [vmem:[%s5731_s15 + $0x100] sm:$0xff] %vm1550_vm3, %v1391_v37  ;;  %5126 = vmatprep.mubr.msk.f32.mxu1 %vm1550_vm3, %v1391_v37 }
 0x295   : > { %5127 = vmatmul.mubr.msk.f32.gmra.mrb[32].mxu1 %vm1550_vm3, %v5018_v35 }
 0x296   : > { %v5021_v38 = vpop.f32.mrb[34].mxu0 }
 0x297   : > { %1586 = vst.msk [vmem:[%s5731_s15 + $0x118] sm:$0xff] %vm1550_vm3, %v5021_v38  ;;  %v1401_v40 = vpop.f32.mrb[35].mxu0 }
 0x298   : > { %1585 = vst.msk [vmem:[%s5731_s15 + $0x110] sm:$0xff] %vm1550_vm3, %v1401_v40  ;;  %5129 = vmatprep.mubr.msk.f32.mxu1 %vm1550_vm3, %v1401_v40 }
 0x299   : > { %5130 = vmatmul.mubr.msk.f32.gmra.mrb[34].mxu1 %vm1550_vm3, %v5021_v38 }
 0x29a   : > { %v5024_v41 = vpop.f32.mrb[36].mxu0 }
 0x29b   : > { %1588 = vst.msk [vmem:[%s5731_s15 + $0x128] sm:$0xff] %vm1550_vm3, %v5024_v41  ;;  %v1411_v42 = vpop.f32.mrb[37].mxu0 }
 0x29c   : > { %1587 = vst.msk [vmem:[%s5731_s15 + $0x120] sm:$0xff] %vm1550_vm3, %v1411_v42  ;;  %5132 = vmatprep.mubr.msk.f32.mxu1 %vm1550_vm3, %v1411_v42 }
 0x29d   : > { %5133 = vmatmul.mubr.msk.f32.gmra.mrb[36].mxu1 %vm1550_vm3, %v5024_v41 }
 0x29e   : > { %v5027_v43 = vpop.f32.mrb[38].mxu0 }
 0x29f   : > { %1590 = vst.msk [vmem:[%s5731_s15 + $0x138] sm:$0xff] %vm1550_vm3, %v5027_v43  ;;  %v1421_v44 = vpop.f32.mrb[39].mxu0 }
 0x2a0   : > { %1589 = vst.msk [vmem:[%s5731_s15 + $0x130] sm:$0xff] %vm1550_vm3, %v1421_v44  ;;  %5135 = vmatprep.mubr.msk.f32.mxu1 %vm1550_vm3, %v1421_v44 }
 0x2a1   : > { %5136 = vmatmul.mubr.msk.f32.gmra.mrb[38].mxu1 %vm1550_vm3, %v5027_v43 }
 0x2a2   : > { %v5030_v45 = vpop.f32.mrb[40].mxu0 }
 0x2a3   : > { %1592 = vst.msk [vmem:[%s5731_s15 + $0x148] sm:$0xff] %vm1550_vm3, %v5030_v45  ;;  %v1431_v46 = vpop.f32.mrb[41].mxu0 }
 0x2a4   : > { %1591 = vst.msk [vmem:[%s5731_s15 + $0x140] sm:$0xff] %vm1550_vm3, %v1431_v46  ;;  %5138 = vmatprep.mubr.msk.f32.mxu1 %vm1550_vm3, %v1431_v46 }
 0x2a5   : > { %5139 = vmatmul.mubr.msk.f32.gmra.mrb[40].mxu1 %vm1550_vm3, %v5030_v45 }
 0x2a6   : > { %v5033_v47 = vpop.f32.mrb[42].mxu0 }
 0x2a7   : > { %1594 = vst.msk [vmem:[%s5731_s15 + $0x158] sm:$0xff] %vm1550_vm3, %v5033_v47  ;;  %v1441_v48 = vpop.f32.mrb[43].mxu0 }
 0x2a8   : > { %1593 = vst.msk [vmem:[%s5731_s15 + $0x150] sm:$0xff] %vm1550_vm3, %v1441_v48  ;;  %5141 = vmatprep.mubr.msk.f32.mxu1 %vm1550_vm3, %v1441_v48  ;;  %v6497_v48 = vld [vmem:[%s7538_s8] ss:$0 sm:$0xff] }
 0x2a9   : > { %5142 = vmatmul.mubr.msk.f32.gmra.mrb[42].mxu1 %vm1550_vm3, %v5033_v47 }
 0x2aa   : > { %v5036_v49 = vpop.f32.mrb[44].mxu0 }
 0x2ab   : > { %1596 = vst.msk [vmem:[%s5731_s15 + $0x168] sm:$0xff] %vm1550_vm3, %v5036_v49  ;;  %v1451_v50 = vpop.f32.mrb[45].mxu0 }
 0x2ac   : > { %1595 = vst.msk [vmem:[%s5731_s15 + $0x160] sm:$0xff] %vm1550_vm3, %v1451_v50  ;;  %5144 = vmatprep.mubr.msk.f32.mxu1 %vm1550_vm3, %v1451_v50 }
 0x2ad   : > { %5145 = vmatmul.mubr.msk.f32.gmra.mrb[44].mxu1 %vm1550_vm3, %v5036_v49  ;;  %v6502_v49 = vld [vmem:[%s7536_s6] ss:$0 sm:$0xff] }
 0x2ae   : > { %v5039_v51 = vpop.f32.mrb[46].mxu0 }
 0x2af   : > { %1598 = vst.msk [vmem:[%s5731_s15 + $0x178] sm:$0xff] %vm1550_vm3, %v5039_v51  ;;  %v1461_v52 = vpop.f32.mrb[47].mxu0 }
 0x2b0   : > { %1597 = vst.msk [vmem:[%s5731_s15 + $0x170] sm:$0xff] %vm1550_vm3, %v1461_v52  ;;  %5147 = vmatprep.mubr.msk.f32.mxu1 %vm1550_vm3, %v1461_v52 }
 0x2b1   : > { %5148 = vmatmul.mubr.msk.f32.gmra.mrb[46].mxu1 %vm1550_vm3, %v5039_v51 }
 0x2b2   : > { %v5042_v53 = vpop.f32.mrb[48].mxu0 }
 0x2b3   : > { %1600 = vst.msk [vmem:[%s5731_s15 + $0x188] sm:$0xff] %vm1550_vm3, %v5042_v53  ;;  %v1471_v54 = vpop.f32.mrb[49].mxu0 }
 0x2b4   : > { %1599 = vst.msk [vmem:[%s5731_s15 + $0x180] sm:$0xff] %vm1550_vm3, %v1471_v54  ;;  %5150 = vmatprep.mubr.msk.f32.mxu1 %vm1550_vm3, %v1471_v54 }
 0x2b5   : > { %5151 = vmatmul.mubr.msk.f32.gmra.mrb[48].mxu1 %vm1550_vm3, %v5042_v53 }
 0x2b6   : > { %v5045_v55 = vpop.f32.mrb[50].mxu0 }
 0x2b7   : > { %1602 = vst.msk [vmem:[%s5731_s15 + $0x198] sm:$0xff] %vm1550_vm3, %v5045_v55  ;;  %v1481_v56 = vpop.f32.mrb[51].mxu0 }
 0x2b8   : > { %1601 = vst.msk [vmem:[%s5731_s15 + $0x190] sm:$0xff] %vm1550_vm3, %v1481_v56  ;;  %5153 = vmatprep.mubr.msk.f32.mxu1 %vm1550_vm3, %v1481_v56 }
 0x2b9   : > { %5154 = vmatmul.mubr.msk.f32.gmra.mrb[50].mxu1 %vm1550_vm3, %v5045_v55 }
 0x2ba   : > { %v5048_v57 = vpop.f32.mrb[52].mxu0 }
 0x2bb   : > { %1604 = vst.msk [vmem:[%s5731_s15 + $0x1a8] sm:$0xff] %vm1550_vm3, %v5048_v57  ;;  %v1491_v58 = vpop.f32.mrb[53].mxu0 }
 0x2bc   : > { %1603 = vst.msk [vmem:[%s5731_s15 + $0x1a0] sm:$0xff] %vm1550_vm3, %v1491_v58  ;;  %5156 = vmatprep.mubr.msk.f32.mxu1 %vm1550_vm3, %v1491_v58 }
 0x2bd   : > { %5157 = vmatmul.mubr.msk.f32.gmra.mrb[52].mxu1 %vm1550_vm3, %v5048_v57 }
 0x2be   : > { %v5051_v59 = vpop.f32.mrb[54].mxu0 }
 0x2bf   : > { %1606 = vst.msk [vmem:[%s5731_s15 + $0x1b8] sm:$0xff] %vm1550_vm3, %v5051_v59  ;;  %v1501_v60 = vpop.f32.mrb[55].mxu0 }
 0x2c0   : > { %1605 = vst.msk [vmem:[%s5731_s15 + $0x1b0] sm:$0xff] %vm1550_vm3, %v1501_v60  ;;  %5159 = vmatprep.mubr.msk.f32.mxu1 %vm1550_vm3, %v1501_v60 }
 0x2c1   : > { %5160 = vmatmul.mubr.msk.f32.gmra.mrb[54].mxu1 %vm1550_vm3, %v5051_v59 }
 0x2c2   : > { %v5054_v61 = vpop.f32.mrb[56].mxu0 }
 0x2c3   : > { %1608 = vst.msk [vmem:[%s5731_s15 + $0x1c8] sm:$0xff] %vm1550_vm3, %v5054_v61  ;;  %v1511_v62 = vpop.f32.mrb[57].mxu0 }
 0x2c4   : > { %1607 = vst.msk [vmem:[%s5731_s15 + $0x1c0] sm:$0xff] %vm1550_vm3, %v1511_v62  ;;  %5162 = vmatprep.mubr.msk.f32.mxu1 %vm1550_vm3, %v1511_v62 }
 0x2c5   : > { %5163 = vmatmul.mubr.msk.f32.gmra.mrb[56].mxu1 %vm1550_vm3, %v5054_v61 }
 0x2c6   : > { %v5057_v63 = vpop.f32.mrb[58].mxu0 }
 0x2c7   : > { %1610 = vst.msk [vmem:[%s5731_s15 + $0x1d8] sm:$0xff] %vm1550_vm3, %v5057_v63  ;;  %v1521_v0 = vpop.f32.mrb[59].mxu0 }
 0x2c8   : > { %1609 = vst.msk [vmem:[%s5731_s15 + $0x1d0] sm:$0xff] %vm1550_vm3, %v1521_v0  ;;  %5165 = vmatprep.mubr.msk.f32.mxu1 %vm1550_vm3, %v1521_v0 }
 0x2c9   : > { %5166 = vmatmul.mubr.msk.f32.gmra.mrb[58].mxu1 %vm1550_vm3, %v5057_v63 }
 0x2ca   : > { %v5060_v1 = vpop.f32.mrb[60].mxu0 }
 0x2cb   : > { %1612 = vst.msk [vmem:[%s5731_s15 + $0x1e8] sm:$0xff] %vm1550_vm3, %v5060_v1  ;;  %v1531_v36 = vpop.f32.mrb[61].mxu0 }
 0x2cc   : > { %1611 = vst.msk [vmem:[%s5731_s15 + $0x1e0] sm:$0xff] %vm1550_vm3, %v1531_v36  ;;  %5168 = vmatprep.mubr.msk.f32.mxu1 %vm1550_vm3, %v1531_v36 }
 0x2cd   : > { %5169 = vmatmul.mubr.msk.f32.gmra.mrb[60].mxu1 %vm1550_vm3, %v5060_v1 }
 0x2ce   : > { %v5063_v2 = vpop.f32.mrb[62].mxu0 }
 0x2cf   : > { %1614 = vst.msk [vmem:[%s5731_s15 + $0x1f8] sm:$0xff] %vm1550_vm3, %v5063_v2  ;;  %v1541_v39 = vpop.f32.mrb[63].mxu0 }
 0x2d0   : > { %1613 = vst.msk [vmem:[%s5731_s15 + $0x1f0] sm:$0xff] %vm1550_vm3, %v1541_v39  ;;  %5171 = vmatprep.mubr.msk.f32.mxu1 %vm1550_vm3, %v1541_v39 }
 0x2d1   : > { %5172 = vmatmul.mubr.msk.f32.gmra.mrb[62].mxu1 %vm1550_vm3, %v5063_v2 }
 0x2d2   : > { %v5192_v3 = vpop.f32.mrb[64].mxu0 }
 0x2d3   : > { %v2548_v4 = vpop.f32.mrb[65].mxu0  ;;  %v2554_v51 = vadd.f32 %v5192_v3, %v6497_v48 }
 0x2d4   : > { %v2549_v54 = vadd.f32 %v6497_v48, %v2548_v4 }
 0x2d6   : > { %v5195_v5 = vpop.f32.mrb[66].mxu0 }
 0x2d7   : > { %v2558_v6 = vpop.f32.mrb[67].mxu0  ;;  %v2564_v60 = vadd.f32 %v5195_v5, %v6497_v48 }
 0x2d8   : > { %v2559_v0 = vadd.f32 %v6497_v48, %v2558_v6 }
 0x2da   : > { %v5198_v7 = vpop.f32.mrb[68].mxu0 }
 0x2db   : > { %v6420_v8 = vpop.f32.mrb[69].mxu0  ;;  %v2574_v4 = vadd.f32 %v5198_v7, %v6497_v48 }
 0x2dc   : > { %v2569_v6 = vadd.f32 %v6497_v48, %v6420_v8 }
 0x2de   : > { %v6422_v9 = vpop.f32.mrb[70].mxu0 }
 0x2df   : > { %v6424_v10 = vpop.f32.mrb[71].mxu0  ;;  %v2584_v7 = vadd.f32 %v6422_v9, %v6497_v48 }
 0x2e0   : > { %v2579_v8 = vadd.f32 %v6497_v48, %v6424_v10 }
 0x2e2   : > { %v6426_v11 = vpop.f32.mrb[72].mxu0 }
 0x2e3   : > { %v6428_v12 = vpop.f32.mrb[73].mxu0  ;;  %v2594_v9 = vadd.f32 %v6426_v11, %v6497_v48 }
 0x2e4   : > { %v2589_v10 = vadd.f32 %v6497_v48, %v6428_v12 }
 0x2e6   : > { %v6430_v13 = vpop.f32.mrb[74].mxu0 }
 0x2e7   : > { %v6432_v14 = vpop.f32.mrb[75].mxu0  ;;  %v2604_v11 = vadd.f32 %v6430_v13, %v6497_v48 }
 0x2e8   : > { %v2599_v12 = vadd.f32 %v6497_v48, %v6432_v14 }
 0x2ea   : > { %v6434_v15 = vpop.f32.mrb[76].mxu0 }
 0x2eb   : > { %v6436_v16 = vpop.f32.mrb[77].mxu0  ;;  %v2614_v13 = vadd.f32 %v6434_v15, %v6497_v48 }
 0x2ec   : > { %v2609_v14 = vadd.f32 %v6497_v48, %v6436_v16 }
 0x2ee   : > { %v6438_v17 = vpop.f32.mrb[78].mxu0 }
 0x2ef   : > { %v6440_v18 = vpop.f32.mrb[79].mxu0  ;;  %v2624_v15 = vadd.f32 %v6438_v17, %v6497_v48 }
 0x2f0   : > { %v2619_v16 = vadd.f32 %v6497_v48, %v6440_v18 }
 0x2f2   : > { %v6442_v19 = vpop.f32.mrb[80].mxu0 }
 0x2f3   : > { %v6444_v20 = vpop.f32.mrb[81].mxu0  ;;  %v2634_v17 = vadd.f32 %v6442_v19, %v6497_v48 }
 0x2f4   : > { %v2629_v18 = vadd.f32 %v6497_v48, %v6444_v20 }
 0x2f6   : > { %v6446_v21 = vpop.f32.mrb[82].mxu0 }
 0x2f7   : > { %v6448_v22 = vpop.f32.mrb[83].mxu0  ;;  %v2644_v19 = vadd.f32 %v6446_v21, %v6497_v48 }
 0x2f8   : > { %v2639_v20 = vadd.f32 %v6497_v48, %v6448_v22 }
 0x2fa   : > { %v6450_v23 = vpop.f32.mrb[84].mxu0 }
 0x2fb   : > { %v6452_v24 = vpop.f32.mrb[85].mxu0  ;;  %v2654_v21 = vadd.f32 %v6450_v23, %v6497_v48 }
 0x2fc   : > { %v2649_v22 = vadd.f32 %v6497_v48, %v6452_v24 }
 0x2fe   : > { %v6454_v25 = vpop.f32.mrb[86].mxu0 }
 0x2ff   : > { %v6456_v26 = vpop.f32.mrb[87].mxu0  ;;  %v2664_v23 = vadd.f32 %v6454_v25, %v6497_v48 }
 0x302   : > { %v6458_v27 = vpop.f32.mrb[88].mxu0 }
 0x303   : > { %v6460_v28 = vpop.f32.mrb[89].mxu0 }
 0x306   : > { %v6462_v29 = vpop.f32.mrb[90].mxu0 }
 0x307   : > { %v6464_v30 = vpop.f32.mrb[91].mxu0 }
 0x30a   : > { %v6466_v31 = vpop.f32.mrb[92].mxu0 }
 0x30b   : > { %v6468_v32 = vpop.f32.mrb[93].mxu0 }
 0x30e   : > { %v6470_v34 = vpop.f32.mrb[94].mxu0 }
 0x30f   : > { %v6472_v35 = vpop.f32.mrb[95].mxu0 }
 0x312   : > { %v6474_v37 = vpop.f32.mrb[96].mxu0 }
 0x313   : > { %v6476_v38 = vpop.f32.mrb[97].mxu0 }
 0x316   : > { %v6478_v40 = vpop.f32.mrb[98].mxu0 }
 0x317   : > { %v6480_v41 = vpop.f32.mrb[99].mxu0 }
 0x31a   : > { %v6482_v42 = vpop.f32.mrb[100].mxu0 }
 0x31b   : > { %v6484_v43 = vpop.f32.mrb[101].mxu0 }
 0x31e   : > { %v6486_v44 = vpop.f32.mrb[102].mxu0 }
 0x31f   : > { %v6488_v45 = vpop.f32.mrb[103].mxu0 }
 0x322   : > { %v6490_v46 = vpop.f32.mrb[104].mxu0 }
 0x323   : > { %v6492_v47 = vpop.f32.mrb[105].mxu0 }
 0x326   : > { %v6504_v50 = vpop.f32.mrb[106].mxu0 }
 0x327   : > { %v6507_v52 = vpop.f32.mrb[107].mxu0 }
 0x328   : > { %v5080_v53 = vpop.f32.mrb[0].mxu1 }
 0x329   : > { %v1897_v55 = vadd.f32 %v5080_v53, %v6502_v49  ;;  %v1891_v56 = vpop.f32.mrb[1].mxu1 }
 0x32a   : > { %v1892_v57 = vadd.f32 %v6502_v49, %v1891_v56  ;;  %v6512_v58 = vpop.f32.mrb[108].mxu0 }
 0x32b   : > { %v2868_v59 = vmul.f32 %v2554_v51, %v1897_v55  ;;  %v6515_v61 = vpop.f32.mrb[109].mxu0 }
 0x32c   : > { %v2867_v62 = vmul.f32 %v2549_v54, %v1892_v57  ;;  %v5083_v63 = vpop.f32.mrb[2].mxu1 }
 0x32d   : > { %v1907_v1 = vadd.f32 %v5083_v63, %v6502_v49  ;;  %v1901_v36 = vpop.f32.mrb[3].mxu1 }
 0x32e   : > { %v1902_v2 = vadd.f32 %v6502_v49, %v1901_v36  ;;  %5292 = vmatprep.mubr.msk.f32.mxu1 %vm2934_vm10, %v2867_v62  ;;  %v6521_v39 = vpop.f32.mrb[110].mxu0 }
 0x32f   : > { %v2870_v3 = vmul.f32 %v2564_v60, %v1907_v1  ;;  %5293 = vmatmul.mubr.msk.f32.vlgmr.msra.gmra.mrb[64].mxu1 %vm2934_vm10, %v2868_v59  ;;  %v6525_v5 = vpop.f32.mrb[111].mxu0 }
 0x330   : > { %v2869_v51 = vmul.f32 %v2559_v0, %v1902_v2  ;;  %v5086_v53 = vpop.f32.mrb[4].mxu1 }
 0x331   : > { %v1917_v54 = vadd.f32 %v5086_v53, %v6502_v49  ;;  %v1911_v55 = vpop.f32.mrb[5].mxu1 }
 0x332   : > { %v1912_v56 = vadd.f32 %v6502_v49, %v1911_v55  ;;  %5295 = vmatprep.mubr.msk.f32.mxu1 %vm2934_vm10, %v2869_v51  ;;  %v6532_v57 = vpop.f32.mrb[112].mxu0 }
 0x333   : > { %v2872_v60 = vmul.f32 %v2574_v4, %v1917_v54  ;;  %5296 = vmatmul.mubr.msk.f32.gmra.mrb[66].mxu1 %vm2934_vm10, %v2870_v3  ;;  %v6537_v59 = vpop.f32.mrb[113].mxu0 }
 0x334   : > { %v2871_v62 = vmul.f32 %v2569_v6, %v1912_v56  ;;  %v5089_v63 = vpop.f32.mrb[6].mxu1 }
 0x335   : > { %v1927_v0 = vadd.f32 %v5089_v63, %v6502_v49  ;;  %v1921_v1 = vpop.f32.mrb[7].mxu1 }
 0x336   : > { %v1922_v36 = vadd.f32 %v6502_v49, %v1921_v1  ;;  %5298 = vmatprep.mubr.msk.f32.mxu1 %vm2934_vm10, %v2871_v62  ;;  %v6544_v2 = vpop.f32.mrb[114].mxu0 }
 0x337   : > { %v2874_v4 = vmul.f32 %v2584_v7, %v1927_v0  ;;  %5299 = vmatmul.mubr.msk.f32.gmra.mrb[68].mxu1 %vm2934_vm10, %v2872_v60  ;;  %v6549_v3 = vpop.f32.mrb[115].mxu0 }
 0x338   : > { %v2873_v51 = vmul.f32 %v2579_v8, %v1922_v36  ;;  %v5092_v53 = vpop.f32.mrb[8].mxu1 }
 0x339   : > { %v1937_v6 = vadd.f32 %v5092_v53, %v6502_v49  ;;  %v1931_v54 = vpop.f32.mrb[9].mxu1 }
 0x33a   : > { %v1932_v55 = vadd.f32 %v6502_v49, %v1931_v54  ;;  %5301 = vmatprep.mubr.msk.f32.mxu1 %vm2934_vm10, %v2873_v51  ;;  %v6556_v56 = vpop.f32.mrb[116].mxu0 }
 0x33b   : > { %v2876_v7 = vmul.f32 %v2594_v9, %v1937_v6  ;;  %5302 = vmatmul.mubr.msk.f32.gmra.mrb[70].mxu1 %vm2934_vm10, %v2874_v4  ;;  %v6561_v60 = vpop.f32.mrb[117].mxu0 }
 0x33c   : > { %v2875_v62 = vmul.f32 %v2589_v10, %v1932_v55  ;;  %v5095_v63 = vpop.f32.mrb[10].mxu1 }
 0x33d   : > { %v1947_v8 = vadd.f32 %v5095_v63, %v6502_v49  ;;  %v1941_v0 = vpop.f32.mrb[11].mxu1 }
 0x33e   : > { %v1942_v1 = vadd.f32 %v6502_v49, %v1941_v0  ;;  %5304 = vmatprep.mubr.msk.f32.mxu1 %vm2934_vm10, %v2875_v62  ;;  %v6568_v36 = vpop.f32.mrb[118].mxu0 }
 0x33f   : > { %v2878_v9 = vmul.f32 %v2604_v11, %v1947_v8  ;;  %5305 = vmatmul.mubr.msk.f32.gmra.mrb[72].mxu1 %vm2934_vm10, %v2876_v7  ;;  %v6573_v4 = vpop.f32.mrb[119].mxu0 }
 0x340   : > { %v2877_v51 = vmul.f32 %v2599_v12, %v1942_v1  ;;  %v5098_v53 = vpop.f32.mrb[12].mxu1 }
 0x341   : > { %v1957_v10 = vadd.f32 %v5098_v53, %v6502_v49  ;;  %v1951_v6 = vpop.f32.mrb[13].mxu1 }
 0x342   : > { %v1952_v54 = vadd.f32 %v6502_v49, %v1951_v6  ;;  %5307 = vmatprep.mubr.msk.f32.mxu1 %vm2934_vm10, %v2877_v51  ;;  %v6580_v55 = vpop.f32.mrb[120].mxu0 }
 0x343   : > { %v2880_v11 = vmul.f32 %v2614_v13, %v1957_v10  ;;  %5308 = vmatmul.mubr.msk.f32.gmra.mrb[74].mxu1 %vm2934_vm10, %v2878_v9  ;;  %v6585_v7 = vpop.f32.mrb[121].mxu0 }
 0x344   : > { %v2879_v62 = vmul.f32 %v2609_v14, %v1952_v54  ;;  %v5101_v63 = vpop.f32.mrb[14].mxu1 }
 0x345   : > { %v1967_v12 = vadd.f32 %v5101_v63, %v6502_v49  ;;  %v1961_v8 = vpop.f32.mrb[15].mxu1 }
 0x346   : > { %v1962_v0 = vadd.f32 %v6502_v49, %v1961_v8  ;;  %5310 = vmatprep.mubr.msk.f32.mxu1 %vm2934_vm10, %v2879_v62  ;;  %v6592_v1 = vpop.f32.mrb[122].mxu0 }
 0x347   : > { %v2882_v13 = vmul.f32 %v2624_v15, %v1967_v12  ;;  %5311 = vmatmul.mubr.msk.f32.gmra.mrb[76].mxu1 %vm2934_vm10, %v2880_v11  ;;  %v6597_v9 = vpop.f32.mrb[123].mxu0 }
 0x348   : > { %v2881_v51 = vmul.f32 %v2619_v16, %v1962_v0  ;;  %v5104_v53 = vpop.f32.mrb[16].mxu1 }
 0x349   : > { %v1977_v14 = vadd.f32 %v5104_v53, %v6502_v49  ;;  %v1971_v10 = vpop.f32.mrb[17].mxu1 }
 0x34a   : > { %v1972_v6 = vadd.f32 %v6502_v49, %v1971_v10  ;;  %5313 = vmatprep.mubr.msk.f32.mxu1 %vm2934_vm10, %v2881_v51  ;;  %v6604_v54 = vpop.f32.mrb[124].mxu0 }
 0x34b   : > { %v2884_v15 = vmul.f32 %v2634_v17, %v1977_v14  ;;  %5314 = vmatmul.mubr.msk.f32.gmra.mrb[78].mxu1 %vm2934_vm10, %v2882_v13  ;;  %v6609_v11 = vpop.f32.mrb[125].mxu0 }
 0x34c   : > { %v2883_v62 = vmul.f32 %v2629_v18, %v1972_v6  ;;  %v5107_v63 = vpop.f32.mrb[18].mxu1 }
 0x34d   : > { %v1987_v16 = vadd.f32 %v5107_v63, %v6502_v49  ;;  %v1981_v12 = vpop.f32.mrb[19].mxu1 }
 0x34e   : > { %v1982_v8 = vadd.f32 %v6502_v49, %v1981_v12  ;;  %5316 = vmatprep.mubr.msk.f32.mxu1 %vm2934_vm10, %v2883_v62  ;;  %v6616_v0 = vpop.f32.mrb[126].mxu0  ;;  %v2659_v62 = vadd.f32 %v6497_v48, %v6456_v26  ;;  %v2674_v12 = vadd.f32 %v6458_v27, %v6497_v48 }
 0x34f   : > { %v2886_v17 = vmul.f32 %v2644_v19, %v1987_v16  ;;  %5317 = vmatmul.mubr.msk.f32.gmra.mrb[80].mxu1 %vm2934_vm10, %v2884_v15  ;;  %v6621_v13 = vpop.f32.mrb[127].mxu0 }
 0x350   : > { %v2885_v51 = vmul.f32 %v2639_v20, %v1982_v8  ;;  %v5110_v53 = vpop.f32.mrb[20].mxu1 }
 0x351   : > { %v1997_v18 = vadd.f32 %v5110_v53, %v6502_v49  ;;  %v1991_v14 = vpop.f32.mrb[21].mxu1 }
 0x352   : > { %v1992_v10 = vadd.f32 %v6502_v49, %v1991_v14  ;;  %5319 = vmatprep.mubr.msk.f32.mxu1 %vm2934_vm10, %v2885_v51  ;;  %v2679_v14 = vadd.f32 %v6497_v48, %v6464_v30 }
 0x353   : > { %v2888_v6 = vmul.f32 %v2654_v21, %v1997_v18  ;;  %5320 = vmatmul.mubr.msk.f32.gmra.mrb[82].mxu1 %vm2934_vm10, %v2886_v17  ;;  %v2669_v17 = vadd.f32 %v6497_v48, %v6460_v28 }
 0x354   : > { %v2887_v15 = vmul.f32 %v2649_v22, %v1992_v10  ;;  %v5113_v19 = vpop.f32.mrb[22].mxu1  ;;  %v2684_v22 = vadd.f32 %v6462_v29, %v6497_v48 }
 0x355   : > { %v2007_v24 = vadd.f32 %v5113_v19, %v6502_v49  ;;  %v2001_v63 = vpop.f32.mrb[23].mxu1 }
 0x356   : > { %v2002_v20 = vadd.f32 %v6502_v49, %v2001_v63  ;;  %5322 = vmatprep.mubr.msk.f32.mxu1 %vm2934_vm10, %v2887_v15  ;;  %v2694_v15 = vadd.f32 %v6466_v31, %v6497_v48 }
 0x357   : > { %v2890_v16 = vmul.f32 %v2664_v23, %v2007_v24  ;;  %5323 = vmatmul.mubr.msk.f32.gmra.mrb[84].mxu1 %vm2934_vm10, %v2888_v6 }
 0x358   : > { %v2889_v25 = vmul.f32 %v2659_v62, %v2002_v20  ;;  %v5116_v8 = vpop.f32.mrb[24].mxu1  ;;  %v2689_v62 = vadd.f32 %v6497_v48, %v6468_v32 }
 0x359   : > { %v2017_v26 = vadd.f32 %v5116_v8, %v6502_v49  ;;  %v2011_v21 = vpop.f32.mrb[25].mxu1 }
 0x35a   : > { %v2012_v51 = vadd.f32 %v6502_v49, %v2011_v21  ;;  %5325 = vmatprep.mubr.msk.f32.mxu1 %vm2934_vm10, %v2889_v25  ;;  %v2699_v25 = vadd.f32 %v6497_v48, %v6472_v35  ;;  %v2714_v21 = vadd.f32 %v6474_v37, %v6497_v48 }
 0x35b   : > { %v2892_v53 = vmul.f32 %v2674_v12, %v2017_v26  ;;  %5326 = vmatmul.mubr.msk.f32.gmra.mrb[86].mxu1 %vm2934_vm10, %v2890_v16  ;;  %v2704_v16 = vadd.f32 %v6470_v34, %v6497_v48 }
 0x35c   : > { %v2891_v27 = vmul.f32 %v2669_v17, %v2012_v51  ;;  %v5119_v18 = vpop.f32.mrb[26].mxu1 }
 0x35d   : > { %v2027_v28 = vadd.f32 %v5119_v18, %v6502_v49  ;;  %v2021_v10 = vpop.f32.mrb[27].mxu1 }
 0x35e   : > { %v2022_v6 = vadd.f32 %v6502_v49, %v2021_v10  ;;  %5328 = vmatprep.mubr.msk.f32.mxu1 %vm2934_vm10, %v2891_v27  ;;  %v2719_v10 = vadd.f32 %v6497_v48, %v6480_v41 }
 0x35f   : > { %v2894_v23 = vmul.f32 %v2684_v22, %v2027_v28  ;;  %5329 = vmatmul.mubr.msk.f32.gmra.mrb[88].mxu1 %vm2934_vm10, %v2892_v53  ;;  %v2709_v53 = vadd.f32 %v6497_v48, %v6476_v38 }
 0x360   : > { %v2893_v29 = vmul.f32 %v2679_v14, %v2022_v6  ;;  %v5122_v19 = vpop.f32.mrb[28].mxu1  ;;  %v2724_v14 = vadd.f32 %v6478_v40, %v6497_v48 }
 0x361   : > { %v2037_v30 = vadd.f32 %v5122_v19, %v6502_v49  ;;  %v2031_v24 = vpop.f32.mrb[29].mxu1 }
 0x362   : > { %v2032_v63 = vadd.f32 %v6502_v49, %v2031_v24  ;;  %5331 = vmatprep.mubr.msk.f32.mxu1 %vm2934_vm10, %v2893_v29  ;;  %v2734_v29 = vadd.f32 %v6482_v42, %v6497_v48 }
 0x363   : > { %v2896_v20 = vmul.f32 %v2694_v15, %v2037_v30  ;;  %5332 = vmatmul.mubr.msk.f32.gmra.mrb[90].mxu1 %vm2934_vm10, %v2894_v23 }
 0x364   : > { %v2895_v31 = vmul.f32 %v2689_v62, %v2032_v63  ;;  %v5125_v12 = vpop.f32.mrb[30].mxu1  ;;  %v2729_v62 = vadd.f32 %v6497_v48, %v6484_v43 }
 0x365   : > { %v2047_v32 = vadd.f32 %v5125_v12, %v6502_v49  ;;  %v2041_v8 = vpop.f32.mrb[31].mxu1 }
 0x366   : > { %v2042_v17 = vadd.f32 %v6502_v49, %v2041_v8  ;;  %5334 = vmatprep.mubr.msk.f32.mxu1 %vm2934_vm10, %v2895_v31  ;;  %v2739_v31 = vadd.f32 %v6497_v48, %v6488_v45  ;;  %v2754_v8 = vadd.f32 %v6490_v46, %v6497_v48 }
 0x367   : > { %v2898_v26 = vmul.f32 %v2704_v16, %v2047_v32  ;;  %5335 = vmatmul.mubr.msk.f32.gmra.mrb[92].mxu1 %vm2934_vm10, %v2896_v20  ;;  %v2744_v20 = vadd.f32 %v6486_v44, %v6497_v48 }
 0x368   : > { %v2897_v34 = vmul.f32 %v2699_v25, %v2042_v17  ;;  %v5128_v51 = vpop.f32.mrb[32].mxu1 }
 0x369   : > { %v2057_v35 = vadd.f32 %v5128_v51, %v6502_v49  ;;  %v2051_v22 = vpop.f32.mrb[33].mxu1 }
 0x36a   : > { %v2052_v27 = vadd.f32 %v6502_v49, %v2051_v22  ;;  %5337 = vmatprep.mubr.msk.f32.mxu1 %vm2934_vm10, %v2897_v34  ;;  %v2759_v22 = vadd.f32 %v6497_v48, %v6507_v52 }
 0x36b   : > { %v2900_v18 = vmul.f32 %v2714_v21, %v2057_v35  ;;  %5338 = vmatmul.mubr.msk.f32.gmra.mrb[94].mxu1 %vm2934_vm10, %v2898_v26  ;;  %v2749_v26 = vadd.f32 %v6497_v48, %v6492_v47 }
 0x36c   : > { %v2899_v37 = vmul.f32 %v2709_v53, %v2052_v27  ;;  %v5131_v28 = vpop.f32.mrb[34].mxu1  ;;  %v2764_v53 = vadd.f32 %v6504_v50, %v6497_v48 }
 0x36d   : > { %v2067_v38 = vadd.f32 %v5131_v28, %v6502_v49  ;;  %v2061_v6 = vpop.f32.mrb[35].mxu1 }
 0x36e   : > { %v2062_v23 = vadd.f32 %v6502_v49, %v2061_v6  ;;  %5340 = vmatprep.mubr.msk.f32.mxu1 %vm2934_vm10, %v2899_v37  ;;  %v2774_v37 = vadd.f32 %v6512_v58, %v6497_v48 }
 0x36f   : > { %v2902_v15 = vmul.f32 %v2724_v14, %v2067_v38  ;;  %5341 = vmatmul.mubr.msk.f32.gmra.mrb[96].mxu1 %vm2934_vm10, %v2900_v18 }
 0x370   : > { %v2901_v40 = vmul.f32 %v2719_v10, %v2062_v23  ;;  %v5134_v19 = vpop.f32.mrb[36].mxu1  ;;  %v2769_v10 = vadd.f32 %v6497_v48, %v6515_v61 }
 0x371   : > { %v2077_v41 = vadd.f32 %v5134_v19, %v6502_v49  ;;  %v2071_v30 = vpop.f32.mrb[37].mxu1 }
 0x372   : > { %v2072_v24 = vadd.f32 %v6502_v49, %v2071_v30  ;;  %5343 = vmatprep.mubr.msk.f32.mxu1 %vm2934_vm10, %v2901_v40  ;;  %v2779_v40 = vadd.f32 %v6497_v48, %v6525_v5  ;;  %v2794_v30 = vadd.f32 %v6532_v57, %v6497_v48 }
 0x373   : > { %v2904_v63 = vmul.f32 %v2734_v29, %v2077_v41  ;;  %5344 = vmatmul.mubr.msk.f32.gmra.mrb[98].mxu1 %vm2934_vm10, %v2902_v15  ;;  %v2784_v15 = vadd.f32 %v6521_v39, %v6497_v48 }
 0x374   : > { %v2903_v42 = vmul.f32 %v2729_v62, %v2072_v24  ;;  %v5137_v16 = vpop.f32.mrb[38].mxu1 }
 0x375   : > { %v2087_v43 = vadd.f32 %v5137_v16, %v6502_v49  ;;  %v2081_v12 = vpop.f32.mrb[39].mxu1 }
 0x376   : > { %v2082_v25 = vadd.f32 %v6502_v49, %v2081_v12  ;;  %5346 = vmatprep.mubr.msk.f32.mxu1 %vm2934_vm10, %v2903_v42  ;;  %v2799_v12 = vadd.f32 %v6497_v48, %v6549_v3 }
 0x377   : > { %v2906_v32 = vmul.f32 %v2744_v20, %v2087_v43  ;;  %5347 = vmatmul.mubr.msk.f32.gmra.mrb[100].mxu1 %vm2934_vm10, %v2904_v63  ;;  %v2789_v63 = vadd.f32 %v6497_v48, %v6537_v59 }
 0x378   : > { %v2905_v44 = vmul.f32 %v2739_v31, %v2082_v25  ;;  %v5140_v17 = vpop.f32.mrb[40].mxu1  ;;  %v2804_v31 = vadd.f32 %v6544_v2, %v6497_v48 }
 0x379   : > { %v2097_v45 = vadd.f32 %v5140_v17, %v6502_v49  ;;  %v2091_v21 = vpop.f32.mrb[41].mxu1 }
 0x37a   : > { %v2092_v34 = vadd.f32 %v6502_v49, %v2091_v21  ;;  %5349 = vmatprep.mubr.msk.f32.mxu1 %vm2934_vm10, %v2905_v44  ;;  %v2814_v44 = vadd.f32 %v6556_v56, %v6497_v48 }
 0x37b   : > { %v2908_v51 = vmul.f32 %v2754_v8, %v2097_v45  ;;  %5350 = vmatmul.mubr.msk.f32.gmra.mrb[102].mxu1 %vm2934_vm10, %v2906_v32 }
 0x37c   : > { %v2907_v46 = vmul.f32 %v2749_v26, %v2092_v34  ;;  %v5143_v35 = vpop.f32.mrb[42].mxu1  ;;  %v2809_v26 = vadd.f32 %v6497_v48, %v6561_v60 }
 0x37d   : > { %v2107_v47 = vadd.f32 %v5143_v35, %v6502_v49  ;;  %v2101_v27 = vpop.f32.mrb[43].mxu1 }
 0x37e   : > { %v2102_v18 = vadd.f32 %v6502_v49, %v2101_v27  ;;  %5352 = vmatprep.mubr.msk.f32.mxu1 %vm2934_vm10, %v2907_v46  ;;  %v2819_v46 = vadd.f32 %v6497_v48, %v6573_v4  ;;  %v2834_v27 = vadd.f32 %v6580_v55, %v6497_v48 }
 0x37f   : > { %v2910_v14 = vmul.f32 %v2764_v53, %v2107_v47  ;;  %5353 = vmatmul.mubr.msk.f32.gmra.mrb[104].mxu1 %vm2934_vm10, %v2908_v51  ;;  %v2824_v51 = vadd.f32 %v6568_v36, %v6497_v48 }
 0x380   : > { %v2909_v50 = vmul.f32 %v2759_v22, %v2102_v18  ;;  %v5146_v28 = vpop.f32.mrb[44].mxu1 }
 0x381   : > { %v2117_v52 = vadd.f32 %v5146_v28, %v6502_v49  ;;  %v2111_v38 = vpop.f32.mrb[45].mxu1 }
 0x382   : > { %v2112_v6 = vadd.f32 %v6502_v49, %v2111_v38  ;;  %5355 = vmatprep.mubr.msk.f32.mxu1 %vm2934_vm10, %v2909_v50  ;;  %v2839_v38 = vadd.f32 %v6497_v48, %v6597_v9 }
 0x383   : > { %v2912_v23 = vmul.f32 %v2774_v37, %v2117_v52  ;;  %5356 = vmatmul.mubr.msk.f32.gmra.mrb[106].mxu1 %vm2934_vm10, %v2910_v14  ;;  %v2829_v14 = vadd.f32 %v6497_v48, %v6585_v7 }
 0x384   : > { %v2911_v58 = vmul.f32 %v2769_v10, %v2112_v6  ;;  %v5149_v29 = vpop.f32.mrb[46].mxu1  ;;  %v2844_v10 = vadd.f32 %v6592_v1, %v6497_v48 }
 0x385   : > { %v2127_v61 = vadd.f32 %v5149_v29, %v6502_v49  ;;  %v2121_v19 = vpop.f32.mrb[47].mxu1 }
 0x386   : > { %v2122_v62 = vadd.f32 %v6502_v49, %v2121_v19  ;;  %5358 = vmatprep.mubr.msk.f32.mxu1 %vm2934_vm10, %v2911_v58  ;;  %v2854_v58 = vadd.f32 %v6604_v54, %v6497_v48 }
 0x387   : > { %v2914_v41 = vmul.f32 %v2784_v15, %v2127_v61  ;;  %5359 = vmatmul.mubr.msk.f32.gmra.mrb[108].mxu1 %vm2934_vm10, %v2912_v23 }
 0x388   : > { %v2913_v39 = vmul.f32 %v2779_v40, %v2122_v62  ;;  %v5152_v24 = vpop.f32.mrb[48].mxu1  ;;  %v2849_v40 = vadd.f32 %v6497_v48, %v6609_v11 }
 0x389   : > { %v2137_v5 = vadd.f32 %v5152_v24, %v6502_v49  ;;  %v2131_v20 = vpop.f32.mrb[49].mxu1 }
 0x38a   : > { %v2132_v42 = vadd.f32 %v6502_v49, %v2131_v20  ;;  %5361 = vmatprep.mubr.msk.f32.mxu1 %vm2934_vm10, %v2913_v39  ;;  %v2859_v39 = vadd.f32 %v6497_v48, %v6621_v13 }
 0x38b   : > { %v2916_v16 = vmul.f32 %v2794_v30, %v2137_v5  ;;  %5362 = vmatmul.mubr.msk.f32.gmra.mrb[110].mxu1 %vm2934_vm10, %v2914_v41  ;;  %v2864_v41 = vadd.f32 %v6616_v0, %v6497_v48 }
 0x38c   : > { %v2915_v57 = vmul.f32 %v2789_v63, %v2132_v42  ;;  %v5155_v43 = vpop.f32.mrb[50].mxu1 }
 0x38d   : > { %v2147_v59 = vadd.f32 %v5155_v43, %v6502_v49  ;;  %v2141_v25 = vpop.f32.mrb[51].mxu1 }
 0x38e   : > { %v2142_v32 = vadd.f32 %v6502_v49, %v2141_v25  ;;  %5364 = vmatprep.mubr.msk.f32.mxu1 %vm2934_vm10, %v2915_v57 }
 0x38f   : > { %v2918_v8 = vmul.f32 %v2804_v31, %v2147_v59  ;;  %5365 = vmatmul.mubr.msk.f32.gmra.mrb[112].mxu1 %vm2934_vm10, %v2916_v16 }
 0x390   : > { %v2917_v2 = vmul.f32 %v2799_v12, %v2142_v32  ;;  %v5158_v17 = vpop.f32.mrb[52].mxu1 }
 0x391   : > { %v2157_v3 = vadd.f32 %v5158_v17, %v6502_v49  ;;  %v2151_v45 = vpop.f32.mrb[53].mxu1 }
 0x392   : > { %v2152_v21 = vadd.f32 %v6502_v49, %v2151_v45  ;;  %5367 = vmatprep.mubr.msk.f32.mxu1 %vm2934_vm10, %v2917_v2 }
 0x393   : > { %v2920_v34 = vmul.f32 %v2814_v44, %v2157_v3  ;;  %5368 = vmatmul.mubr.msk.f32.gmra.mrb[114].mxu1 %vm2934_vm10, %v2918_v8 }
 0x394   : > { %v2919_v56 = vmul.f32 %v2809_v26, %v2152_v21  ;;  %v5161_v53 = vpop.f32.mrb[54].mxu1 }
 0x395   : > { %v2167_v60 = vadd.f32 %v5161_v53, %v6502_v49  ;;  %v2161_v35 = vpop.f32.mrb[55].mxu1 }
 0x396   : > { %v2162_v22 = vadd.f32 %v6502_v49, %v2161_v35  ;;  %5370 = vmatprep.mubr.msk.f32.mxu1 %vm2934_vm10, %v2919_v56 }
 0x397   : > { %v2922_v47 = vmul.f32 %v2824_v51, %v2167_v60  ;;  %5371 = vmatmul.mubr.msk.f32.gmra.mrb[116].mxu1 %vm2934_vm10, %v2920_v34 }
 0x398   : > { %v2921_v36 = vmul.f32 %v2819_v46, %v2162_v22  ;;  %v5164_v18 = vpop.f32.mrb[56].mxu1 }
 0x399   : > { %v2177_v4 = vadd.f32 %v5164_v18, %v6502_v49  ;;  %v2171_v37 = vpop.f32.mrb[57].mxu1 }
 0x39a   : > { %v2172_v50 = vadd.f32 %v6502_v49, %v2171_v37  ;;  %5373 = vmatprep.mubr.msk.f32.mxu1 %vm2934_vm10, %v2921_v36 }
 0x39b   : > { %v2924_v28 = vmul.f32 %v2834_v27, %v2177_v4  ;;  %5374 = vmatmul.mubr.msk.f32.gmra.mrb[118].mxu1 %vm2934_vm10, %v2922_v47 }
 0x39c   : > { %v2923_v55 = vmul.f32 %v2829_v14, %v2172_v50  ;;  %v5167_v52 = vpop.f32.mrb[58].mxu1 }
 0x39d   : > { %v2187_v7 = vadd.f32 %v5167_v52, %v6502_v49  ;;  %v2181_v6 = vpop.f32.mrb[59].mxu1 }
 0x39e   : > { %v2182_v23 = vadd.f32 %v6502_v49, %v2181_v6  ;;  %5376 = vmatprep.mubr.msk.f32.mxu1 %vm2934_vm10, %v2923_v55 }
 0x39f   : > { %v2926_v15 = vmul.f32 %v2844_v10, %v2187_v7  ;;  %5377 = vmatmul.mubr.msk.f32.gmra.mrb[120].mxu1 %vm2934_vm10, %v2924_v28 }
 0x3a0   : > { %v2925_v1 = vmul.f32 %v2839_v38, %v2182_v23  ;;  %v5170_v29 = vpop.f32.mrb[60].mxu1 }
 0x3a1   : > { %v2197_v9 = vadd.f32 %v5170_v29, %v6502_v49  ;;  %v2191_v61 = vpop.f32.mrb[61].mxu1 }
 0x3a2   : > { %v2192_v19 = vadd.f32 %v6502_v49, %v2191_v61  ;;  %5379 = vmatprep.mubr.msk.f32.mxu1 %vm2934_vm10, %v2925_v1 }
 0x3a3   : > { %v2928_v62 = vmul.f32 %v2854_v58, %v2197_v9  ;;  %5380 = vmatmul.mubr.msk.f32.gmra.mrb[122].mxu1 %vm2934_vm10, %v2926_v15 }
 0x3a4   : > { %v2927_v54 = vmul.f32 %v2849_v40, %v2192_v19  ;;  %v5173_v30 = vpop.f32.mrb[62].mxu1 }
 0x3a5   : > { %v2207_v11 = vadd.f32 %v5173_v30, %v6502_v49  ;;  %v2201_v24 = vpop.f32.mrb[63].mxu1 }
 0x3a6   : > { %v2202_v63 = vadd.f32 %v6502_v49, %v2201_v24  ;;  %5382 = vmatprep.mubr.msk.f32.mxu1 %vm2934_vm10, %v2927_v54 }
 0x3a7   : > { %v2930_v5 = vmul.f32 %v2864_v41, %v2207_v11  ;;  %5383 = vmatmul.mubr.msk.f32.gmra.mrb[124].mxu1 %vm2934_vm10, %v2928_v62 }
 0x3a8   : > { %v2929_v0 = vmul.f32 %v2859_v39, %v2202_v63 }
 0x3aa   : > { %5385 = vmatprep.mubr.msk.f32.mxu1 %vm2934_vm10, %v2929_v0 }
 0x3ab   : > { %5386 = vmatmul.mubr.msk.f32.gmra.mrb[126].mxu1 %vm2934_vm10, %v2930_v5 }
 0x402   : > { %v5294_v20 = vpop.f32.mrb[64].mxu1 }
 0x403   : > { %vm3513_vm11 = vcmp.ge.f32.partialorder %v5294_v20, 0.0  ;;  %v3577_v48 = vmul.f32 0.01, %v5294_v20  ;;  %v3193_v13 = vpop.f32.mrb[65].mxu1 }
 0x404   : > { %vm3512_vm13 = vcmp.ge.f32.partialorder %v3193_v13, 0.0  ;;  %v3576_v49 = vmul.f32 0.01, %v3193_v13 }
 0x405   : > { %v6799_v42 = vsel %vm3513_vm11, %v5294_v20, %v3577_v48 }
 0x406   : > { %3706 = vst.msk [vmem:[%s5736_s18 + $0x8] sm:$0xff] %vm3704_vm12, %v6799_v42  ;;  %v6804_v16 = vsel %vm3512_vm13, %v3193_v13, %v3576_v49  ;;  %v5297_v31 = vpop.f32.mrb[66].mxu1 }
 0x407   : > { %3705 = vst.msk [vmem:[%s5736_s18] sm:$0xff] %vm3704_vm12, %v6804_v16  ;;  %vm3515_vm14 = vcmp.ge.f32.partialorder %v5297_v31, 0.0  ;;  %v3579_v57 = vmul.f32 0.01, %v5297_v31  ;;  %v3203_v43 = vpop.f32.mrb[67].mxu1 }
 0x408   : > { %vm3514_vm15 = vcmp.ge.f32.partialorder %v3203_v43, 0.0  ;;  %v3578_v12 = vmul.f32 0.01, %v3203_v43 }
 0x409   : > { %v6809_v59 = vsel %vm3515_vm14, %v5297_v31, %v3579_v57 }
 0x40a   : > { %3708 = vst.msk [vmem:[%s5736_s18 + $0x18] sm:$0xff] %vm3704_vm12, %v6809_v59  ;;  %v6814_v25 = vsel %vm3514_vm15, %v3203_v43, %v3578_v12  ;;  %v5300_v32 = vpop.f32.mrb[68].mxu1 }
 0x40b   : > { %3707 = vst.msk [vmem:[%s5736_s18 + $0x10] sm:$0xff] %vm3704_vm12, %v6814_v25  ;;  %vm3517_vm0 = vcmp.ge.f32.partialorder %v5300_v32, 0.0  ;;  %v3581_v8 = vmul.f32 0.01, %v5300_v32  ;;  %v3213_v44 = vpop.f32.mrb[69].mxu1 }
 0x40c   : > { %vm3516_vm1 = vcmp.ge.f32.partialorder %v3213_v44, 0.0  ;;  %v3580_v2 = vmul.f32 0.01, %v3213_v44 }
 0x40d   : > { %v6819_v17 = vsel %vm3517_vm0, %v5300_v32, %v3581_v8 }
 0x40e   : > { %3710 = vst.msk [vmem:[%s5736_s18 + $0x28] sm:$0xff] %vm3704_vm12, %v6819_v17  ;;  %v6824_v26 = vsel %vm3516_vm1, %v3213_v44, %v3580_v2  ;;  %v5303_v3 = vpop.f32.mrb[70].mxu1 }
 0x40f   : > { %3709 = vst.msk [vmem:[%s5736_s18 + $0x20] sm:$0xff] %vm3704_vm12, %v6824_v26  ;;  %vm3519_vm2 = vcmp.ge.f32.partialorder %v5303_v3, 0.0  ;;  %v3583_v45 = vmul.f32 0.01, %v5303_v3  ;;  %v3223_v21 = vpop.f32.mrb[71].mxu1 }
 0x410   : > { %vm3518_vm4 = vcmp.ge.f32.partialorder %v3223_v21, 0.0  ;;  %v3582_v34 = vmul.f32 0.01, %v3223_v21 }
 0x411   : > { %v6829_v51 = vsel %vm3519_vm2, %v5303_v3, %v3583_v45 }
 0x412   : > { %3712 = vst.msk [vmem:[%s5736_s18 + $0x38] sm:$0xff] %vm3704_vm12, %v6829_v51  ;;  %v6834_v56 = vsel %vm3518_vm4, %v3223_v21, %v3582_v34  ;;  %v5306_v53 = vpop.f32.mrb[72].mxu1 }
 0x413   : > { %3711 = vst.msk [vmem:[%s5736_s18 + $0x30] sm:$0xff] %vm3704_vm12, %v6834_v56  ;;  %vm3521_vm5 = vcmp.ge.f32.partialorder %v5306_v53, 0.0  ;;  %v3585_v46 = vmul.f32 0.01, %v5306_v53  ;;  %v3233_v60 = vpop.f32.mrb[73].mxu1 }
 0x414   : > { %vm3520_vm6 = vcmp.ge.f32.partialorder %v3233_v60, 0.0  ;;  %v3584_v35 = vmul.f32 0.01, %v3233_v60 }
 0x415   : > { %v6839_v22 = vsel %vm3521_vm5, %v5306_v53, %v3585_v46 }
 0x416   : > { %3714 = vst.msk [vmem:[%s5736_s18 + $0x48] sm:$0xff] %vm3704_vm12, %v6839_v22  ;;  %v6844_v47 = vsel %vm3520_vm6, %v3233_v60, %v3584_v35  ;;  %v5309_v27 = vpop.f32.mrb[74].mxu1 }
 0x417   : > { %3713 = vst.msk [vmem:[%s5736_s18 + $0x40] sm:$0xff] %vm3704_vm12, %v6844_v47  ;;  %vm3523_vm7 = vcmp.ge.f32.partialorder %v5309_v27, 0.0  ;;  %v3587_v36 = vmul.f32 0.01, %v5309_v27  ;;  %v3243_v18 = vpop.f32.mrb[75].mxu1 }
 0x418   : > { %vm3522_vm8 = vcmp.ge.f32.partialorder %v3243_v18, 0.0  ;;  %v3586_v14 = vmul.f32 0.01, %v3243_v18 }
 0x419   : > { %v6849_v4 = vsel %vm3523_vm7, %v5309_v27, %v3587_v36 }
 0x41a   : > { %3716 = vst.msk [vmem:[%s5736_s18 + $0x58] sm:$0xff] %vm3704_vm12, %v6849_v4  ;;  %v6854_v37 = vsel %vm3522_vm8, %v3243_v18, %v3586_v14  ;;  %v5312_v50 = vpop.f32.mrb[76].mxu1 }
 0x41b   : > { %3715 = vst.msk [vmem:[%s5736_s18 + $0x50] sm:$0xff] %vm3704_vm12, %v6854_v37  ;;  %vm3525_vm9 = vcmp.ge.f32.partialorder %v5312_v50, 0.0  ;;  %v3589_v28 = vmul.f32 0.01, %v5312_v50  ;;  %v3253_v10 = vpop.f32.mrb[77].mxu1 }
 0x41c   : > { %vm3524_vm3 = vcmp.ge.f32.partialorder %v3253_v10, 0.0  ;;  %v3588_v55 = vmul.f32 0.01, %v3253_v10 }
 0x41d   : > { %v6859_v52 = vsel %vm3525_vm9, %v5312_v50, %v3589_v28 }
 0x41e   : > { %3718 = vst.msk [vmem:[%s5736_s18 + $0x68] sm:$0xff] %vm3704_vm12, %v6859_v52  ;;  %v6864_v38 = vsel %vm3524_vm3, %v3253_v10, %v3588_v55  ;;  %v5315_v7 = vpop.f32.mrb[78].mxu1 }
 0x41f   : > { %3717 = vst.msk [vmem:[%s5736_s18 + $0x60] sm:$0xff] %vm3704_vm12, %v6864_v38  ;;  %vm3527_vm10 = vcmp.ge.f32.partialorder %v5315_v7, 0.0  ;;  %v3591_v6 = vmul.f32 0.01, %v5315_v7  ;;  %v3263_v23 = vpop.f32.mrb[79].mxu1 }
 0x420   : > { %vm3526_vm11 = vcmp.ge.f32.partialorder %v3263_v23, 0.0  ;;  %v3590_v15 = vmul.f32 0.01, %v3263_v23 }
 0x421   : > { %v6869_v58 = vsel %vm3527_vm10, %v5315_v7, %v3591_v6 }
 0x422   : > { %3720 = vst.msk [vmem:[%s5736_s18 + $0x78] sm:$0xff] %vm3704_vm12, %v6869_v58  ;;  %v6874_v1 = vsel %vm3526_vm11, %v3263_v23, %v3590_v15  ;;  %v5318_v29 = vpop.f32.mrb[80].mxu1 }
 0x423   : > { %3719 = vst.msk [vmem:[%s5736_s18 + $0x70] sm:$0xff] %vm3704_vm12, %v6874_v1  ;;  %vm3529_vm13 = vcmp.ge.f32.partialorder %v5318_v29, 0.0  ;;  %v3593_v40 = vmul.f32 0.01, %v5318_v29  ;;  %v3273_v9 = vpop.f32.mrb[81].mxu1 }
 0x424   : > { %vm3528_vm14 = vcmp.ge.f32.partialorder %v3273_v9, 0.0  ;;  %v3592_v61 = vmul.f32 0.01, %v3273_v9 }
 0x425   : > { %v6879_v19 = vsel %vm3529_vm13, %v5318_v29, %v3593_v40 }
 0x426   : > { %3722 = vst.msk [vmem:[%s5736_s18 + $0x88] sm:$0xff] %vm3704_vm12, %v6879_v19  ;;  %v6884_v62 = vsel %vm3528_vm14, %v3273_v9, %v3592_v61  ;;  %v5321_v41 = vpop.f32.mrb[82].mxu1 }
 0x427   : > { %3721 = vst.msk [vmem:[%s5736_s18 + $0x80] sm:$0xff] %vm3704_vm12, %v6884_v62  ;;  %vm3531_vm15 = vcmp.ge.f32.partialorder %v5321_v41, 0.0  ;;  %v3595_v54 = vmul.f32 0.01, %v5321_v41  ;;  %v3283_v30 = vpop.f32.mrb[83].mxu1 }
 0x428   : > { %vm3530_vm0 = vcmp.ge.f32.partialorder %v3283_v30, 0.0  ;;  %v3594_v39 = vmul.f32 0.01, %v3283_v30 }
 0x429   : > { %v6889_v11 = vsel %vm3531_vm15, %v5321_v41, %v3595_v54 }
 0x42a   : > { %3724 = vst.msk [vmem:[%s5736_s18 + $0x98] sm:$0xff] %vm3704_vm12, %v6889_v11  ;;  %v6894_v24 = vsel %vm3530_vm0, %v3283_v30, %v3594_v39  ;;  %v5324_v63 = vpop.f32.mrb[84].mxu1 }
 0x42b   : > { %3723 = vst.msk [vmem:[%s5736_s18 + $0x90] sm:$0xff] %vm3704_vm12, %v6894_v24  ;;  %vm3533_vm1 = vcmp.ge.f32.partialorder %v5324_v63, 0.0  ;;  %v3597_v5 = vmul.f32 0.01, %v5324_v63  ;;  %v3293_v0 = vpop.f32.mrb[85].mxu1 }
 0x42c   : > { %vm3532_vm2 = vcmp.ge.f32.partialorder %v3293_v0, 0.0  ;;  %v3596_v20 = vmul.f32 0.01, %v3293_v0 }
 0x42d   : > { %v6899_v48 = vsel %vm3533_vm1, %v5324_v63, %v3597_v5  ;;  %v3777_v63 = vsel %vm3704_vm12, %v6819_v17, -inf }
 0x42e   : > { %3726 = vst.msk [vmem:[%s5736_s18 + $0xa8] sm:$0xff] %vm3704_vm12, %v6899_v48  ;;  %v6904_v13 = vsel %vm3532_vm2, %v3293_v0, %v3596_v20  ;;  %v5327_v49 = vpop.f32.mrb[86].mxu1  ;;  %v3772_v20 = vsel %vm3704_vm12, %v6799_v42, -inf }
 0x42f   : > { %3725 = vst.msk [vmem:[%s5736_s18 + $0xa0] sm:$0xff] %vm3704_vm12, %v6904_v13  ;;  %vm3535_vm4 = vcmp.ge.f32.partialorder %v5327_v49, 0.0  ;;  %v3599_v31 = vmul.f32 0.01, %v5327_v49  ;;  %v3303_v57 = vpop.f32.mrb[87].mxu1 }
 0x430   : > { %vm3534_vm5 = vcmp.ge.f32.partialorder %v3303_v57, 0.0  ;;  %v3598_v43 = vmul.f32 0.01, %v3303_v57 }
 0x431   : > { %v6909_v12 = vsel %vm3535_vm4, %v5327_v49, %v3599_v31  ;;  %v3771_v49 = vsel %vm3704_vm12, %v6804_v16, -inf }
 0x432   : > { %3728 = vst.msk [vmem:[%s5736_s18 + $0xb8] sm:$0xff] %vm3704_vm12, %v6909_v12  ;;  %v6914_v32 = vsel %vm3534_vm5, %v3303_v57, %v3598_v43  ;;  %v5330_v8 = vpop.f32.mrb[88].mxu1  ;;  %v3774_v57 = vsel %vm3704_vm12, %v6809_v59, -inf  ;;  %v3773_v43 = vsel %vm3704_vm12, %v6814_v25, -inf }
 0x433   : > { %3727 = vst.msk [vmem:[%s5736_s18 + $0xb0] sm:$0xff] %vm3704_vm12, %v6914_v32  ;;  %vm3537_vm6 = vcmp.ge.f32.partialorder %v5330_v8, 0.0  ;;  %v3601_v44 = vmul.f32 0.01, %v5330_v8  ;;  %v3313_v2 = vpop.f32.mrb[89].mxu1 }
 0x434   : > { %vm3536_vm7 = vcmp.ge.f32.partialorder %v3313_v2, 0.0  ;;  %v3600_v3 = vmul.f32 0.01, %v3313_v2 }
 0x435   : > { %v6919_v45 = vsel %vm3537_vm6, %v5330_v8, %v3601_v44  ;;  %v3775_v8 = vsel %vm3704_vm12, %v6824_v26, -inf }
 0x436   : > { %7563 = vst [vmem:[#allocation6_spill] sm:$0xff] %v6919_v45  ;;  %3730 = vst.msk [vmem:[%s5736_s18 + $0xc8] sm:$0xff] %vm3704_vm12, %v6919_v45  ;;  %v6924_v21 = vsel %vm3536_vm7, %v3313_v2, %v3600_v3  ;;  %v5333_v34 = vpop.f32.mrb[90].mxu1  ;;  %v3778_v2 = vmax.f32 %v3772_v20, %v3777_v63  ;;  %v3781_v3 = vsel %vm3704_vm12, %v6829_v51, -inf  ;;  %v3791_v20 = vsel %vm3704_vm12, %v6864_v38, -inf }
 0x437   : > { %3729 = vst.msk [vmem:[%s5736_s18 + $0xc0] sm:$0xff] %vm3704_vm12, %v6924_v21  ;;  %vm3539_vm8 = vcmp.ge.f32.partialorder %v5333_v34, 0.0  ;;  %v3603_v53 = vmul.f32 0.01, %v5333_v34  ;;  %v3323_v46 = vpop.f32.mrb[91].mxu1 }
 0x438   : > { %vm3538_vm9 = vcmp.ge.f32.partialorder %v3323_v46, 0.0  ;;  %v3602_v60 = vmul.f32 0.01, %v3323_v46 }
 0x439   : > { %v6929_v35 = vsel %vm3539_vm8, %v5333_v34, %v3603_v53  ;;  %v3779_v34 = vsel %vm3704_vm12, %v6834_v56, -inf }
 0x43a   : > { %3732 = vst.msk [vmem:[%s5736_s18 + $0xd8] sm:$0xff] %vm3704_vm12, %v6929_v35  ;;  %v6934_v27 = vsel %vm3538_vm9, %v3323_v46, %v3602_v60  ;;  %v5336_v36 = vpop.f32.mrb[92].mxu1  ;;  %v3785_v60 = vsel %vm3704_vm12, %v6839_v22, -inf }
 0x43b   : > { %3731 = vst.msk [vmem:[%s5736_s18 + $0xd0] sm:$0xff] %vm3704_vm12, %v6934_v27  ;;  %vm3541_vm3 = vcmp.ge.f32.partialorder %v5336_v36, 0.0  ;;  %v3605_v18 = vmul.f32 0.01, %v5336_v36  ;;  %v3333_v14 = vpop.f32.mrb[93].mxu1  ;;  %v3819_v33 = vsel %vm3704_vm12, %v6934_v27, -inf }
 0x43c   : > { %vm3540_vm10 = vcmp.ge.f32.partialorder %v3333_v14, 0.0  ;;  %v3604_v50 = vmul.f32 0.01, %v3333_v14 }
 0x43d   : > { %v6939_v28 = vsel %vm3541_vm3, %v5336_v36, %v3605_v18  ;;  %v3783_v36 = vsel %vm3704_vm12, %v6844_v47, -inf }
 0x43e   : > { %3734 = vst.msk [vmem:[%s5736_s18 + $0xe8] sm:$0xff] %vm3704_vm12, %v6939_v28  ;;  %v6944_v10 = vsel %vm3540_vm10, %v3333_v14, %v3604_v50  ;;  %v5339_v55 = vpop.f32.mrb[94].mxu1  ;;  %v3776_v50 = vmax.f32 %v3771_v49, %v3775_v8 }
 0x43f   : > { %3733 = vst.msk [vmem:[%s5736_s18 + $0xe0] sm:$0xff] %vm3704_vm12, %v6944_v10  ;;  %vm3543_vm11 = vcmp.ge.f32.partialorder %v5339_v55, 0.0  ;;  %v3607_v7 = vmul.f32 0.01, %v5339_v55  ;;  %v3343_v6 = vpop.f32.mrb[95].mxu1 }
 0x440   : > { %vm3542_vm13 = vcmp.ge.f32.partialorder %v3343_v6, 0.0  ;;  %v3606_v23 = vmul.f32 0.01, %v3343_v6 }
 0x441   : > { %v6949_v15 = vsel %vm3543_vm11, %v5339_v55, %v3607_v7  ;;  %v3789_v55 = vsel %vm3704_vm12, %v6849_v4, -inf }
 0x442   : > { %7564 = vst [vmem:[#allocation7_spill] sm:$0xff] %v6949_v15  ;;  %3736 = vst.msk [vmem:[%s5736_s18 + $0xf8] sm:$0xff] %vm3704_vm12, %v6949_v15  ;;  %v6954_v29 = vsel %vm3542_vm13, %v3343_v6, %v3606_v23  ;;  %v5342_v40 = vpop.f32.mrb[96].mxu1  ;;  %v3782_v6 = vmax.f32 %v3774_v57, %v3781_v3  ;;  %v3780_v23 = vmax.f32 %v3773_v43, %v3779_v34  ;;  %v3797_v43 = vsel %vm3704_vm12, %v6869_v58, -inf }
 0x443   : > { %7565 = vst [vmem:[#allocation8_spill] sm:$0xff] %v6954_v29  ;;  %3735 = vst.msk [vmem:[%s5736_s18 + $0xf0] sm:$0xff] %vm3704_vm12, %v6954_v29  ;;  %vm3545_vm14 = vcmp.ge.f32.partialorder %v5342_v40, 0.0  ;;  %v3609_v9 = vmul.f32 0.01, %v5342_v40  ;;  %v3353_v61 = vpop.f32.mrb[97].mxu1 }
 0x444   : > { %vm3544_vm15 = vcmp.ge.f32.partialorder %v3353_v61, 0.0  ;;  %v3608_v41 = vmul.f32 0.01, %v3353_v61  ;;  %v3795_v3 = vsel %vm3704_vm12, %v6874_v1, -inf  ;;  %v3801_v34 = vsel %vm3704_vm12, %v6879_v19, -inf }
 0x445   : > { %v6959_v54 = vsel %vm3545_vm14, %v5342_v40, %v3609_v9  ;;  %v3787_v40 = vsel %vm3704_vm12, %v6854_v37, -inf }
 0x446   : > { %7566 = vst [vmem:[#allocation9_spill] sm:$0xff] %v6959_v54  ;;  %3738 = vst.msk [vmem:[%s5736_s18 + $0x108] sm:$0xff] %vm3704_vm12, %v6959_v54  ;;  %v6964_v30 = vsel %vm3544_vm15, %v3353_v61, %v3608_v41  ;;  %v5345_v39 = vpop.f32.mrb[98].mxu1  ;;  %v3786_v61 = vmax.f32 %v3778_v2, %v3785_v60  ;;  %v3784_v41 = vmax.f32 %v3776_v50, %v3783_v36  ;;  %v3799_v36 = vsel %vm3704_vm12, %v6884_v62, -inf }
 0x447   : > { %7567 = vst [vmem:[#allocation10_spill] sm:$0xff] %v6964_v30  ;;  %3737 = vst.msk [vmem:[%s5736_s18 + $0x100] sm:$0xff] %vm3704_vm12, %v6964_v30  ;;  %vm3547_vm0 = vcmp.ge.f32.partialorder %v5345_v39, 0.0  ;;  %v3611_v5 = vmul.f32 0.01, %v5345_v39  ;;  %v3363_v0 = vpop.f32.mrb[99].mxu1  ;;  %v3788_v57 = vmax.f32 %v3780_v23, %v3787_v40 }
 0x448   : > { %vm3546_vm1 = vcmp.ge.f32.partialorder %v3363_v0, 0.0  ;;  %v3610_v31 = vmul.f32 0.01, %v3363_v0  ;;  %v3792_v60 = vmax.f32 %v3784_v41, %v3791_v20 }
 0x449   : > { %v6981_v44 = vsel %vm3547_vm0, %v5345_v39, %v3611_v5  ;;  %v3793_v39 = vsel %vm3704_vm12, %v6859_v52, -inf  ;;  %v3796_v40 = vmax.f32 %v3788_v57, %v3795_v3  ;;  %v3817_v3 = vsel %vm3704_vm12, %v6919_v45, -inf }
 0x44a   : > { %7568 = vst [vmem:[#allocation11_spill] sm:$0xff] %v6981_v44  ;;  %3740 = vst.msk [vmem:[%s5736_s18 + $0x118] sm:$0xff] %vm3704_vm12, %v6981_v44  ;;  %v6990_v53 = vsel %vm3546_vm1, %v3363_v0, %v3610_v31  ;;  %v5348_v46 = vpop.f32.mrb[100].mxu1  ;;  %v3790_v0 = vmax.f32 %v3782_v6, %v3789_v55  ;;  %v3794_v2 = vmax.f32 %v3786_v61, %v3793_v39 }
 0x44b   : > { %7569 = vst [vmem:[#allocation12_spill] sm:$0xff] %v6990_v53  ;;  %3739 = vst.msk [vmem:[%s5736_s18 + $0x110] sm:$0xff] %vm3704_vm12, %v6990_v53  ;;  %vm3549_vm2 = vcmp.ge.f32.partialorder %v5348_v46, 0.0  ;;  %v3613_v18 = vmul.f32 0.01, %v5348_v46  ;;  %v3373_v14 = vpop.f32.mrb[101].mxu1  ;;  %v3800_v39 = vmax.f32 %v3792_v60, %v3799_v36 }
 0x44c   : > { %vm3548_vm4 = vcmp.ge.f32.partialorder %v3373_v14, 0.0  ;;  %v3612_v7 = vmul.f32 0.01, %v3373_v14  ;;  %v3798_v55 = vmax.f32 %v3790_v0, %v3797_v43  ;;  %v3802_v61 = vmax.f32 %v3794_v2, %v3801_v34 }
 0x44d   : > { %v7003_v9 = vsel %vm3549_vm2, %v5348_v46, %v3613_v18  ;;  %v3805_v18 = vsel %vm3704_vm12, %v6889_v11, -inf  ;;  %v3809_v0 = vsel %vm3704_vm12, %v6899_v48, -inf  ;;  %v3813_v43 = vsel %vm3704_vm12, %v6909_v12, -inf }
 0x44e   : > { %7570 = vst [vmem:[#allocation13_spill] sm:$0xff] %v7003_v9  ;;  %3742 = vst.msk [vmem:[%s5736_s18 + $0x128] sm:$0xff] %vm3704_vm12, %v7003_v9  ;;  %v7010_v63 = vsel %vm3548_vm4, %v3373_v14, %v3612_v7  ;;  %v5351_v5 = vpop.f32.mrb[102].mxu1  ;;  %v3803_v7 = vsel %vm3704_vm12, %v6894_v24, -inf  ;;  %v3811_v2 = vsel %vm3704_vm12, %v6914_v32, -inf  ;;  %v3810_v36 = vmax.f32 %v3802_v61, %v3809_v0 }
 0x44f   : > { %7571 = vst [vmem:[#allocation14_spill] sm:$0xff] %v7010_v63  ;;  %3741 = vst.msk [vmem:[%s5736_s18 + $0x120] sm:$0xff] %vm3704_vm12, %v7010_v63  ;;  %vm3551_vm5 = vcmp.ge.f32.partialorder %v5351_v5, 0.0  ;;  %v3615_v49 = vmul.f32 0.01, %v5351_v5  ;;  %v3383_v31 = vpop.f32.mrb[103].mxu1 }
 0x450   : > { %vm3550_vm6 = vcmp.ge.f32.partialorder %v3383_v31, 0.0  ;;  %v3614_v8 = vmul.f32 0.01, %v3383_v31 }
 0x451   : > { %v7023_v46 = vsel %vm3551_vm5, %v5351_v5, %v3615_v49  ;;  %v3806_v5 = vmax.f32 %v3798_v55, %v3805_v18  ;;  %v3804_v49 = vmax.f32 %v3796_v40, %v3803_v7  ;;  %v3815_v18 = vsel %vm3704_vm12, %v6924_v21, -inf }
 0x452   : > { %7572 = vst [vmem:[#allocation15_spill] sm:$0xff] %v7023_v46  ;;  %3744 = vst.msk [vmem:[%s5736_s18 + $0x138] sm:$0xff] %vm3704_vm12, %v7023_v46  ;;  %v7032_v14 = vsel %vm3550_vm6, %v3383_v31, %v3614_v8  ;;  %v5354_v50 = vpop.f32.mrb[104].mxu1  ;;  %v3807_v31 = vsel %vm3704_vm12, %v6904_v13, -inf }
 0x453   : > { %7573 = vst [vmem:[#allocation16_spill] sm:$0xff] %v7032_v14  ;;  %3743 = vst.msk [vmem:[%s5736_s18 + $0x130] sm:$0xff] %vm3704_vm12, %v7032_v14  ;;  %vm3553_vm7 = vcmp.ge.f32.partialorder %v5354_v50, 0.0  ;;  %v3617_v6 = vmul.f32 0.01, %v5354_v50  ;;  %v3393_v23 = vpop.f32.mrb[105].mxu1  ;;  %v3808_v55 = vmax.f32 %v3800_v39, %v3807_v31  ;;  %v3814_v7 = vmax.f32 %v3806_v5, %v3813_v43 }
 0x454   : > { %vm3552_vm8 = vcmp.ge.f32.partialorder %v3393_v23, 0.0  ;;  %v3616_v41 = vmul.f32 0.01, %v3393_v23  ;;  %v3812_v40 = vmax.f32 %v3804_v49, %v3811_v2  ;;  %v3825_v39 = vsel %vm3704_vm12, %v6939_v28, -inf }
 0x455   : > { %v7041_v20 = vsel %vm3553_vm7, %v5354_v50, %v3617_v6  ;;  %v3821_v6 = vsel %vm3704_vm12, %v6929_v35, -inf  ;;  %v3816_v45 = vmax.f32 %v3808_v55, %v3815_v18  ;;  %v3823_v43 = vsel %vm3704_vm12, %v6944_v10, -inf }
 0x456   : > { %7574 = vst [vmem:[#allocation17_spill] sm:$0xff] %v7041_v20  ;;  %3746 = vst.msk [vmem:[%s5736_s18 + $0x148] sm:$0xff] %vm3704_vm12, %v7041_v20  ;;  %v7050_v57 = vsel %vm3552_vm8, %v3393_v23, %v3616_v41  ;;  %v5357_v8 = vpop.f32.mrb[106].mxu1  ;;  %v3818_v41 = vmax.f32 %v3810_v36, %v3817_v3  ;;  %v3822_v31 = vmax.f32 %v3814_v7, %v3821_v6  ;;  %v3829_v3 = vsel %vm3704_vm12, %v6949_v15, -inf }
 0x457   : > { %7575 = vst [vmem:[#allocation18_spill] sm:$0xff] %v7050_v57  ;;  %3745 = vst.msk [vmem:[%s5736_s18 + $0x140] sm:$0xff] %vm3704_vm12, %v7050_v57  ;;  %vm3555_vm9 = vcmp.ge.f32.partialorder %v5357_v8, 0.0  ;;  %v3619_v34 = vmul.f32 0.01, %v5357_v8  ;;  %v3403_v60 = vpop.f32.mrb[107].mxu1  ;;  %v3820_v2 = vmax.f32 %v3812_v40, %v3819_v33  ;;  %v3824_v7 = vmax.f32 %v3816_v45, %v3823_v43 }
 0x458   : > { %vm3554_vm3 = vcmp.ge.f32.partialorder %v3403_v60, 0.0  ;;  %v3618_v50 = vmul.f32 0.01, %v3403_v60  ;;  %v3826_v36 = vmax.f32 %v3818_v41, %v3825_v39  ;;  %v3833_v18 = vsel %vm3704_vm12, %v6959_v54, -inf }
 0x459   : > { %v7063_v23 = vsel %vm3555_vm9, %v5357_v8, %v3619_v34  ;;  %v3827_v34 = vsel %vm3704_vm12, %v6954_v29, -inf  ;;  %v3837_v6 = vsel %vm3704_vm12, %v6981_v44, -inf  ;;  %v3835_v45 = vsel %vm3704_vm12, %v6990_v53, -inf  ;;  %v7248_v29 = vld [vmem:[#allocation3] sm:$0x1] }
 0x45a   : > { %7576 = vst [vmem:[#allocation19_spill] sm:$0xff] %v7063_v23  ;;  %3748 = vst.msk [vmem:[%s5736_s18 + $0x158] sm:$0xff] %vm3704_vm12, %v7063_v23  ;;  %v7070_v61 = vsel %vm3554_vm3, %v3403_v60, %v3618_v50  ;;  %v5360_v0 = vpop.f32.mrb[108].mxu1  ;;  %v3831_v50 = vsel %vm3704_vm12, %v6964_v30, -inf  ;;  %v3828_v39 = vmax.f32 %v3820_v2, %v3827_v34  ;;  %v3834_v54 = vmax.f32 %v3826_v36, %v3833_v18 }
 0x45b   : > { %7577 = vst [vmem:[#allocation20_spill] sm:$0xff] %v7070_v61  ;;  %3747 = vst.msk [vmem:[%s5736_s18 + $0x150] sm:$0xff] %vm3704_vm12, %v7070_v61  ;;  %vm3557_vm10 = vcmp.ge.f32.partialorder %v5360_v0, 0.0  ;;  %v3621_v5 = vmul.f32 0.01, %v5360_v0  ;;  %v3413_v49 = vpop.f32.mrb[109].mxu1 }
 0x45c   : > { %vm3556_vm11 = vcmp.ge.f32.partialorder %v3413_v49, 0.0  ;;  %v3620_v8 = vmul.f32 0.01, %v3413_v49  ;;  %v3841_v44 = vsel %vm3704_vm12, %v7003_v9, -inf  ;;  %v3839_v30 = vsel %vm3704_vm12, %v7010_v63, -inf }
 0x45d   : > { %v7083_v60 = vsel %vm3557_vm10, %v5360_v0, %v3621_v5  ;;  %v3830_v0 = vmax.f32 %v3822_v31, %v3829_v3  ;;  %v3845_v3 = vsel %vm3704_vm12, %v7023_v46, -inf  ;;  %v3843_v34 = vsel %vm3704_vm12, %v7032_v14, -inf }
 0x45e   : > { %7578 = vst [vmem:[#allocation21_spill] sm:$0xff] %v7083_v60  ;;  %3750 = vst.msk [vmem:[%s5736_s18 + $0x168] sm:$0xff] %vm3704_vm12, %v7083_v60  ;;  %v7092_v55 = vsel %vm3556_vm11, %v3413_v49, %v3620_v8  ;;  %v5363_v33 = vpop.f32.mrb[110].mxu1  ;;  %v3832_v49 = vmax.f32 %v3824_v7, %v3831_v50  ;;  %v3836_v50 = vmax.f32 %v3828_v39, %v3835_v45  ;;  %v3847_v46 = vsel %vm3704_vm12, %v7050_v57, -inf }
 0x45f   : > { %7579 = vst [vmem:[#allocation22_spill] sm:$0xff] %v7092_v55  ;;  %3749 = vst.msk [vmem:[%s5736_s18 + $0x160] sm:$0xff] %vm3704_vm12, %v7092_v55  ;;  %vm3559_vm13 = vcmp.ge.f32.partialorder %v5363_v33, 0.0  ;;  %v3623_v40 = vmul.f32 0.01, %v5363_v33  ;;  %v3423_v41 = vpop.f32.mrb[111].mxu1  ;;  %v3838_v8 = vmax.f32 %v3830_v0, %v3837_v6  ;;  %v3842_v6 = vmax.f32 %v3834_v54, %v3841_v44 }
 0x460   : > { %vm3558_vm14 = vcmp.ge.f32.partialorder %v3423_v41, 0.0  ;;  %v3622_v5 = vmul.f32 0.01, %v3423_v41  ;;  %v3857_v44 = vsel %vm3704_vm12, %v7083_v60, -inf  ;;  %v7582_v9 = vlaneseq }
 0x461   : > { %v7101_v43 = vsel %vm3559_vm13, %v5363_v33, %v3623_v40  ;;  %v3849_v33 = vsel %vm3704_vm12, %v7041_v20, -inf  ;;  %v3840_v40 = vmax.f32 %v3832_v49, %v3839_v30  ;;  %v3846_v0 = vmax.f32 %v3838_v8, %v3845_v3 }
 0x462   : > { %7580 = vst [vmem:[#allocation23_spill] sm:$0xff] %v7101_v43  ;;  %3752 = vst.msk [vmem:[%s5736_s18 + $0x178] sm:$0xff] %vm3704_vm12, %v7101_v43  ;;  %v7110_v31 = vsel %vm3558_vm14, %v3423_v41, %v3622_v5  ;;  %v5366_v2 = vpop.f32.mrb[112].mxu1  ;;  %v3844_v5 = vmax.f32 %v3836_v50, %v3843_v34  ;;  %v3850_v45 = vmax.f32 %v3842_v6, %v3849_v33  ;;  %v3853_v20 = vsel %vm3704_vm12, %v7063_v23, -inf }
 0x463   : > { %7581 = vst [vmem:[#allocation24_spill] sm:$0xff] %v7110_v31  ;;  %3751 = vst.msk [vmem:[%s5736_s18 + $0x170] sm:$0xff] %vm3704_vm12, %v7110_v31  ;;  %vm3561_vm15 = vcmp.ge.f32.partialorder %v5366_v2, 0.0  ;;  %v3625_v36 = vmul.f32 0.01, %v5366_v2  ;;  %v3433_v18 = vpop.f32.mrb[113].mxu1 }
 0x464   : > { %vm3560_vm0 = vcmp.ge.f32.partialorder %v3433_v18, 0.0  ;;  %v3624_v7 = vmul.f32 0.01, %v3433_v18  ;;  %v3855_v49 = vsel %vm3704_vm12, %v7092_v55, -inf  ;;  %v3851_v3 = vsel %vm3704_vm12, %v7070_v61, -inf }
 0x465   : > { %v7121_v41 = vsel %vm3561_vm15, %v5366_v2, %v3625_v36  ;;  %v3848_v2 = vmax.f32 %v3840_v40, %v3847_v46  ;;  %v3861_v34 = vsel %vm3704_vm12, %v7101_v43, -inf  ;;  %v3858_v6 = vmax.f32 %v3850_v45, %v3857_v44 }
 0x466   : > { %3754 = vst.msk [vmem:[%s5736_s18 + $0x188] sm:$0xff] %vm3704_vm12, %v7121_v41  ;;  %v7128_v14 = vsel %vm3560_vm0, %v3433_v18, %v3624_v7  ;;  %v5369_v39 = vpop.f32.mrb[114].mxu1  ;;  %v3854_v18 = vmax.f32 %v3846_v0, %v3853_v20  ;;  %v3865_v50 = vsel %vm3704_vm12, %v7121_v41, -inf  ;;  %v3859_v60 = vsel %vm3704_vm12, %v7110_v31, -inf }
 0x467   : > { %3753 = vst.msk [vmem:[%s5736_s18 + $0x180] sm:$0xff] %vm3704_vm12, %v7128_v14  ;;  %vm3563_vm1 = vcmp.ge.f32.partialorder %v5369_v39, 0.0  ;;  %v3627_v54 = vmul.f32 0.01, %v5369_v39  ;;  %v3443_v30 = vpop.f32.mrb[115].mxu1  ;;  %v3863_v33 = vsel %vm3704_vm12, %v7128_v14, -inf  ;;  %v3856_v40 = vmax.f32 %v3848_v2, %v3855_v49 }
 0x468   : > { %vm3562_vm2 = vcmp.ge.f32.partialorder %v3443_v30, 0.0  ;;  %v3626_v8 = vmul.f32 0.01, %v3443_v30  ;;  %v3910_v63 = vshrl.u32 %v7582_v9, 7  ;;  %vm4239_vm0 = vcmask 16384  }
 0x469   : > { %v7143_v36 = vsel %vm3563_vm1, %v5369_v39, %v3627_v54  ;;  %v3852_v39 = vmax.f32 %v3844_v5, %v3851_v3  ;;  %v3862_v54 = vmax.f32 %v3854_v18, %v3861_v34 }
 0x46a   : > { %3756 = vst.msk [vmem:[%s5736_s18 + $0x198] sm:$0xff] %vm3704_vm12, %v7143_v36  ;;  %v7152_v7 = vsel %vm3562_vm2, %v3443_v30, %v3626_v8  ;;  %v5372_v46 = vpop.f32.mrb[116].mxu1  ;;  %v3866_v30 = vmax.f32 %v3858_v6, %v3865_v50  ;;  %v3864_v8 = vmax.f32 %v3856_v40, %v3863_v33  ;;  %v3869_v45 = vsel %vm3704_vm12, %v7143_v36, -inf }
 0x46b   : > { %3755 = vst.msk [vmem:[%s5736_s18 + $0x190] sm:$0xff] %vm3704_vm12, %v7152_v7  ;;  %vm3565_vm4 = vcmp.ge.f32.partialorder %v5372_v46, 0.0  ;;  %v3629_v20 = vmul.f32 0.01, %v5372_v46  ;;  %v3453_v0 = vpop.f32.mrb[117].mxu1  ;;  %v3867_v44 = vsel %vm3704_vm12, %v7152_v7, -inf  ;;  %v3860_v33 = vmax.f32 %v3852_v39, %v3859_v60 }
 0x46c   : > { %vm3564_vm5 = vcmp.ge.f32.partialorder %v3453_v0, 0.0  ;;  %v3628_v43 = vmul.f32 0.01, %v3453_v0  ;;  %v3870_v40 = vmax.f32 %v3862_v54, %v3869_v45 }
 0x46d   : > { %v7159_v55 = vsel %vm3565_vm4, %v5372_v46, %v3629_v20 }
 0x46e   : > { %3758 = vst.msk [vmem:[%s5736_s18 + $0x1a8] sm:$0xff] %vm3704_vm12, %v7159_v55  ;;  %v3873_v5 = vsel %vm3704_vm12, %v7159_v55, -inf  ;;  %v7170_v49 = vsel %vm3564_vm5, %v3453_v0, %v3628_v43  ;;  %v5375_v2 = vpop.f32.mrb[118].mxu1  ;;  %v3868_v43 = vmax.f32 %v3860_v33, %v3867_v44 }
 0x46f   : > { %v3874_v3 = vmax.f32 %v3866_v30, %v3873_v5  ;;  %3757 = vst.msk [vmem:[%s5736_s18 + $0x1a0] sm:$0xff] %vm3704_vm12, %v7170_v49  ;;  %v3871_v34 = vsel %vm3704_vm12, %v7170_v49, -inf  ;;  %vm3567_vm6 = vcmp.ge.f32.partialorder %v5375_v2, 0.0  ;;  %v3631_v18 = vmul.f32 0.01, %v5375_v2  ;;  %v3463_v50 = vpop.f32.mrb[119].mxu1 }
 0x470   : > { %v3872_v46 = vmax.f32 %v3864_v8, %v3871_v34  ;;  %vm3566_vm7 = vcmp.ge.f32.partialorder %v3463_v50, 0.0  ;;  %v3630_v6 = vmul.f32 0.01, %v3463_v50 }
 0x471   : > { %v7177_v20 = vsel %vm3567_vm6, %v5375_v2, %v3631_v18 }
 0x472   : > { %3760 = vst.msk [vmem:[%s5736_s18 + $0x1b8] sm:$0xff] %vm3704_vm12, %v7177_v20  ;;  %v3877_v0 = vsel %vm3704_vm12, %v7177_v20, -inf  ;;  %v7184_v30 = vsel %vm3566_vm7, %v3463_v50, %v3630_v6  ;;  %v5378_v5 = vpop.f32.mrb[120].mxu1 }
 0x473   : > { %v3878_v31 = vmax.f32 %v3870_v40, %v3877_v0  ;;  %3759 = vst.msk [vmem:[%s5736_s18 + $0x1b0] sm:$0xff] %vm3704_vm12, %v7184_v30  ;;  %v3875_v60 = vsel %vm3704_vm12, %v7184_v30, -inf  ;;  %vm3569_vm8 = vcmp.ge.f32.partialorder %v5378_v5, 0.0  ;;  %v3633_v39 = vmul.f32 0.01, %v5378_v5  ;;  %v3473_v54 = vpop.f32.mrb[121].mxu1 }
 0x474   : > { %v3876_v8 = vmax.f32 %v3868_v43, %v3875_v60  ;;  %vm3568_vm9 = vcmp.ge.f32.partialorder %v3473_v54, 0.0  ;;  %v3632_v45 = vmul.f32 0.01, %v3473_v54 }
 0x475   : > { %v7191_v44 = vsel %vm3569_vm8, %v5378_v5, %v3633_v39 }
 0x476   : > { %3762 = vst.msk [vmem:[%s5736_s18 + $0x1c8] sm:$0xff] %vm3704_vm12, %v7191_v44  ;;  %v3881_v2 = vsel %vm3704_vm12, %v7191_v44, -inf  ;;  %v7198_v34 = vsel %vm3568_vm9, %v3473_v54, %v3632_v45  ;;  %v5381_v18 = vpop.f32.mrb[122].mxu1 }
 0x477   : > { %v3882_v50 = vmax.f32 %v3874_v3, %v3881_v2  ;;  %3761 = vst.msk [vmem:[%s5736_s18 + $0x1c0] sm:$0xff] %vm3704_vm12, %v7198_v34  ;;  %v3879_v33 = vsel %vm3704_vm12, %v7198_v34, -inf  ;;  %vm3571_vm3 = vcmp.ge.f32.partialorder %v5381_v18, 0.0  ;;  %v3635_v6 = vmul.f32 0.01, %v5381_v18  ;;  %v3483_v40 = vpop.f32.mrb[123].mxu1 }
 0x478   : > { %v3880_v43 = vmax.f32 %v3872_v46, %v3879_v33  ;;  %vm3570_vm10 = vcmp.ge.f32.partialorder %v3483_v40, 0.0  ;;  %v3634_v0 = vmul.f32 0.01, %v3483_v40 }
 0x479   : > { %v7205_v5 = vsel %vm3571_vm3, %v5381_v18, %v3635_v6 }
 0x47a   : > { %3764 = vst.msk [vmem:[%s5736_s18 + $0x1d8] sm:$0xff] %vm3704_vm12, %v7205_v5  ;;  %v3885_v3 = vsel %vm3704_vm12, %v7205_v5, -inf  ;;  %v7212_v60 = vsel %vm3570_vm10, %v3483_v40, %v3634_v0  ;;  %v5384_v39 = vpop.f32.mrb[124].mxu1 }
 0x47b   : > { %v3886_v54 = vmax.f32 %v3878_v31, %v3885_v3  ;;  %3763 = vst.msk [vmem:[%s5736_s18 + $0x1d0] sm:$0xff] %vm3704_vm12, %v7212_v60  ;;  %v3883_v46 = vsel %vm3704_vm12, %v7212_v60, -inf  ;;  %vm3573_vm11 = vcmp.ge.f32.partialorder %v5384_v39, 0.0  ;;  %v3637_v45 = vmul.f32 0.01, %v5384_v39  ;;  %v3493_v2 = vpop.f32.mrb[125].mxu1 }
 0x47c   : > { %v3884_v18 = vmax.f32 %v3876_v8, %v3883_v46  ;;  %vm3572_vm13 = vcmp.ge.f32.partialorder %v3493_v2, 0.0  ;;  %v3636_v33 = vmul.f32 0.01, %v3493_v2 }
 0x47d   : > { %v7219_v6 = vsel %vm3573_vm11, %v5384_v39, %v3637_v45 }
 0x47e   : > { %3766 = vst.msk [vmem:[%s5736_s18 + $0x1e8] sm:$0xff] %vm3704_vm12, %v7219_v6  ;;  %v3889_v31 = vsel %vm3704_vm12, %v7219_v6, -inf  ;;  %v7226_v40 = vsel %vm3572_vm13, %v3493_v2, %v3636_v33  ;;  %v5387_v0 = vpop.f32.mrb[126].mxu1 }
 0x47f   : > { %v3890_v3 = vmax.f32 %v3882_v50, %v3889_v31  ;;  %3765 = vst.msk [vmem:[%s5736_s18 + $0x1e0] sm:$0xff] %vm3704_vm12, %v7226_v40  ;;  %v3887_v8 = vsel %vm3704_vm12, %v7226_v40, -inf  ;;  %vm3575_vm14 = vcmp.ge.f32.partialorder %v5387_v0, 0.0  ;;  %v3639_v39 = vmul.f32 0.01, %v5387_v0  ;;  %v3503_v46 = vpop.f32.mrb[127].mxu1 }
 0x480   : > { %v3888_v45 = vmax.f32 %v3880_v43, %v3887_v8  ;;  %vm3574_vm15 = vcmp.ge.f32.partialorder %v3503_v46, 0.0  ;;  %v3638_v23 = vmul.f32 0.01, %v3503_v46 }
 0x481   : > { %v7233_v61 = vsel %vm3575_vm14, %v5387_v0, %v3639_v39 }
 0x482   : > { %v3895_v57 = vmax.f32 %v3888_v45, %v3890_v3  ;;  %3768 = vst.msk [vmem:[%s5736_s18 + $0x1f8] sm:$0xff] %vm3704_vm12, %v7233_v61  ;;  %v3893_v50 = vsel %vm3704_vm12, %v7233_v61, -inf  ;;  %v7240_v2 = vsel %vm3574_vm15, %v3503_v46, %v3638_v23  ;;  %v3911_v23 = vsub.s32 0, %v3910_v63 }
 0x483   : > { %v3894_v33 = vmax.f32 %v3886_v54, %v3893_v50  ;;  %3767 = vst.msk [vmem:[%s5736_s18 + $0x1f0] sm:$0xff] %vm3704_vm12, %v7240_v2  ;;  %v3891_v43 = vsel %vm3704_vm12, %v7240_v2, -inf  ;;  %s5641_s18 = smov [#allocation3]  }
 0x484   : > { %v3892_v31 = vmax.f32 %v3884_v18, %v3891_v43  ;;  %s4267_s17 = sshll.u32 %s5641_s18, 4  ;;  %s4268_s17 = int_to_ptr.vmem [resolvable:$true] %s4267_s17 }
 0x485   : > { %s5599_s19 = scalar_lea.vmem %s4268_s17, 32  ;;  %p5606_p9 = scmp.lt.s32.totalorder %s4268_s17, %s4268_s17 }
 0x486   : > { %v3896_v8 = vmax.f32 %v3892_v31, %v3894_v33  ;;  %p5600_p6 = scmp.ne.s32.totalorder %s4268_s17, %s5599_s19  ;;  %p5607_p10 = scmp.lt.s32.totalorder %s5599_s19, %s5599_s19 }
 0x488   : > { %v3897_v0 = vmax.f32 %v3895_v57, %v3896_v8  ;;  %p5601_p7 = pnand %p5600_p6, %p5452_p5  ;;  %p5608_p11 = por %p5607_p10, %p5606_p9 }
 0x48a   : > { %v3898_v39 = vrot.slane %v3897_v0, 4  ;;  %p5602_p8 = pneg %p5601_p7 }
 0x48c   : > { %v3899_v3 = vmax.f32 %v3897_v0, %v3898_v39  ;;  %p5609_p12 = pnand %p5608_p11, %p5602_p8 }
 0x48e   : > { %v3900_v45 = vrot.slane %v3899_v3, 2 }
 0x490   : > { %v3901_v53 = vmax.f32 %v3899_v3, %v3900_v45 }
 0x492   : > { %v3902_v15 = vrot.slane %v3901_v53, 1 }
 0x494   : > { %v3903_v54 = vmax.f32 %v3901_v53, %v3902_v15 }
 0x496   : > { %v7251_v46 = vmax.f32 %v7248_v29, %v3903_v54 }
 0x498   : > { %v7254_v50 = vrot.slane %v7251_v46, %v3911_v23  ;;  %4240 = vst.msk [vmem:[#allocation3] sm:$0x1] %vm4239_vm0, %v7251_v46 }
 0x49a   : > { %v3961_v9 = vsub.f32 %v7128_v14, %v7254_v50  ;;  %v3962_v63 = vsub.f32 %v7121_v41, %v7254_v50  ;;  %v3963_v15 = vsub.f32 %v7152_v7, %v7254_v50  ;;  %v3964_v53 = vsub.f32 %v7143_v36, %v7254_v50 }
 0x49b   : > { %v3965_v18 = vsub.f32 %v7170_v49, %v7254_v50  ;;  %v3966_v33 = vsub.f32 %v7159_v55, %v7254_v50  ;;  %v3967_v43 = vsub.f32 %v7184_v30, %v7254_v50  ;;  %v3913_v45 = vsub.f32 %v6804_v16, %v7254_v50 }
 0x49c   : > { %v3914_v0 = vsub.f32 %v6799_v42, %v7254_v50  ;;  %v3915_v3 = vsub.f32 %v6814_v25, %v7254_v50  ;;  %v3916_v16 = vsub.f32 %v6809_v59, %v7254_v50  ;;  %v3917_v54 = vsub.f32 %v6824_v26, %v7254_v50 }
 0x49d   : > { %v3977_v8 = vmul.f32 1.442695, %v3913_v45  ;;  %v3918_v57 = vsub.f32 %v6819_v17, %v7254_v50  ;;  %v3919_v39 = vsub.f32 %v6834_v56, %v7254_v50  ;;  %v3920_v45 = vsub.f32 %v6829_v51, %v7254_v50 }
 0x49e   : > { %v3979_v23 = vmul.f32 1.442695, %v3914_v0  ;;  %v3981_v31 = vmul.f32 1.442695, %v3915_v3  ;;  %v3983_v42 = vmul.f32 1.442695, %v3916_v16  ;;  %v3921_v26 = vsub.f32 %v6844_v47, %v7254_v50 }
 0x49f   : > { %5469 = vpow2.f32 %v3977_v8  ;;  %v3985_v25 = vmul.f32 1.442695, %v3917_v54  ;;  %v3987_v59 = vmul.f32 1.442695, %v3918_v57  ;;  %v3989_v8 = vmul.f32 1.442695, %v3919_v39 }
 0x4a0   : > { %5471 = vpow2.f32 %v3979_v23  ;;  %v3922_v17 = vsub.f32 %v6839_v22, %v7254_v50  ;;  %v3991_v0 = vmul.f32 1.442695, %v3920_v45  ;;  %v3923_v56 = vsub.f32 %v6854_v37, %v7254_v50 }
 0x4a1   : > { %5473 = vpow2.f32 %v3981_v31  ;;  %v3993_v31 = vmul.f32 1.442695, %v3921_v26  ;;  %v3924_v57 = vsub.f32 %v6849_v4, %v7254_v50  ;;  %v3925_v16 = vsub.f32 %v6864_v38, %v7254_v50 }
 0x4a2   : > { %5475 = vpow2.f32 %v3983_v42  ;;  %v3995_v47 = vmul.f32 1.442695, %v3922_v17  ;;  %v3997_v42 = vmul.f32 1.442695, %v3923_v56 }
 0x4a3   : > { %5477 = vpow2.f32 %v3985_v25  ;;  %v3999_v4 = vmul.f32 1.442695, %v3924_v57  ;;  %v4001_v38 = vmul.f32 1.442695, %v3925_v16 }
 0x4a4   : > { %5479 = vpow2.f32 %v3987_v59  ;;  %v3926_v59 = vsub.f32 %v6859_v52, %v7254_v50 }
 0x4a5   : > { %5481 = vpow2.f32 %v3989_v8 }
 0x4a6   : > { %5483 = vpow2.f32 %v3991_v0  ;;  %v3927_v0 = vsub.f32 %v6874_v1, %v7254_v50  ;;  %v4003_v52 = vmul.f32 1.442695, %v3926_v59  ;;  %v3931_v59 = vsub.f32 %v6894_v24, %v7254_v50 }
 0x4a7   : > { %5485 = vpow2.f32 %v3993_v31  ;;  %v3928_v31 = vsub.f32 %v6869_v58, %v7254_v50 }
 0x4a8   : > { %5487 = vpow2.f32 %v3995_v47  ;;  %v4005_v1 = vmul.f32 1.442695, %v3927_v0  ;;  %v4013_v24 = vmul.f32 1.442695, %v3931_v59 }
 0x4a9   : > { %v5470_v3 = vpop.eup %5469  ;;  %5489 = vpow2.f32 %v3997_v42  ;;  %v3930_v42 = vsub.f32 %v6879_v19, %v7254_v50  ;;  %v4007_v58 = vmul.f32 1.442695, %v3928_v31 }
 0x4aa   : > { %v5472_v23 = vpop.eup %5471  ;;  %v4105_v39 = vsel %vm3704_vm12, %v5470_v3, 0.0  ;;  %5491 = vpow2.f32 %v3999_v4 }
 0x4ab   : > { %v5474_v51 = vpop.eup %5473  ;;  %v4106_v54 = vsel %vm3704_vm12, %v5472_v23, 0.0  ;;  %5493 = vpow2.f32 %v4001_v38  ;;  %v4011_v19 = vmul.f32 1.442695, %v3930_v42  ;;  %v3936_v42 = vsub.f32 %v6909_v12, %v7254_v50 }
 0x4ac   : > { %v5476_v22 = vpop.eup %5475  ;;  %v4107_v25 = vadd.f32 %v4106_v54, %v4105_v39  ;;  %v4108_v37 = vsel %vm3704_vm12, %v5474_v51, 0.0  ;;  %v3929_v39 = vsub.f32 %v6884_v62, %v7254_v50  ;;  %5495 = vpow2.f32 %v4003_v52 }
 0x4ad   : > { %v5478_v45 = vpop.eup %5477  ;;  %v4110_v8 = vsel %vm3704_vm12, %v5476_v22, 0.0  ;;  %5497 = vpow2.f32 %v4005_v1  ;;  %v3935_v1 = vsub.f32 %v6914_v32, %v7254_v50  ;;  %v4023_v12 = vmul.f32 1.442695, %v3936_v42  ;;  %v7584_v42 = vld [vmem:[#allocation8_spill] sm:$0xff] }
 0x4ae   : > { %v4109_v26 = vadd.f32 %v4108_v37, %v4107_v25  ;;  %v5480_v17 = vpop.eup %5479  ;;  %v4112_v23 = vsel %vm3704_vm12, %v5478_v45, 0.0  ;;  %v4009_v62 = vmul.f32 1.442695, %v3929_v39  ;;  %5499 = vpow2.f32 %v4007_v58 }
 0x4af   : > { %v5482_v56 = vpop.eup %5481  ;;  %v4114_v57 = vsel %vm3704_vm12, %v5480_v17, 0.0  ;;  %v3932_v17 = vsub.f32 %v6889_v11, %v7254_v50  ;;  %v4021_v32 = vmul.f32 1.442695, %v3935_v1 }
 0x4b0   : > { %v4111_v3 = vadd.f32 %v4110_v8, %v4109_v26  ;;  %v5484_v47 = vpop.eup %5483  ;;  %v4116_v22 = vsel %vm3704_vm12, %v5482_v56, 0.0  ;;  %5501 = vpow2.f32 %v4009_v62 }
 0x4b1   : > { %v5486_v16 = vpop.eup %5485  ;;  %v4118_v37 = vsel %vm3704_vm12, %v5484_v47, 0.0  ;;  %5503 = vpow2.f32 %v4011_v19  ;;  %v4015_v11 = vmul.f32 1.442695, %v3932_v17 }
 0x4b2   : > { %v4113_v51 = vadd.f32 %v4112_v23, %v4111_v3  ;;  %v5488_v45 = vpop.eup %5487  ;;  %v4120_v26 = vsel %vm3704_vm12, %v5486_v16, 0.0  ;;  %v3933_v23 = vsub.f32 %v6904_v13, %v7254_v50  ;;  %5505 = vpow2.f32 %v4013_v24 }
 0x4b3   : > { %v5490_v8 = vpop.eup %5489  ;;  %v4122_v38 = vsel %vm3704_vm12, %v5488_v45, 0.0  ;;  %5507 = vpow2.f32 %v4015_v11  ;;  %v3937_v45 = vsub.f32 %v6924_v21, %v7254_v50 }
 0x4b4   : > { %v4115_v54 = vadd.f32 %v4114_v57, %v4113_v51  ;;  %v5492_v3 = vpop.eup %5491  ;;  %v4124_v31 = vsel %vm3704_vm12, %v5490_v8, 0.0  ;;  %v3934_v51 = vsub.f32 %v6899_v48, %v7254_v50  ;;  %v4017_v13 = vmul.f32 1.442695, %v3933_v23 }
 0x4b5   : > { %v5494_v52 = vpop.eup %5493  ;;  %v4126_v47 = vsel %vm3704_vm12, %v5492_v3, 0.0  ;;  %v4025_v21 = vmul.f32 1.442695, %v3937_v45  ;;  %v7585_v45 = vld [vmem:[#allocation7_spill] sm:$0xff] }
 0x4b6   : > { %v4117_v25 = vadd.f32 %v4116_v22, %v4115_v54  ;;  %v5496_v39 = vpop.eup %5495  ;;  %v4128_v22 = vsel %vm3704_vm12, %v5494_v52, 0.0  ;;  %v4019_v48 = vmul.f32 1.442695, %v3934_v51  ;;  %5509 = vpow2.f32 %v4017_v13 }
 0x4b7   : > { %v5498_v16 = vpop.eup %5497  ;;  %v3942_v13 = vsub.f32 %v6939_v28, %v7254_v50 }
 0x4b8   : > { %v4119_v4 = vadd.f32 %v4118_v37, %v4117_v25  ;;  %v4130_v25 = vsel %vm3704_vm12, %v5496_v39, 0.0  ;;  %v5500_v37 = vpop.eup %5499  ;;  %v4132_v62 = vsel %vm3704_vm12, %v5498_v16, 0.0  ;;  %5511 = vpow2.f32 %v4019_v48 }
 0x4b9   : > { %v4134_v19 = vsel %vm3704_vm12, %v5500_v37, 0.0  ;;  %5513 = vpow2.f32 %v4021_v32  ;;  %v3943_v48 = vsub.f32 %v7584_v42, %v7254_v50  ;;  %v3944_v32 = vsub.f32 %v7585_v45, %v7254_v50 }
 0x4ba   : > { %v4121_v0 = vadd.f32 %v4120_v26, %v4119_v4  ;;  %v5502_v4 = vpop.eup %5501  ;;  %v7583_v26 = vld [vmem:[#allocation6_spill] sm:$0xff]  ;;  %5515 = vpow2.f32 %v4023_v12  ;;  %v4035_v28 = vmul.f32 1.442695, %v3942_v13 }
 0x4bb   : > { %v3938_v8 = vsub.f32 %v7583_v26, %v7254_v50  ;;  %v4136_v23 = vsel %vm3704_vm12, %v5502_v4, 0.0  ;;  %5517 = vpow2.f32 %v4025_v21  ;;  %v7586_v26 = vld [vmem:[#allocation10_spill] sm:$0xff]  ;;  %v4037_v12 = vmul.f32 1.442695, %v3943_v48 }
 0x4bc   : > { %v4123_v56 = vadd.f32 %v4122_v38, %v4121_v0  ;;  %v5504_v0 = vpop.eup %5503  ;;  %v3939_v38 = vsub.f32 %v6934_v27, %v7254_v50 }
 0x4bd   : > { %v5506_v24 = vpop.eup %5505  ;;  %v4138_v51 = vsel %vm3704_vm12, %v5504_v0, 0.0 }
 0x4be   : > { %v4125_v57 = vadd.f32 %v4124_v31, %v4123_v56  ;;  %v3940_v56 = vsub.f32 %v6929_v35, %v7254_v50  ;;  %v4027_v31 = vmul.f32 1.442695, %v3938_v8  ;;  %v5508_v11 = vpop.eup %5507  ;;  %v4029_v27 = vmul.f32 1.442695, %v3939_v38  ;;  %v7587_v38 = vld [vmem:[#allocation9_spill] sm:$0xff] }
 0x4bf   : > { %v4140_v39 = vsel %vm3704_vm12, %v5506_v24, 0.0  ;;  %v3945_v8 = vsub.f32 %v7586_v26, %v7254_v50  ;;  %v3946_v21 = vsub.f32 %v7587_v38, %v7254_v50 }
 0x4c0   : > { %v4127_v54 = vadd.f32 %v4126_v47, %v4125_v57  ;;  %v3941_v57 = vsub.f32 %v6944_v10, %v7254_v50  ;;  %v5510_v1 = vpop.eup %5509  ;;  %5519 = vpow2.f32 %v4027_v31  ;;  %v4031_v35 = vmul.f32 1.442695, %v3940_v56  ;;  %v7588_v31 = vld [vmem:[#allocation12_spill] sm:$0xff] }
 0x4c1   : > { %5521 = vpow2.f32 %v4029_v27 }
 0x4c2   : > { %v4129_v58 = vadd.f32 %v4128_v22, %v4127_v54  ;;  %v4142_v22 = vsel %vm3704_vm12, %v5508_v11, 0.0  ;;  %v5512_v16 = vpop.eup %5511  ;;  %v4033_v10 = vmul.f32 1.442695, %v3941_v57  ;;  %5523 = vpow2.f32 %v4031_v35 }
 0x4c3   : > { %v5514_v37 = vpop.eup %5513 }
 0x4c4   : > { %v4131_v59 = vadd.f32 %v4130_v25, %v4129_v58  ;;  %v4144_v25 = vsel %vm3704_vm12, %v5510_v1, 0.0  ;;  %v5516_v4 = vpop.eup %5515  ;;  %5525 = vpow2.f32 %v4033_v10  ;;  %v4043_v1 = vmul.f32 1.442695, %v3946_v21 }
 0x4c5   : > { %v5518_v0 = vpop.eup %5517  ;;  %5527 = vpow2.f32 %v4035_v28  ;;  %v4150_v24 = vsel %vm3704_vm12, %v5516_v4, 0.0 }
 0x4c6   : > { %v4133_v17 = vadd.f32 %v4132_v62, %v4131_v59  ;;  %v4146_v62 = vsel %vm3704_vm12, %v5512_v16, 0.0  ;;  %5529 = vpow2.f32 %v4037_v12  ;;  %v4152_v57 = vsel %vm3704_vm12, %v5518_v0, 0.0 }
 0x4c8   : > { %v4135_v3 = vadd.f32 %v4134_v19, %v4133_v17  ;;  %v4148_v19 = vsel %vm3704_vm12, %v5514_v37, 0.0 }
 0x4ca   : > { %v4137_v52 = vadd.f32 %v4136_v23, %v4135_v3  ;;  %v4039_v3 = vmul.f32 1.442695, %v3944_v32  ;;  %v5520_v56 = vpop.eup %5519 }
 0x4cb   : > { %v5522_v27 = vpop.eup %5521  ;;  %v4154_v35 = vsel %vm3704_vm12, %v5520_v56, 0.0 }
 0x4cc   : > { %v4139_v47 = vadd.f32 %v4138_v51, %v4137_v52  ;;  %v3947_v52 = vsub.f32 %v7588_v31, %v7254_v50  ;;  %v4041_v51 = vmul.f32 1.442695, %v3945_v8  ;;  %5531 = vpow2.f32 %v4039_v3 }
 0x4cd   : > { %v4156_v10 = vsel %vm3704_vm12, %v5522_v27, 0.0 }
 0x4ce   : > { %v4141_v54 = vadd.f32 %v4140_v39, %v4139_v47  ;;  %v7589_v47 = vld [vmem:[#allocation11_spill] sm:$0xff]  ;;  %5533 = vpow2.f32 %v4041_v51  ;;  %v4045_v42 = vmul.f32 1.442695, %v3947_v52 }
 0x4cf   : > { %v3948_v39 = vsub.f32 %v7589_v47, %v7254_v50  ;;  %5535 = vpow2.f32 %v4043_v1 }
 0x4d0   : > { %v4143_v58 = vadd.f32 %v4142_v22, %v4141_v54  ;;  %v5524_v54 = vpop.eup %5523  ;;  %v7590_v22 = vld [vmem:[#allocation14_spill] sm:$0xff]  ;;  %5537 = vpow2.f32 %v4045_v42 }
 0x4d1   : > { %v3949_v16 = vsub.f32 %v7590_v22, %v7254_v50  ;;  %v4047_v45 = vmul.f32 1.442695, %v3948_v39  ;;  %v4158_v28 = vsel %vm3704_vm12, %v5524_v54, 0.0 }
 0x4d2   : > { %v4145_v59 = vadd.f32 %v4144_v25, %v4143_v58  ;;  %v5526_v58 = vpop.eup %5525  ;;  %v7591_v25 = vld [vmem:[#allocation13_spill] sm:$0xff] }
 0x4d3   : > { %v3950_v37 = vsub.f32 %v7591_v25, %v7254_v50  ;;  %v4049_v26 = vmul.f32 1.442695, %v3949_v16  ;;  %v4160_v12 = vsel %vm3704_vm12, %v5526_v58, 0.0  ;;  %5539 = vpow2.f32 %v4047_v45 }
 0x4d4   : > { %v4147_v17 = vadd.f32 %v4146_v62, %v4145_v59  ;;  %v5528_v59 = vpop.eup %5527  ;;  %v7592_v62 = vld [vmem:[#allocation16_spill] sm:$0xff] }
 0x4d5   : > { %v3951_v4 = vsub.f32 %v7592_v62, %v7254_v50  ;;  %v4051_v38 = vmul.f32 1.442695, %v3950_v37  ;;  %v4162_v3 = vsel %vm3704_vm12, %v5528_v59, 0.0  ;;  %5541 = vpow2.f32 %v4049_v26 }
 0x4d6   : > { %v4149_v23 = vadd.f32 %v4148_v19, %v4147_v17  ;;  %v5530_v17 = vpop.eup %5529  ;;  %v7593_v19 = vld [vmem:[#allocation15_spill] sm:$0xff] }
 0x4d7   : > { %v3952_v0 = vsub.f32 %v7593_v19, %v7254_v50  ;;  %v4053_v31 = vmul.f32 1.442695, %v3951_v4  ;;  %v4164_v51 = vsel %vm3704_vm12, %v5530_v17, 0.0  ;;  %5543 = vpow2.f32 %v4051_v38 }
 0x4d8   : > { %v4151_v11 = vadd.f32 %v4150_v24, %v4149_v23  ;;  %v5532_v23 = vpop.eup %5531  ;;  %v7594_v24 = vld [vmem:[#allocation18_spill] sm:$0xff] }
 0x4d9   : > { %v3953_v56 = vsub.f32 %v7594_v24, %v7254_v50  ;;  %v4055_v47 = vmul.f32 1.442695, %v3952_v0  ;;  %v4166_v1 = vsel %vm3704_vm12, %v5532_v23, 0.0  ;;  %5545 = vpow2.f32 %v4053_v31 }
 0x4da   : > { %v4153_v13 = vadd.f32 %v4152_v57, %v4151_v11  ;;  %v5534_v11 = vpop.eup %5533  ;;  %v7595_v57 = vld [vmem:[#allocation17_spill] sm:$0xff] }
 0x4db   : > { %v3954_v27 = vsub.f32 %v7595_v57, %v7254_v50  ;;  %v4057_v22 = vmul.f32 1.442695, %v3953_v56  ;;  %v4168_v42 = vsel %vm3704_vm12, %v5534_v11, 0.0  ;;  %5547 = vpow2.f32 %v4055_v47 }
 0x4dc   : > { %v4155_v48 = vadd.f32 %v4154_v35, %v4153_v13  ;;  %v5536_v13 = vpop.eup %5535  ;;  %v7596_v35 = vld [vmem:[#allocation20_spill] sm:$0xff] }
 0x4dd   : > { %v3955_v54 = vsub.f32 %v7596_v35, %v7254_v50  ;;  %v4059_v25 = vmul.f32 1.442695, %v3954_v27  ;;  %v4170_v45 = vsel %vm3704_vm12, %v5536_v13, 0.0  ;;  %5549 = vpow2.f32 %v4057_v22 }
 0x4de   : > { %v4157_v32 = vadd.f32 %v4156_v10, %v4155_v48  ;;  %v5538_v48 = vpop.eup %5537  ;;  %v7597_v10 = vld [vmem:[#allocation19_spill] sm:$0xff] }
 0x4df   : > { %v3956_v58 = vsub.f32 %v7597_v10, %v7254_v50  ;;  %v4061_v62 = vmul.f32 1.442695, %v3955_v54  ;;  %v4172_v26 = vsel %vm3704_vm12, %v5538_v48, 0.0  ;;  %5551 = vpow2.f32 %v4059_v25 }
 0x4e0   : > { %v4159_v8 = vadd.f32 %v4158_v28, %v4157_v32  ;;  %v5540_v32 = vpop.eup %5539  ;;  %v7598_v28 = vld [vmem:[#allocation22_spill] sm:$0xff]  ;;  %v4073_v10 = vmul.f32 1.442695, %v3961_v9 }
 0x4e1   : > { %v3957_v59 = vsub.f32 %v7598_v28, %v7254_v50  ;;  %v4063_v19 = vmul.f32 1.442695, %v3956_v58  ;;  %v4174_v38 = vsel %vm3704_vm12, %v5540_v32, 0.0  ;;  %5553 = vpow2.f32 %v4061_v62 }
 0x4e2   : > { %v4161_v21 = vadd.f32 %v4160_v12, %v4159_v8  ;;  %v5542_v8 = vpop.eup %5541  ;;  %v7599_v12 = vld [vmem:[#allocation21_spill] sm:$0xff]  ;;  %v4077_v62 = vmul.f32 1.442695, %v3963_v15 }
 0x4e3   : > { %v3958_v17 = vsub.f32 %v7599_v12, %v7254_v50  ;;  %v4065_v24 = vmul.f32 1.442695, %v3957_v59  ;;  %v4176_v31 = vsel %vm3704_vm12, %v5542_v8, 0.0  ;;  %5555 = vpow2.f32 %v4063_v19 }
 0x4e4   : > { %v4163_v52 = vadd.f32 %v4162_v3, %v4161_v21  ;;  %v5544_v21 = vpop.eup %5543  ;;  %v7600_v3 = vld [vmem:[#allocation24_spill] sm:$0xff]  ;;  %v4081_v12 = vmul.f32 1.442695, %v3965_v18  ;;  %v4083_v19 = vmul.f32 1.442695, %v3966_v33 }
 0x4e5   : > { %v3959_v23 = vsub.f32 %v7600_v3, %v7254_v50  ;;  %v4067_v57 = vmul.f32 1.442695, %v3958_v17  ;;  %v4178_v47 = vsel %vm3704_vm12, %v5544_v21, 0.0  ;;  %5557 = vpow2.f32 %v4065_v24 }
 0x4e6   : > { %v4165_v39 = vadd.f32 %v4164_v51, %v4163_v52  ;;  %v5546_v52 = vpop.eup %5545  ;;  %v7601_v51 = vld [vmem:[#allocation23_spill] sm:$0xff]  ;;  %v7602_v3 = vsub.f32 %v7177_v20, %v7254_v50 }
 0x4e7   : > { %v3960_v11 = vsub.f32 %v7601_v51, %v7254_v50  ;;  %v4180_v35 = vsel %vm3704_vm12, %v5546_v52, 0.0  ;;  %5559 = vpow2.f32 %v4067_v57  ;;  %v7604_v51 = vsub.f32 %v7191_v44, %v7254_v50 }
 0x4e8   : > { %v4167_v16 = vadd.f32 %v4166_v1, %v4165_v39  ;;  %v5548_v39 = vpop.eup %5547  ;;  %v4069_v1 = vmul.f32 1.442695, %v3959_v23  ;;  %v4087_v23 = vmul.f32 1.442695, %v7602_v3  ;;  %v7611_v3 = vsub.f32 %v7248_v29, %v7251_v46 }
 0x4e9   : > { %v5550_v54 = vpop.eup %5549  ;;  %v4071_v22 = vmul.f32 1.442695, %v3960_v11  ;;  %v4091_v11 = vmul.f32 1.442695, %v7604_v51 }
 0x4ea   : > { %v4169_v37 = vadd.f32 %v4168_v42, %v4167_v16  ;;  %v4182_v42 = vsel %vm3704_vm12, %v5548_v39, 0.0  ;;  %v5552_v48 = vpop.eup %5551  ;;  %5561 = vpow2.f32 %v4069_v1  ;;  %v4184_v25 = vsel %vm3704_vm12, %v5550_v54, 0.0 }
 0x4eb   : > { %5563 = vpow2.f32 %v4071_v22  ;;  %v4186_v28 = vsel %vm3704_vm12, %v5552_v48, 0.0 }
 0x4ec   : > { %v4171_v4 = vadd.f32 %v4170_v45, %v4169_v37  ;;  %v5554_v37 = vpop.eup %5553  ;;  %v4075_v45 = vmul.f32 1.442695, %v3962_v63  ;;  %5565 = vpow2.f32 %v4073_v10 }
 0x4ed   : > { %v5556_v59 = vpop.eup %5555  ;;  %v4188_v9 = vsel %vm3704_vm12, %v5554_v37, 0.0 }
 0x4ee   : > { %v4173_v0 = vadd.f32 %v4172_v26, %v4171_v4  ;;  %5567 = vpow2.f32 %v4075_v45  ;;  %v4079_v26 = vmul.f32 1.442695, %v3964_v53  ;;  %v4190_v63 = vsel %vm3704_vm12, %v5556_v59, 0.0 }
 0x4ef   : > { %v5558_v4 = vpop.eup %5557  ;;  %5569 = vpow2.f32 %v4077_v62 }
 0x4f0   : > { %v4175_v56 = vadd.f32 %v4174_v38, %v4173_v0  ;;  %v4192_v15 = vsel %vm3704_vm12, %v5558_v4, 0.0  ;;  %5571 = vpow2.f32 %v4079_v26  ;;  %v4085_v38 = vmul.f32 1.442695, %v3967_v43 }
 0x4f1   : > { %v5560_v8 = vpop.eup %5559  ;;  %5573 = vpow2.f32 %v4081_v12  ;;  %v7610_v4 = vsub.f32 %v7233_v61, %v7254_v50 }
 0x4f2   : > { %v4177_v27 = vadd.f32 %v4176_v31, %v4175_v56  ;;  %v4194_v53 = vsel %vm3704_vm12, %v5560_v8, 0.0  ;;  %5575 = vpow2.f32 %v4083_v19  ;;  %v7603_v56 = vsub.f32 %v7198_v34, %v7254_v50 }
 0x4f3   : > { %5577 = vpow2.f32 %v4085_v38 }
 0x4f4   : > { %v4179_v13 = vadd.f32 %v4178_v47, %v4177_v27  ;;  %v5562_v17 = vpop.eup %5561  ;;  %v4089_v31 = vmul.f32 1.442695, %v7603_v56  ;;  %5579 = vpow2.f32 %v4087_v23  ;;  %v7605_v47 = vsub.f32 %v7212_v60, %v7254_v50 }
 0x4f5   : > { %v5564_v0 = vpop.eup %5563  ;;  %v4196_v18 = vsel %vm3704_vm12, %v5562_v17, 0.0  ;;  %v3906_v23 = vmul.f32 1.442695, %v7611_v3 }
 0x4f6   : > { %v4181_v16 = vadd.f32 %v4180_v35, %v4179_v13  ;;  %v5566_v21 = vpop.eup %5565  ;;  %v4198_v33 = vsel %vm3704_vm12, %v5564_v0, 0.0  ;;  %5581 = vpow2.f32 %v4089_v31  ;;  %v4093_v39 = vmul.f32 1.442695, %v7605_v47 }
 0x4f7   : > { %v4200_v43 = vsel %vm3704_vm12, %v5566_v21, 0.0  ;;  %5583 = vpow2.f32 %v4091_v11  ;;  %v7606_v35 = vsub.f32 %v7205_v5, %v7254_v50 }
 0x4f8   : > { %v4183_v58 = vadd.f32 %v4182_v42, %v4181_v16  ;;  %v5568_v24 = vpop.eup %5567  ;;  %5585 = vpow2.f32 %v4093_v39  ;;  %v7607_v42 = vsub.f32 %v7226_v40, %v7254_v50 }
 0x4f9   : > { %v5570_v52 = vpop.eup %5569  ;;  %v4202_v57 = vsel %vm3704_vm12, %v5568_v24, 0.0  ;;  %v4095_v54 = vmul.f32 1.442695, %v7606_v35 }
 0x4fa   : > { %v4185_v32 = vadd.f32 %v4184_v25, %v4183_v58  ;;  %v5572_v27 = vpop.eup %5571  ;;  %v4204_v1 = vsel %vm3704_vm12, %v5570_v52, 0.0  ;;  %v4097_v48 = vmul.f32 1.442695, %v7607_v42  ;;  %v7608_v25 = vsub.f32 %v7219_v6, %v7254_v50 }
 0x4fb   : > { %v5574_v13 = vpop.eup %5573  ;;  %v4206_v22 = vsel %vm3704_vm12, %v5572_v27, 0.0  ;;  %5587 = vpow2.f32 %v4095_v54  ;;  %v4103_v6 = vmul.f32 1.442695, %v7610_v4 }
 0x4fc   : > { %v4187_v14 = vadd.f32 %v4186_v28, %v4185_v32  ;;  %v5576_v16 = vpop.eup %5575  ;;  %v4208_v10 = vsel %vm3704_vm12, %v5574_v13, 0.0  ;;  %v4099_v37 = vmul.f32 1.442695, %v7608_v25  ;;  %5589 = vpow2.f32 %v4097_v48 }
 0x4fd   : > { %v5578_v58 = vpop.eup %5577  ;;  %v4210_v45 = vsel %vm3704_vm12, %v5576_v16, 0.0  ;;  %v7609_v28 = vsub.f32 %v7240_v2, %v7254_v50 }
 0x4fe   : > { %v4189_v41 = vadd.f32 %v4188_v9, %v4187_v14  ;;  %v5580_v32 = vpop.eup %5579  ;;  %v4212_v62 = vsel %vm3704_vm12, %v5578_v58, 0.0  ;;  %5591 = vpow2.f32 %v4099_v37 }
 0x4ff   : > { %v4101_v59 = vmul.f32 1.442695, %v7609_v28  ;;  %v4214_v26 = vsel %vm3704_vm12, %v5580_v32, 0.0 }
 0x500   : > { %v4191_v7 = vadd.f32 %v4190_v63, %v4189_v41  ;;  %v5582_v14 = vpop.eup %5581 }
 0x501   : > { %v5584_v41 = vpop.eup %5583  ;;  %5593 = vpow2.f32 %v4101_v59  ;;  %v4216_v8 = vsel %vm3704_vm12, %v5582_v14, 0.0 }
 0x502   : > { %v4193_v36 = vadd.f32 %v4192_v15, %v4191_v7  ;;  %v5586_v12 = vpop.eup %5585  ;;  %5595 = vpow2.f32 %v4103_v6  ;;  %v4218_v7 = vsel %vm3704_vm12, %v5584_v41, 0.0 }
 0x503   : > { %v4220_v19 = vsel %vm3704_vm12, %v5586_v12, 0.0  ;;  %5597 = vpow2.f32 %v3906_v23 }
 0x504   : > { %v4195_v49 = vadd.f32 %v4194_v53, %v4193_v36 }
 0x505   : > { %v5588_v15 = vpop.eup %5587 }
 0x506   : > { %v4197_v55 = vadd.f32 %v4196_v18, %v4195_v49  ;;  %v5590_v36 = vpop.eup %5589  ;;  %v4222_v61 = vsel %vm3704_vm12, %v5588_v15, 0.0 }
 0x507   : > { %v4224_v38 = vsel %vm3704_vm12, %v5590_v36, 0.0 }
 0x508   : > { %v4199_v30 = vadd.f32 %v4198_v33, %v4197_v55  ;;  %v5592_v50 = vpop.eup %5591 }
 0x509   : > { %v4226_v21 = vsel %vm3704_vm12, %v5592_v50, 0.0 }
 0x50a   : > { %v4201_v20 = vadd.f32 %v4200_v43, %v4199_v30 }
 0x50b   : > { %v5594_v49 = vpop.eup %5593 }
 0x50c   : > { %v4203_v34 = vadd.f32 %v4202_v57, %v4201_v20  ;;  %v5596_v55 = vpop.eup %5595  ;;  %v4228_v24 = vsel %vm3704_vm12, %v5594_v49, 0.0  ;;  %v3770_v57 = vld [vmem:[#allocation3 + $0x1] sm:$0x1] }
 0x50d   : > { %v4230_v31 = vsel %vm3704_vm12, %v5596_v55, 0.0  ;;  %v5598_v20 = vpop.eup %5597 }
 0x50e   : > { %v4205_v44 = vadd.f32 %v4204_v1, %v4203_v34  ;;  %v3908_v29 = vmul.f32 %v5598_v20, %v3770_v57 }
 0x510   : > { %v4207_v60 = vadd.f32 %v4206_v22, %v4205_v44 }
 0x512   : > { %v4209_v5 = vadd.f32 %v4208_v10, %v4207_v60 }
 0x514   : > { %v4211_v40 = vadd.f32 %v4210_v45, %v4209_v5 }
 0x516   : > { %v4213_v9 = vadd.f32 %v4212_v62, %v4211_v40 }
 0x518   : > { %v4215_v63 = vadd.f32 %v4214_v26, %v4213_v9 }
 0x51a   : > { %v4217_v2 = vadd.f32 %v4216_v8, %v4215_v63 }
 0x51c   : > { %v4219_v17 = vadd.f32 %v4218_v7, %v4217_v2 }
 0x51e   : > { %v4221_v53 = vadd.f32 %v4220_v19, %v4219_v17 }
 0x520   : > { %v4223_v0 = vadd.f32 %v4222_v61, %v4221_v53 }
 0x522   : > { %v4225_v18 = vadd.f32 %v4224_v38, %v4223_v0 }
 0x524   : > { %v4227_v33 = vadd.f32 %v4226_v21, %v4225_v18 }
 0x526   : > { %v4229_v56 = vadd.f32 %v4228_v24, %v4227_v33 }
 0x528   : > { %v4231_v30 = vadd.f32 %v4230_v31, %v4229_v56 }
 0x52a   : > { %v4232_v43 = vrot.slane %v4231_v30, 4 }
 0x52c   : > { %v4233_v52 = vadd.f32 %v4232_v43, %v4231_v30 }
 0x52e   : > { %v4234_v51 = vrot.slane %v4233_v52, 2 }
 0x530   : > { %v4235_v11 = vadd.f32 %v4234_v51, %v4233_v52 }
 0x532   : > { %v4236_v27 = vrot.slane %v4235_v11, 1 }
 0x534   : > { %v4237_v46 = vadd.f32 %v4236_v27, %v4235_v11 }
 0x536   : > { %v4238_v47 = vadd.f32 %v4237_v46, %v3908_v29 }
 0x538   : > { %4241 = vst.msk [vmem:[#allocation3 + $0x1] sm:$0x1] %vm4239_vm0, %v4238_v47 }
 0x539   : > { %5612 = shalt.err (!%p5609_p12)
}
 0x53a   : > { %s5613_s25 = scalar_lea.hbm %s7542_s12, 32 }
 0x53b   : > { %p5614_p13 = scmp.ne.s32.totalorder %s7542_s12, %s5613_s25  ;;  %p5619_p2 = scmp.lt.u32.totalorder %s5613_s25, %s7542_s12 }
 0x53d   : > { %p5615_p0 = pnand %p5614_p13, %p5452_p5 }
 0x53f   : > { %p5616_p1 = pneg %p5615_p0 }
 0x541   : > { %p5621_p3 = pnand %p5619_p2, %p5616_p1 }
 0x543   : > { %5624 = shalt.err (!%p5621_p3)
}
 0x544   : > { %5449 = dma.vmem_to_hbm [thread:$0]  (%p5452_p5), %s4268_s17, 32, %s7542_s12, [#allocation4]  }
 0x545   : > { %5630 = dma.done.wait (%p5452_p5), [#allocation4], 32  }
 0x546   : > { %5632 = vsyncadd (%p5452_p5), [#allocation4], 4294967264 }
 0x547 PF: > { %s24_s21 = sadd.s32 1, %s5635_s21  }
 0x548   : > { %p21_p4 = scmp.ge.s32.totalorder %s24_s21, 4  }
 0x54a   :  { %23 = sbr.rel (!%p21_p4) target bundleno = 1 (0x1), region = 118 }
 0x551   :  { %4296 = vsyncpa [#allocation4], 1 }
 0x552   :  { %4298 = vsyncpa [#allocation4 + $0x1], 1 }

</bundles_post_ra>
